<compile_context>
chip_gen: v5e
topology: v5e:2x2
jax: 0.10.0
libtpu: 0.0.40
codegen_flags: <defaults>
</compile_context>

<pallas_src>
import functools

import jax
import jax.numpy as jnp
from jax.experimental import pallas as pl
from jax.experimental.pallas import tpu as pltpu


LANE = 128
VMEM_LIMIT = 32 * 1024 * 1024  # within every generation's scoped/physical budget


def _ceil_to(n, m):
    return ((n + m - 1) // m) * m


def _pad_to(a, shape):
    pads = [(0, s - d) for d, s in zip(a.shape, shape)]
    return jnp.pad(a, pads)


def _choose_tiles(n):
    """(n_pad, tm, tk): collapse k for small graphs, keep >=2 row tiles (megacore)."""
    if n <= 512:
        return 512, 256, 512        # grid (2, 1): one Â row stripe per step
    if n <= 1024:
        return 1024, 512, 1024      # grid (2, 1)
    n_pad = _ceil_to(n, 1024)
    return n_pad, 512, 1024         # HBM-roofline-friendly 512x1024 Â tiles


# ----------------------------- fused layer kernel --------------------------- #

def gcn_layer_kernel(adj_ref, x_ref, w_ref, b_ref, o_ref, acc_ref, *,
                     mode, valid_cols):
    """One (row_tile, k_tile) step of out = Â @ (X @ W) + b with fused epilogue."""
    k = pl.program_id(1)

    @pl.when(k == 0)
    def _():
        # Fold the bias into the accumulator init (saves a full-tile add at finalize).
        acc_ref[...] = jnp.broadcast_to(b_ref[...], acc_ref.shape).astype(jnp.float32)

    # h_tile = X_tile @ W  (recomputed per row tile; hides under the Â DMA stream)
    h = jnp.dot(x_ref[...], w_ref[...],
                preferred_element_type=jnp.float32).astype(jnp.bfloat16)
    acc_ref[...] += jnp.dot(adj_ref[...], h, preferred_element_type=jnp.float32)

    @pl.when(k == pl.num_programs(1) - 1)
    def _():
        out = acc_ref[...]
        if mode == "relu":
            out = jnp.maximum(out, 0.0)
        else:  # masked log_softmax over the valid (un-padded) feature lanes
            lane = jax.lax.broadcasted_iota(jnp.int32, out.shape, 1)
            valid = lane < valid_cols
            masked = jnp.where(valid, out, -jnp.inf)
            m = jnp.max(masked, axis=1, keepdims=True)
            s = masked - m
            lse = jnp.log(
                jnp.sum(jnp.where(valid, jnp.exp(s), 0.0), axis=1, keepdims=True))
            out = jnp.where(valid, s - lse, 0.0)
        o_ref[...] = out.astype(o_ref.dtype)


def gcn_layer(adj, x, w, b, *, mode, valid_cols, out_dtype, tm, tk):
    """out = Â @ (X @ W) + b with fused ReLU / log_softmax, single pallas_call.

    adj: (N_pad, N_pad) bf16, x: (N_pad, F_in_p) bf16,
    w: (F_in_p, F_out_p) bf16, b: (1, F_out_p) f32.
    """
    n_pad = adj.shape[0]
    f_in_p = x.shape[1]
    f_out_p = w.shape[1]
    kernel = functools.partial(gcn_layer_kernel, mode=mode, valid_cols=valid_cols)

    out_isz = jnp.dtype(out_dtype).itemsize
    n_row_tiles = n_pad // tm
    cost = pl.CostEstimate(
        flops=2 * n_pad * n_pad * f_out_p                    # Â @ H
              + 2 * n_row_tiles * n_pad * f_in_p * f_out_p,  # recomputed X @ W
        transcendentals=(n_pad * f_out_p) if mode == "log_softmax" else 0,
        bytes_accessed=n_pad * n_pad * 2                     # Â stream (bf16)
                       + n_row_tiles * n_pad * f_in_p * 2    # X re-read per row tile
                       + f_in_p * f_out_p * 2                # resident W
                       + n_pad * f_out_p * out_isz,
    )

    return pl.pallas_call(
        kernel,
        out_shape=jax.ShapeDtypeStruct((n_pad, f_out_p), out_dtype),
        grid=(n_row_tiles, n_pad // tk),
        in_specs=[
            pl.BlockSpec((tm, tk), lambda i, k: (i, k)),          # Â tile
            pl.BlockSpec((tk, f_in_p), lambda i, k: (k, 0)),      # X tile (k segment)
            pl.BlockSpec((f_in_p, f_out_p), lambda i, k: (0, 0)), # W (resident)
            pl.BlockSpec((1, f_out_p), lambda i, k: (0, 0)),      # bias (resident)
        ],
        out_specs=pl.BlockSpec((tm, f_out_p), lambda i, k: (i, 0)),
        scratch_shapes=[pltpu.VMEM((tm, f_out_p), jnp.float32)],
        compiler_params=pltpu.CompilerParams(
            dimension_semantics=("parallel", "arbitrary"),
            vmem_limit_bytes=VMEM_LIMIT,
        ),
        cost_estimate=cost,
    )(adj, x, w, b)


# --------------------- graph / weight preprocessing ------------------------- #

def normalized_adjacency(edge_index, num_nodes, padded_nodes):
    """Dense Â = D^{-1/2}(A + remaining self loops)D^{-1/2} (PyG gcn_norm),
    zero-padded, bf16 for MXU streaming. Message flows src -> dst: A[dst, src] += 1.
    """
    src, dst = edge_index[0], edge_index[1]
    A = jnp.zeros((num_nodes, num_nodes), jnp.float32)
    A = A.at[dst, src].add(1.0)
    # add_remaining_self_loops: only nodes WITHOUT an existing self loop get one.
    diag = jnp.diagonal(A)
    idx = jnp.arange(num_nodes)
    A = A.at[idx, idx].set(jnp.where(diag > 0.0, diag, 1.0))
    deg = jnp.sum(A, axis=1)
    dinv = jnp.where(deg > 0, jax.lax.rsqrt(deg), 0.0)
    A_hat = dinv[:, None] * A * dinv[None, :]
    A_pad = jnp.zeros((padded_nodes, padded_nodes), jnp.float32)
    A_pad = A_pad.at[:num_nodes, :num_nodes].set(A_hat)
    # TODO(synk): fp8 (v7x) / int8-with-scale (v6e) Â would halve the dominant HBM
    #             stream; kept bf16 here pending accuracy validation.
    return A_pad.astype(jnp.bfloat16)


def preprocess(x, edge_index, params):
    """One-time: build Â, pad/cast features and weights (hoisted off the hot path)."""
    n, f_in = x.shape
    n_pad, tm, tk = _choose_tiles(n)
    adj = normalized_adjacency(edge_index, n, n_pad)

    f_in_pad = _ceil_to(f_in, 16)   # bf16 sublane pack; 128-lane padding not needed here
    xp = _pad_to(x, (n_pad, f_in_pad)).astype(jnp.bfloat16)

    padded_params = []
    prev = f_in_pad
    for (w, b) in params:
        f_out = w.shape[1]
        f_out_pad = _ceil_to(f_out, LANE)
        wp = _pad_to(w, (prev, f_out_pad)).astype(jnp.bfloat16)
        bp = _pad_to(b, (f_out_pad,)).reshape(1, f_out_pad).astype(jnp.float32)
        padded_params.append((wp, bp))
        prev = f_out_pad
    return adj, xp, tuple(padded_params), (n, tm, tk)


@functools.partial(jax.jit, static_argnames=("meta", "out_channels"))
def gcn_apply(adj, xp, padded_params, *, meta, out_channels):
    """Jitted hot path: only Pallas layer calls + final slice."""
    n, tm, tk = meta
    num_layers = len(padded_params)
    for i, (wp, bp) in enumerate(padded_params):
        last = i == num_layers - 1
        xp = gcn_layer(
            adj, xp, wp, bp,
            mode="log_softmax" if last else "relu",
            valid_cols=out_channels if last else wp.shape[1],
            out_dtype=jnp.float32 if last else jnp.bfloat16,
            tm=tm, tk=tk,
        )
        # TODO(synk): F.dropout(p=0.5) in training mode omitted; identity at inference.
    return xp[:n, :out_channels]


def gcn_forward(x, edge_index, params):
    """GCN forward, eval-mode semantics of the PyTorch module."""
    out_channels = params[-1][0].shape[1]
    adj, xp, padded_params, meta = preprocess(x, edge_index, params)
    return gcn_apply(adj, xp, padded_params, meta=meta, out_channels=out_channels)


def glorot(key, shape):
    fan_in, fan_out = shape
    limit = (6.0 / (fan_in + fan_out)) ** 0.5
    return jax.random.uniform(key, shape, jnp.float32, -limit, limit)


# ----------------------------- demo / smoke test ---------------------------- #

if __name__ == "__main__":
    N = 512             # nodes (padded internally to 512, grid = (2, 1) per layer)
    E = 2048            # edges
    in_channels = 16
    hidden_channels = 32
    out_channels = 8

    key = jax.random.PRNGKey(0)
    kx, ksrc, kdst, kw1, kw2 = jax.random.split(key, 5)

    x = jax.random.normal(kx, (N, in_channels), jnp.float32)
    edge_index = jnp.stack([
        jax.random.randint(ksrc, (E,), 0, N, jnp.int32),
        jax.random.randint(kdst, (E,), 0, N, jnp.int32),
    ])

    params = [
        (glorot(kw1, (in_channels, hidden_channels)),
         jnp.zeros((hidden_channels,), jnp.float32)),
        (glorot(kw2, (hidden_channels, out_channels)),
         jnp.zeros((out_channels,), jnp.float32)),
    ]

    out = gcn_forward(x, edge_index, params)
    jax.block_until_ready(out)

    assert out.shape == (N, out_channels)
    assert bool(jnp.all(jnp.isfinite(out)))
    # log_softmax rows must exponentiate to probability distributions
    row_sums = jnp.sum(jnp.exp(out.astype(jnp.float32)), axis=1)
    assert bool(jnp.all(jnp.abs(row_sums - 1.0) < 1e-2))
    print("KERNEL_OK")
</pallas_src>

<mosaic_0001>
module attributes {stable_mosaic.version = 11 : i64} {
  func.func @gcn_layer_kernel(%arg0: i32, %arg1: i32, %arg2: memref<256x512xbf16, #tpu.memory_space<vmem>>, %arg3: memref<512x16xbf16, #tpu.memory_space<vmem>>, %arg4: memref<16x128xbf16, #tpu.memory_space<vmem>>, %arg5: memref<1x128xf32, #tpu.memory_space<vmem>>, %arg6: memref<256x128xbf16, #tpu.memory_space<vmem>>, %arg7: memref<256x128xf32, #tpu.memory_space<vmem>>) attributes {dimension_semantics = [#tpu.dimension_semantics<parallel>, #tpu.dimension_semantics<arbitrary>], iteration_bounds = array<i64: 2, 1>, scalar_prefetch = 0 : i64, scratch_operands = 1 : i64, tpu.core_type = #tpu.core_type<tc>, window_params = [{transform_indices = @transform_0, window_bounds = array<i64: 256, 512>}, {transform_indices = @transform_1, window_bounds = array<i64: 512, 16>}, {pipeline_mode = #tpu.pipeline_mode<synchronous>, transform_indices = @transform_2, window_bounds = array<i64: 16, 128>}, {pipeline_mode = #tpu.pipeline_mode<synchronous>, transform_indices = @transform_3, window_bounds = array<i64: 1, 128>}, {transform_indices = @transform_4, window_bounds = array<i64: 256, 128>}]} {
    %c0_i32 = arith.constant 0 : i32
    %0 = arith.cmpi eq, %arg1, %c0_i32 : i32
    %1 = arith.extui %0 : i1 to i32
    %c0_i32_0 = arith.constant 0 : i32
    %2 = arith.cmpi ne, %1, %c0_i32_0 : i32
    scf.if %2 {
      %c0_13 = arith.constant 0 : index
      %c0_14 = arith.constant 0 : index
      %15 = vector.load %arg5[%c0_13, %c0_14] : memref<1x128xf32, #tpu.memory_space<vmem>>, vector<1x128xf32>
      %16 = vector.shape_cast %15 : vector<1x128xf32> to vector<1x128xf32>
      %17 = vector.broadcast %16 : vector<1x128xf32> to vector<256x128xf32>
      %c0_15 = arith.constant 0 : index
      %c0_16 = arith.constant 0 : index
      %18 = vector.load %arg7[%c0_15, %c0_16] : memref<256x128xf32, #tpu.memory_space<vmem>>, vector<256x128xf32>
      tpu.vector_store %arg7[%c0_15, %c0_16], %17 {strides = array<i32>} : memref<256x128xf32, #tpu.memory_space<vmem>>, vector<256x128xf32>,
    } else {
    }
    %c0 = arith.constant 0 : index
    %c0_1 = arith.constant 0 : index
    %3 = vector.load %arg3[%c0, %c0_1] : memref<512x16xbf16, #tpu.memory_space<vmem>>, vector<512x16xbf16>
    %c0_2 = arith.constant 0 : index
    %c0_3 = arith.constant 0 : index
    %4 = vector.load %arg4[%c0_2, %c0_3] : memref<16x128xbf16, #tpu.memory_space<vmem>>, vector<16x128xbf16>
    %cst = arith.constant dense<0.000000e+00> : vector<512x128xf32>
    %5 = tpu.matmul %3, %4, %cst {dimension_numbers = #tpu.dot_dimension_numbers<[1], [0], [0], [1], [0, 0, 1, 1], [], []>} : vector<512x16xbf16>, vector<16x128xbf16>, vector<512x128xf32> -> vector<512x128xf32>
    %6 = arith.truncf %5 : vector<512x128xf32> to vector<512x128xbf16>
    %c0_4 = arith.constant 0 : index
    %c0_5 = arith.constant 0 : index
    %7 = vector.load %arg7[%c0_4, %c0_5] : memref<256x128xf32, #tpu.memory_space<vmem>>, vector<256x128xf32>
    %c0_6 = arith.constant 0 : index
    %c0_7 = arith.constant 0 : index
    %8 = vector.load %arg2[%c0_6, %c0_7] : memref<256x512xbf16, #tpu.memory_space<vmem>>, vector<256x512xbf16>
    %cst_8 = arith.constant dense<0.000000e+00> : vector<256x128xf32>
    %9 = tpu.matmul %8, %6, %cst_8 {dimension_numbers = #tpu.dot_dimension_numbers<[1], [0], [0], [1], [0, 0, 1, 1], [], []>} : vector<256x512xbf16>, vector<512x128xbf16>, vector<256x128xf32> -> vector<256x128xf32>
    %10 = arith.addf %7, %9 : vector<256x128xf32>
    %c0_9 = arith.constant 0 : index
    %c0_10 = arith.constant 0 : index
    %11 = vector.load %arg7[%c0_9, %c0_10] : memref<256x128xf32, #tpu.memory_space<vmem>>, vector<256x128xf32>
    tpu.vector_store %arg7[%c0_9, %c0_10], %10 {strides = array<i32>} : memref<256x128xf32, #tpu.memory_space<vmem>>, vector<256x128xf32>,
    %c0_i32_11 = arith.constant 0 : i32
    %12 = arith.cmpi eq, %arg1, %c0_i32_11 : i32
    %13 = arith.extui %12 : i1 to i32
    %c0_i32_12 = arith.constant 0 : i32
    %14 = arith.cmpi ne, %13, %c0_i32_12 : i32
    scf.if %14 {
      %c0_13 = arith.constant 0 : index
      %c0_14 = arith.constant 0 : index
      %15 = vector.load %arg7[%c0_13, %c0_14] : memref<256x128xf32, #tpu.memory_space<vmem>>, vector<256x128xf32>
      %cst_15 = arith.constant 0.000000e+00 : f32
      %16 = vector.broadcast %cst_15 : f32 to vector<256x128xf32>
      %17 = arith.maximumf %15, %16 : vector<256x128xf32>
      %18 = arith.truncf %17 : vector<256x128xf32> to vector<256x128xbf16>
      %c0_16 = arith.constant 0 : index
      %c0_17 = arith.constant 0 : index
      %19 = vector.load %arg6[%c0_16, %c0_17] : memref<256x128xbf16, #tpu.memory_space<vmem>>, vector<256x128xbf16>
      tpu.vector_store %arg6[%c0_16, %c0_17], %18 {strides = array<i32>} : memref<256x128xbf16, #tpu.memory_space<vmem>>, vector<256x128xbf16>,
    } else {
    }
    return
  }
  func.func @transform_0(%arg0: i32, %arg1: i32) -> (i32, i32) {
    %c0_i32 = arith.constant 0 : i32
    return %arg0, %arg1 : i32, i32
  }
  func.func @transform_1(%arg0: i32, %arg1: i32) -> (i32, i32) {
    %c0_i32 = arith.constant 0 : i32
    %c0_i32_0 = arith.constant 0 : i32
    return %arg1, %c0_i32 : i32, i32
  }
  func.func @transform_2(%arg0: i32, %arg1: i32) -> (i32, i32) {
    %c0_i32 = arith.constant 0 : i32
    %c0_i32_0 = arith.constant 0 : i32
    %c0_i32_1 = arith.constant 0 : i32
    return %c0_i32, %c0_i32_0 : i32, i32
  }
  func.func @transform_3(%arg0: i32, %arg1: i32) -> (i32, i32) {
    %c0_i32 = arith.constant 0 : i32
    %c0_i32_0 = arith.constant 0 : i32
    %c0_i32_1 = arith.constant 0 : i32
    return %c0_i32, %c0_i32_0 : i32, i32
  }
  func.func @transform_4(%arg0: i32, %arg1: i32) -> (i32, i32) {
    %c0_i32 = arith.constant 0 : i32
    %c0_i32_0 = arith.constant 0 : i32
    return %arg0, %c0_i32 : i32, i32
  }
}

module attributes {stable_mosaic.version = 11 : i64} {
  func.func @gcn_layer_kernel(%arg0: i32, %arg1: i32, %arg2: memref<256x512xbf16, #tpu.memory_space<vmem>>, %arg3: memref<512x128xbf16, #tpu.memory_space<vmem>>, %arg4: memref<128x128xbf16, #tpu.memory_space<vmem>>, %arg5: memref<1x128xf32, #tpu.memory_space<vmem>>, %arg6: memref<256x128xf32, #tpu.memory_space<vmem>>, %arg7: memref<256x128xf32, #tpu.memory_space<vmem>>) attributes {dimension_semantics = [#tpu.dimension_semantics<parallel>, #tpu.dimension_semantics<arbitrary>], iteration_bounds = array<i64: 2, 1>, scalar_prefetch = 0 : i64, scratch_operands = 1 : i64, tpu.core_type = #tpu.core_type<tc>, window_params = [{transform_indices = @transform_0, window_bounds = array<i64: 256, 512>}, {transform_indices = @transform_1, window_bounds = array<i64: 512, 128>}, {pipeline_mode = #tpu.pipeline_mode<synchronous>, transform_indices = @transform_2, window_bounds = array<i64: 128, 128>}, {pipeline_mode = #tpu.pipeline_mode<synchronous>, transform_indices = @transform_3, window_bounds = array<i64: 1, 128>}, {transform_indices = @transform_4, window_bounds = array<i64: 256, 128>}]} {
    %c0_i32 = arith.constant 0 : i32
    %0 = arith.cmpi eq, %arg1, %c0_i32 : i32
    %1 = arith.extui %0 : i1 to i32
    %c0_i32_0 = arith.constant 0 : i32
    %2 = arith.cmpi ne, %1, %c0_i32_0 : i32
    scf.if %2 {
      %c0_13 = arith.constant 0 : index
      %c0_14 = arith.constant 0 : index
      %15 = vector.load %arg5[%c0_13, %c0_14] : memref<1x128xf32, #tpu.memory_space<vmem>>, vector<1x128xf32>
      %16 = vector.shape_cast %15 : vector<1x128xf32> to vector<1x128xf32>
      %17 = vector.broadcast %16 : vector<1x128xf32> to vector<256x128xf32>
      %c0_15 = arith.constant 0 : index
      %c0_16 = arith.constant 0 : index
      %18 = vector.load %arg7[%c0_15, %c0_16] : memref<256x128xf32, #tpu.memory_space<vmem>>, vector<256x128xf32>
      tpu.vector_store %arg7[%c0_15, %c0_16], %17 {strides = array<i32>} : memref<256x128xf32, #tpu.memory_space<vmem>>, vector<256x128xf32>,
    } else {
    }
    %c0 = arith.constant 0 : index
    %c0_1 = arith.constant 0 : index
    %3 = vector.load %arg3[%c0, %c0_1] : memref<512x128xbf16, #tpu.memory_space<vmem>>, vector<512x128xbf16>
    %c0_2 = arith.constant 0 : index
    %c0_3 = arith.constant 0 : index
    %4 = vector.load %arg4[%c0_2, %c0_3] : memref<128x128xbf16, #tpu.memory_space<vmem>>, vector<128x128xbf16>
    %cst = arith.constant dense<0.000000e+00> : vector<512x128xf32>
    %5 = tpu.matmul %3, %4, %cst {dimension_numbers = #tpu.dot_dimension_numbers<[1], [0], [0], [1], [0, 0, 1, 1], [], []>} : vector<512x128xbf16>, vector<128x128xbf16>, vector<512x128xf32> -> vector<512x128xf32>
    %6 = arith.truncf %5 : vector<512x128xf32> to vector<512x128xbf16>
    %c0_4 = arith.constant 0 : index
    %c0_5 = arith.constant 0 : index
    %7 = vector.load %arg7[%c0_4, %c0_5] : memref<256x128xf32, #tpu.memory_space<vmem>>, vector<256x128xf32>
    %c0_6 = arith.constant 0 : index
    %c0_7 = arith.constant 0 : index
    %8 = vector.load %arg2[%c0_6, %c0_7] : memref<256x512xbf16, #tpu.memory_space<vmem>>, vector<256x512xbf16>
    %cst_8 = arith.constant dense<0.000000e+00> : vector<256x128xf32>
    %9 = tpu.matmul %8, %6, %cst_8 {dimension_numbers = #tpu.dot_dimension_numbers<[1], [0], [0], [1], [0, 0, 1, 1], [], []>} : vector<256x512xbf16>, vector<512x128xbf16>, vector<256x128xf32> -> vector<256x128xf32>
    %10 = arith.addf %7, %9 : vector<256x128xf32>
    %c0_9 = arith.constant 0 : index
    %c0_10 = arith.constant 0 : index
    %11 = vector.load %arg7[%c0_9, %c0_10] : memref<256x128xf32, #tpu.memory_space<vmem>>, vector<256x128xf32>
    tpu.vector_store %arg7[%c0_9, %c0_10], %10 {strides = array<i32>} : memref<256x128xf32, #tpu.memory_space<vmem>>, vector<256x128xf32>,
    %c0_i32_11 = arith.constant 0 : i32
    %12 = arith.cmpi eq, %arg1, %c0_i32_11 : i32
    %13 = arith.extui %12 : i1 to i32
    %c0_i32_12 = arith.constant 0 : i32
    %14 = arith.cmpi ne, %13, %c0_i32_12 : i32
    scf.if %14 {
      %c0_13 = arith.constant 0 : index
      %c0_14 = arith.constant 0 : index
      %15 = vector.load %arg7[%c0_13, %c0_14] : memref<256x128xf32, #tpu.memory_space<vmem>>, vector<256x128xf32>
      %16 = tpu.iota {dimensions = array<i32: 1>} : vector<256x128xi32>
      %c8_i32 = arith.constant 8 : i32
      %17 = vector.broadcast %c8_i32 : i32 to vector<256x128xi32>
      %18 = arith.cmpi slt, %16, %17 : vector<256x128xi32>
      %cst_15 = arith.constant 0xFF800000 : f32
      %19 = vector.broadcast %cst_15 : f32 to vector<256x128xf32>
      %20 = arith.select %18, %15, %19 : vector<256x128xi1>, vector<256x128xf32>
      %cst_16 = arith.constant dense<0xFF800000> : vector<256xf32>
      %21 = vector.multi_reduction <maximumf>, %20, %cst_16 [1] : vector<256x128xf32> to vector<256xf32>
      %22 = vector.shape_cast %21 : vector<256xf32> to vector<256x1xf32>
      %23 = vector.broadcast %22 : vector<256x1xf32> to vector<256x128xf32>
      %24 = arith.subf %20, %23 : vector<256x128xf32>
      %25 = math.exp %24 : vector<256x128xf32>
      %cst_17 = arith.constant 0.000000e+00 : f32
      %26 = vector.broadcast %cst_17 : f32 to vector<256x128xf32>
      %27 = arith.select %18, %25, %26 : vector<256x128xi1>, vector<256x128xf32>
      %cst_18 = arith.constant dense<0.000000e+00> : vector<256xf32>
      %28 = vector.multi_reduction <add>, %27, %cst_18 [1] : vector<256x128xf32> to vector<256xf32>
      %29 = vector.shape_cast %28 : vector<256xf32> to vector<256x1xf32>
      %30 = math.log %29 : vector<256x1xf32>
      %31 = vector.broadcast %30 : vector<256x1xf32> to vector<256x128xf32>
      %32 = arith.subf %24, %31 : vector<256x128xf32>
      %cst_19 = arith.constant 0.000000e+00 : f32
      %33 = vector.broadcast %cst_19 : f32 to vector<256x128xf32>
      %34 = arith.select %18, %32, %33 : vector<256x128xi1>, vector<256x128xf32>
      %c0_20 = arith.constant 0 : index
      %c0_21 = arith.constant 0 : index
      %35 = vector.load %arg6[%c0_20, %c0_21] : memref<256x128xf32, #tpu.memory_space<vmem>>, vector<256x128xf32>
      tpu.vector_store %arg6[%c0_20, %c0_21], %34 {strides = array<i32>} : memref<256x128xf32, #tpu.memory_space<vmem>>, vector<256x128xf32>,
    } else {
    }
    return
  }
  func.func @transform_0(%arg0: i32, %arg1: i32) -> (i32, i32) {
    %c0_i32 = arith.constant 0 : i32
    return %arg0, %arg1 : i32, i32
  }
  func.func @transform_1(%arg0: i32, %arg1: i32) -> (i32, i32) {
    %c0_i32 = arith.constant 0 : i32
    %c0_i32_0 = arith.constant 0 : i32
    return %arg1, %c0_i32 : i32, i32
  }
  func.func @transform_2(%arg0: i32, %arg1: i32) -> (i32, i32) {
    %c0_i32 = arith.constant 0 : i32
    %c0_i32_0 = arith.constant 0 : i32
    %c0_i32_1 = arith.constant 0 : i32
    return %c0_i32, %c0_i32_0 : i32, i32
  }
  func.func @transform_3(%arg0: i32, %arg1: i32) -> (i32, i32) {
    %c0_i32 = arith.constant 0 : i32
    %c0_i32_0 = arith.constant 0 : i32
    %c0_i32_1 = arith.constant 0 : i32
    return %c0_i32, %c0_i32_0 : i32, i32
  }
  func.func @transform_4(%arg0: i32, %arg1: i32) -> (i32, i32) {
    %c0_i32 = arith.constant 0 : i32
    %c0_i32_0 = arith.constant 0 : i32
    return %arg0, %c0_i32 : i32, i32
  }
}

</mosaic_0001>

<bundles_post_ra>
// kernel: gcn_apply.2
= control target key start
LH: loop header
LB: loop body
LE: loop exit
PB: predicated region body
PF: predicated region fallthrough
CT: control target
= control target key end

     0   :  { %9 = vsyncpa [#allocation4], 0  ;;  %s3493_s0 = inlined_call_operand.hbm [shape: bf16[512,512], index: 0, kind: input, shape index: {}]   ;;  %s3494_s1 = inlined_call_operand.vmem [shape: bf16[512,16], index: 1, kind: input, shape index: {}]   ;;  %s3495_s2 = inlined_call_operand.hbm [shape: bf16[16,128], index: 2, kind: input, shape index: {}]   ;;  %s3496_s3 = inlined_call_operand.hbm [shape: f32[1,128], index: 3, kind: input, shape index: {}]   ;;  %s3497_s4 = inlined_call_operand.vmem [shape: bf16[512,128], index: 4, kind: output, shape index: {}]  }
   0x1   :  { %11 = vsyncpa [#allocation4 + $0x1], 0 }
   0x2   :  { %12 = vsyncpa [#allocation6], 0  ;;  %s2844_s15 = smov 0   ;;  %s2846_s16 = smov 0  }
   0x3   :  { %s2848_s17 = smov 0   ;;  %s2850_s18 = smov 0  }
   0x4   :  { %s2852_s19 = smov 0   ;;  %s2854_s20 = smov 0  }
   0x5 LB: > { %s1944_s21 = sadd.s32 4294967295, %s2811_s20   ;;  %p52_p0 = scmp.ne.s32.totalorder %s2795_s16, %s2791_s15  ;;  %s2811_s20 = sphi %s2854_s20, %s18_s20   ;;  %s2807_s19 = sphi %s2852_s19, %s3506_s19   ;;  %s2803_s18 = sphi %s2850_s18, %s3505_s18   ;;  %s2799_s17 = sphi %s2848_s17, %s3504_s17   ;;  %s2795_s16 = sphi %s2846_s16, %s3503_s16   ;;  %s2791_s15 = sphi %s2844_s15, %s3502_s15  }
   0x6   : > { %p2874_p1 = scmp.eq.s32.totalorder %s1944_s21, 0  ;;  %p1946_p2 = scmp.ge.s32.totalorder %s2811_s20, 1 }
   0x7   : > { %p157_p3 = scmp.lt.s32.totalorder %s2811_s20, 3  ;;  %s177_s26 = sshll.u32 %s3495_s2, 4  ;;  %s178_s26 = int_to_ptr.hbm [resolvable:$true] %s177_s26 }
   0x8   : > { %p2882_p4 = por %p2874_p1, %p52_p0  ;;  %s2813_s28 = smov [#allocation5]  }
   0x9   : > { %p2889_p5 = pnand %p1946_p2, %p157_p3  ;;  %s179_s29 = sshll.u32 %s2813_s28, 4  ;;  %s180_s29 = int_to_ptr.vmem [resolvable:$true] %s179_s29 }
   0xa   : > { %s192_s6 = sshll.u32 %s3496_s3, 4  ;;  %s2814_s7 = smov 64   ;;  %s193_s6 = int_to_ptr.hbm [resolvable:$true] %s192_s6 }
   0xb   : > { %p2596_p6 = pneg %p2889_p5  ;;  %s2815_s8 = smov 4  }
   0xc   : > { %s2816_s9 = smov [#allocation7]   ;;  %s30_s11 = sadd.s32 1, %s2807_s19 }
   0xd   : > { %p2597_p7 = pnand %p2596_p6, %p2874_p1  ;;  %s194_s10 = sshll.u32 %s2816_s9, 4  ;;  %s195_s10 = int_to_ptr.vmem [resolvable:$true] %s194_s10 }
   0xe   : > { %s39_s12 = sadd.s32 1, %s2799_s17  ;;  %p32_p8 = scmp.ge.s32.totalorder %s30_s11, 2 }
   0xf   : > { %2599 = dma.hbm_to_vmem [thread:$0]  (!%p2597_p7), %s178_s26, 128, %s180_s29, [#allocation6], %s2814_s7, %s2814_s7, %s2815_s8  }
  0x10   : > { %2602 = dma.hbm_to_vmem [thread:$0]  (!%p2597_p7), %s193_s6, 16, %s195_s10, [#allocation6]  }
  0x11   : > { %p46_p9 = scmp.ne.s32.totalorder %s2799_s17, %s2795_s16  ;;  %p47_p10 = scmp.eq.s32.totalorder %s2811_s20, 0 }
  0x12   : > { %p2609_p11 = scmp.lt.s32.totalorder %s2811_s20, 2  ;;  %s3508_s11 = smov (%p32_p8, %s30_s11), 0 }
  0x13   : > { %p2908_p12 = por %p47_p10, %p46_p9  ;;  %s205_s14 = sand.u32 1, %s2799_s17  }
  0x14   : > { %s34_s15 = ssub.s32 %s2807_s19, %s3508_s11  ;;  %s1951_s21 = sshll.u32 %s205_s14, 9 }
  0x15   : > { %p37_p13 = scmp.eq.s32.totalorder %s34_s15, 0  ;;  %s2384_s24 = sshll.u32 %s2807_s19, 9 }
  0x16   : > { %s217_s29 = scalar_lea.hbm %s3493_s0, %s2384_s24  ;;  %s209_s30 = scalar_lea.vmem [#allocation3], %s1951_s21 }
  0x17   : > { %s2917_s25 = scalar_select %p37_p13, %s2799_s17, %s39_s12  }
  0x18   : > { %s220_s5 = sshll.u32 %s209_s30, 4  ;;  %s218_s6 = sshll.u32 %s217_s29, 4  ;;  %s221_s5 = int_to_ptr.vmem [resolvable:$true] %s220_s5  ;;  %s219_s6 = int_to_ptr.hbm [resolvable:$true] %s218_s6 }
  0x19   : > { %p2604_p0 = pnand %p2609_p11, %p2908_p12  ;;  %s206_s7 = scalar_lea.sflag [#allocation4], %s205_s14 }
  0x1a   : > { %s2817_s8 = smov 256   ;;  %s2818_s9 = smov 16  }
  0x1b   : > { %2606 = dma.hbm_to_vmem [thread:$0]  (!%p2604_p0), %s219_s6, 8192, %s221_s5, %s206_s7, %s2817_s8, %s2817_s8, %s2818_s9  }
  0x1c   : > { %232 = sbr.rel (%p2889_p5) target bundleno = 966 (0x3c6), region = 36  ;;  %s234_s10 = sand.u32 (!%p2889_p5), 1, %s2795_s16  }
  0x1d   : > { %s1956_s12 = sshll.u32 (!%p2889_p5), %s234_s10, 9  ;;  %s235_s15 = scalar_lea.sflag (!%p2889_p5), [#allocation4], %s234_s10 }
  0x1e   : > { %s2929_s21 = scalar_lea.vmem (!%p2889_p5), [#allocation3], %s1956_s12 }
  0x21   : > { %2782 = dma.done.wait (%p2882_p4), %s235_s15, 8192  }
  0x22   : > { %2784 = vsyncadd (%p2882_p4), %s235_s15, 4294959104 }
  0x23   : > { %2786 = dma.done.wait (%p2874_p1), [#allocation6], 144  }
  0x24   : > { %2788 = vsyncadd (%p2874_p1), [#allocation6], 4294967152  ;;  %v2417_v0 = vld [vmem:[#allocation5] sm:$0xff]  ;;  %vm566_vm0 = vcmask 130048   ;;  %v2386_v2 = vld [vmem:[%s3494_s1 + $0x8] sm:$0xff]  ;;  %s1959_s5 = sshll.u32 %s2803_s18, 5 }
  0x25   : > { %v2385_v1 = vld [vmem:[%s3494_s1] sm:$0xff]  ;;  %670 = vmatpush.bf16.msra.mxu0 %v2417_v0  ;;  %2577 = vmatpush.bf16.msra.mxu3 %v2417_v0  ;;  %v2387_v3 = vld [vmem:[%s3494_s1 + $0x10] sm:$0xff]  ;;  %v2388_v4 = vld [vmem:[%s3494_s1 + $0x18] sm:$0xff]  ;;  %p288_p1 = scmp.lt.s32.totalorder %s1959_s5, 63 }
  0x26   : > { %v2389_v5 = vld [vmem:[%s3494_s1 + $0x20] sm:$0xff]  ;;  %v2390_v6 = vld [vmem:[%s3494_s1 + $0x28] sm:$0xff]  ;;  %v2391_v7 = vld [vmem:[%s3494_s1 + $0x30] sm:$0xff] }
  0x27   : > { %v2410_v8 = vld [vmem:[%s3494_s1 + $0xc8] sm:$0xff]  ;;  %v2392_v9 = vld [vmem:[%s3494_s1 + $0x38] sm:$0xff]  ;;  %v2411_v10 = vld [vmem:[%s3494_s1 + $0xd0] sm:$0xff]  ;;  %s3510_s5 = smov (!%p288_p1, %s1959_s5), 63 }
  0x28   : > { %2093 = vmatmul.msk.bf16.vlgmr.msra.gmra.mxu0 %vm566_vm0, %v2385_v1  ;;  %2118 = vmatmul.msk.bf16.vlgmr.msra.gmra.mxu3 %vm566_vm0, %v2410_v8  ;;  %v2393_v11 = vld [vmem:[%s3494_s1 + $0x40] sm:$0xff]  ;;  %v2412_v13 = vld [vmem:[%s3494_s1 + $0xd8] sm:$0xff]  ;;  %v2394_v16 = vld [vmem:[%s3494_s1 + $0x48] sm:$0xff]  ;;  %s1960_s18 = sshll.u32 %s3510_s5, 2 }
  0x29   : > { %v2413_v18 = vld [vmem:[%s3494_s1 + $0xe0] sm:$0xff]  ;;  %v2395_v21 = vld [vmem:[%s3494_s1 + $0x50] sm:$0xff]  ;;  %v2414_v23 = vld [vmem:[%s3494_s1 + $0xe8] sm:$0xff]  ;;  %s3359_s8 = scalar_lea.vmem %s3497_s4, %s1960_s18 }
  0x2a   : > { %v2396_v26 = vld [vmem:[%s3494_s1 + $0x58] sm:$0xff]  ;;  %v2415_v28 = vld [vmem:[%s3494_s1 + $0xf0] sm:$0xff]  ;;  %v2397_v31 = vld [vmem:[%s3494_s1 + $0x60] sm:$0xff] }
  0x2b   : > { %v2416_v33 = vld [vmem:[%s3494_s1 + $0xf8] sm:$0xff]  ;;  %v2398_v35 = vld [vmem:[%s3494_s1 + $0x68] sm:$0xff]  ;;  %v2399_v38 = vld [vmem:[%s3494_s1 + $0x70] sm:$0xff] }
  0x2c   : > { %v2400_v42 = vld [vmem:[%s3494_s1 + $0x78] sm:$0xff]  ;;  %v2401_v49 = vld [vmem:[%s3494_s1 + $0x80] sm:$0xff]  ;;  %v2402_v57 = vld [vmem:[%s3494_s1 + $0x88] sm:$0xff] }
  0x2d   : > { %v2255_v60 = vld [vmem:[%s2929_s21 + $0x100] sm:$0xf]  ;;  %v2452_v61 = vld [vmem:[%s2929_s21 + $0x10c] sm:$0xf0] }
  0x2e   : > { %v2256_v62 = vor.u32 %v2452_v61, %v2255_v60 }
  0x38   : > { %2094 = vmatmul.msk.bf16.gmra.mxu0 %vm566_vm0, %v2386_v2  ;;  %2119 = vmatmul.msk.bf16.gmra.mxu3 %vm566_vm0, %v2411_v10  ;;  %v2403_v2 = vld [vmem:[%s3494_s1 + $0x90] sm:$0xff] }
  0x48   : > { %2095 = vmatmul.msk.bf16.gmra.mxu0 %vm566_vm0, %v2387_v3  ;;  %2120 = vmatmul.msk.bf16.gmra.mxu3 %vm566_vm0, %v2412_v13 }
  0x58   : > { %2096 = vmatmul.msk.bf16.gmra.mxu0 %vm566_vm0, %v2388_v4  ;;  %2121 = vmatmul.msk.bf16.gmra.mxu3 %vm566_vm0, %v2413_v18 }
  0x68   : > { %2097 = vmatmul.msk.bf16.gmra.mxu0 %vm566_vm0, %v2389_v5  ;;  %2122 = vmatmul.msk.bf16.gmra.mxu3 %vm566_vm0, %v2414_v23  ;;  %v2271_v5 = vld [vmem:[%s2929_s21 + $0x120] sm:$0xf] }
  0x69   : > { %v2303_v23 = vld [vmem:[%s2929_s21 + $0x160] sm:$0xf] }
  0x78   : > { %2098 = vmatmul.msk.bf16.gmra.mxu0 %vm566_vm0, %v2390_v6  ;;  %2123 = vmatmul.msk.bf16.gmra.mxu3 %vm566_vm0, %v2415_v28  ;;  %v2456_v6 = vld [vmem:[%s2929_s21 + $0x12c] sm:$0xf0]  ;;  %v2406_v28 = vld [vmem:[%s3494_s1 + $0xa8] sm:$0xff] }
  0x88   : > { %2099 = vmatmul.msk.bf16.gmra.mxu0 %vm566_vm0, %v2391_v7  ;;  %2124 = vmatmul.msk.bf16.gmra.mxu3 %vm566_vm0, %v2416_v33  ;;  %v2272_v7 = vor.u32 %v2456_v6, %v2271_v5  ;;  %v2468_v33 = vld [vmem:[%s2929_s21 + $0x18c] sm:$0xf0]  ;;  %v2367_v5 = vld [vmem:[%s2929_s21 + $0x1e0] sm:$0xf] }
  0x89   : > { %v2480_v6 = vld [vmem:[%s2929_s21 + $0x1ec] sm:$0xf0] }
  0x98   : > { %2100 = vmatmul.msk.bf16.gmra.mxu0 %vm566_vm0, %v2392_v9 }
  0xa5   : > { %v672_v12 = vpop.f32.mrf.mxu0 }
  0xa8   : > { %2101 = vmatmul.msk.bf16.gmra.mxu0 %vm566_vm0, %v2393_v11  ;;  %v2404_v11 = vld [vmem:[%s3494_s1 + $0x98] sm:$0xff] }
  0xab   : > { %v3031_v41 = vpop.f32.mrf.mxu3 }
  0xad   : > { %v674_v14 = vpop.f32.mrf.mxu0 }
  0xae   : > { %v2987_v15 = vpack.c.bf16 %v674_v14, %v672_v12  ;;  %v2287_v14 = vld [vmem:[%s2929_s21 + $0x140] sm:$0xf] }
  0xb3   : > { %v3036_v44 = vpop.f32.mrf.mxu3 }
  0xb5   : > { %v677_v17 = vpop.f32.mrf.mxu0 }
  0xb8   : > { %2102 = vmatmul.msk.bf16.gmra.mxu0 %vm566_vm0, %v2394_v16 }
  0xbb   : > { %v3039_v46 = vpop.f32.mrf.mxu3 }
  0xbd   : > { %v679_v19 = vpop.f32.mrf.mxu0 }
  0xbe   : > { %v2997_v20 = vpack.c.bf16 %v679_v19, %v677_v17 }
  0xc3   : > { %v3046_v51 = vpop.f32.mrf.mxu3 }
  0xc5   : > { %v682_v22 = vpop.f32.mrf.mxu0 }
  0xc8   : > { %2103 = vmatmul.msk.bf16.gmra.mxu0 %vm566_vm0, %v2395_v21 }
  0xcb   : > { %v3051_v55 = vpop.f32.mrf.mxu3 }
  0xcd   : > { %v684_v24 = vpop.f32.mrf.mxu0 }
  0xce   : > { %v834_v25 = vpack.c.bf16 %v684_v24, %v682_v22  ;;  %v2464_v24 = vld [vmem:[%s2929_s21 + $0x16c] sm:$0xf0] }
  0xd3   : > { %v3060_v59 = vpop.f32.mrf.mxu3 }
  0xd5   : > { %v687_v27 = vpop.f32.mrf.mxu0 }
  0xd8   : > { %2104 = vmatmul.msk.bf16.gmra.mxu0 %vm566_vm0, %v2396_v26 }
  0xdb   : > { %v812_v0 = vpop.f32.mrf.mxu3 }
  0xdd   : > { %v689_v29 = vpop.f32.mrf.mxu0 }
  0xde   : > { %v835_v30 = vpack.c.bf16 %v689_v29, %v687_v27 }
  0xe3   : > { %v814_v4 = vpop.f32.mrf.mxu3 }
  0xe5   : > { %v692_v32 = vpop.f32.mrf.mxu0 }
  0xe8   : > { %2105 = vmatmul.msk.bf16.gmra.mxu0 %vm566_vm0, %v2397_v31 }
  0xeb   : > { %v817_v9 = vpop.f32.mrf.mxu3 }
  0xed   : > { %v694_v34 = vpop.f32.mrf.mxu0 }
  0xee   : > { %v836_v53 = vpack.c.bf16 %v694_v34, %v692_v32  ;;  %v2319_v32 = vld [vmem:[%s2929_s21 + $0x180] sm:$0xf] }
  0xf3   : > { %v819_v13 = vpop.f32.mrf.mxu3 }
  0xf5   : > { %v697_v36 = vpop.f32.mrf.mxu0 }
  0xf8   : > { %2106 = vmatmul.msk.bf16.gmra.mxu0 %vm566_vm0, %v2398_v35  ;;  %v2320_v35 = vor.u32 %v2468_v33, %v2319_v32 }
  0xfb   : > { %v822_v18 = vpop.f32.mrf.mxu3 }
  0xfd   : > { %v699_v37 = vpop.f32.mrf.mxu0 }
  0xfe   : > { %v837_v52 = vpack.c.bf16 %v699_v37, %v697_v36  ;;  %v861_v37 = vpack.c.bf16 %v819_v13, %v817_v9  ;;  %v2368_v9 = vor.u32 %v2480_v6, %v2367_v5  ;;  %v2143_v13 = vld [vmem:[%s2929_s21 + $0x20] sm:$0xf]  ;;  %v2209_v5 = vld [vmem:[%s2929_s21 + $0xb0] sm:$0xf0] }
 0x103   : > { %v824_v22 = vpop.f32.mrf.mxu3 }
 0x104   : > { %v862_v34 = vpack.c.bf16 %v824_v22, %v822_v18 }
 0x105   : > { %v702_v39 = vpop.f32.mrf.mxu0 }
 0x108   : > { %2107 = vmatmul.msk.bf16.gmra.mxu0 %vm566_vm0, %v2399_v38  ;;  %v2407_v38 = vld [vmem:[%s3494_s1 + $0xb0] sm:$0xff] }
 0x10b   : > { %v827_v27 = vpop.f32.mrf.mxu3 }
 0x10d   : > { %v704_v40 = vpop.f32.mrf.mxu0 }
 0x10e   : > { %v838_v48 = vpack.c.bf16 %v704_v40, %v702_v39  ;;  %v860_v40 = vpack.c.bf16 %v814_v4, %v812_v0 }
 0x115   : > { %v707_v43 = vpop.f32.mrf.mxu0 }
 0x118   : > { %2108 = vmatmul.msk.bf16.gmra.mxu0 %vm566_vm0, %v2400_v42  ;;  %v2335_v42 = vld [vmem:[%s2929_s21 + $0x1a0] sm:$0xf] }
 0x11d   : > { %v709_v45 = vpop.f32.mrf.mxu0 }
 0x11e   : > { %v839_v47 = vpack.c.bf16 %v709_v45, %v707_v43  ;;  %v2472_v43 = vld [vmem:[%s2929_s21 + $0x1ac] sm:$0xf0]  ;;  %v859_v45 = vpack.c.bf16 %v3060_v59, %v3051_v55  ;;  %v2351_v55 = vld [vmem:[%s2929_s21 + $0x1c0] sm:$0xf] }
 0x11f   : > { %v2476_v59 = vld [vmem:[%s2929_s21 + $0x1cc] sm:$0xf0] }
 0x120   : > { %1280 = vmatpush.bf16.msra.mxu1 %v839_v47  ;;  %2578 = vmatpush.bf16.msra.mxu2 %v839_v47  ;;  %v2336_v47 = vor.u32 %v2472_v43, %v2335_v42  ;;  %v2352_v60 = vor.u32 %v2476_v59, %v2351_v55  ;;  %v2177_v42 = vld [vmem:[%s2929_s21 + $0x70] sm:$0xf0]  ;;  %v2434_v55 = vld [vmem:[%s2929_s21 + $0x84] sm:$0xf] }
 0x121   : > { %v2193_v59 = vld [vmem:[%s2929_s21 + $0x90] sm:$0xf0] }
 0x124   : > { %1281 = vmatpush.bf16.msra.mxu1 %v838_v48  ;;  %2579 = vmatpush.bf16.msra.mxu2 %v838_v48 }
 0x125   : > { %v3044_v50 = vpop.f32.mrf.mxu0 }
 0x128   : > { %2109 = vmatmul.msk.bf16.gmra.mxu0 %vm566_vm0, %v2401_v49  ;;  %1282 = vmatpush.bf16.msra.mxu1 %v837_v52  ;;  %v858_v49 = vpack.c.bf16 %v3046_v51, %v3039_v46  ;;  %v2127_v46 = vld [vmem:[%s2929_s21] sm:$0xf] }
 0x129   : > { %2580 = vmatpush.bf16.msra.mxu2 %v837_v52  ;;  %v857_v52 = vpack.c.bf16 %v3036_v44, %v3031_v41  ;;  %v2409_v44 = vld [vmem:[%s3494_s1 + $0xc0] sm:$0xff] }
 0x12c   : > { %1283 = vmatpush.bf16.msra.mxu1 %v836_v53 }
 0x12d   : > { %2581 = vmatpush.bf16.msra.mxu2 %v836_v53  ;;  %v3049_v54 = vpop.f32.mrf.mxu0  ;;  %v2408_v53 = vld [vmem:[%s3494_s1 + $0xb8] sm:$0xff] }
 0x12e   : > { %v840_v56 = vpack.c.bf16 %v3049_v54, %v3044_v50  ;;  %v2422_v50 = vld [vmem:[%s2929_s21 + $0x24] sm:$0xf]  ;;  %v2145_v54 = vld [vmem:[%s2929_s21 + $0x30] sm:$0xf0] }
 0x130   : > { %1284 = vmatpush.bf16.msra.mxu1 %v835_v30 }
 0x131   : > { %2582 = vmatpush.bf16.msra.mxu2 %v835_v30  ;;  %v829_v30 = vpop.f32.mrf.mxu3 }
 0x132   : > { %v863_v31 = vpack.c.bf16 %v829_v30, %v827_v27  ;;  %v2161_v30 = vld [vmem:[%s2929_s21 + $0x50] sm:$0xf0] }
 0x134   : > { %1285 = vmatpush.bf16.msra.mxu1 %v834_v25 }
 0x135   : > { %2583 = vmatpush.bf16.msra.mxu2 %v834_v25  ;;  %v3058_v58 = vpop.f32.mrf.mxu0  ;;  %v2304_v25 = vor.u32 %v2464_v24, %v2303_v23  ;;  %v2175_v23 = vld [vmem:[%s2929_s21 + $0x60] sm:$0xf] }
 0x138   : > { %2110 = vmatmul.msk.bf16.gmra.mxu0 %vm566_vm0, %v2402_v57  ;;  %1286 = vmatpush.bf16.msra.mxu1 %v2997_v20 }
 0x139   : > { %2584 = vmatpush.bf16.msra.mxu2 %v2997_v20  ;;  %v2405_v20 = vld [vmem:[%s3494_s1 + $0xa0] sm:$0xff] }
 0x13c   : > { %1287 = vmatpush.bf16.msra.mxu1 %v2987_v15 }
 0x13d   : > { %2585 = vmatpush.bf16.msra.mxu2 %v2987_v15  ;;  %v3069_v63 = vpop.f32.mrf.mxu0  ;;  %v2460_v15 = vld [vmem:[%s2929_s21 + $0x14c] sm:$0xf0] }
 0x13e   : > { %v841_v1 = vpack.c.bf16 %v3069_v63, %v3058_v58  ;;  %v2288_v16 = vor.u32 %v2460_v15, %v2287_v14  ;;  %v2424_v15 = vld [vmem:[%s2929_s21 + $0x2c] sm:$0xf0] }
 0x140   : > { %1328 = vmatmul.bf16.vlgmr.msra.gmra.mxu2 %v2256_v62  ;;  %1547 = vmatpush.bf16.msrb.mxu1 %v863_v31  ;;  %v2420_v62 = vld [vmem:[%s2929_s21 + $0xc] sm:$0xf0] }
 0x141   : > { %v2128_v0 = vor.u32 %v2420_v62, %v2127_v46  ;;  %v2444_v62 = vld [vmem:[%s2929_s21 + $0xcc] sm:$0xf0] }
 0x143   : > { %1288 = vmatmul.bf16.vlgmr.msra.gmra.mxu1 %v2128_v0 }
 0x144   : > { %1548 = vmatpush.bf16.msrb.mxu1 %v862_v34  ;;  %v2191_v34 = vld [vmem:[%s2929_s21 + $0x80] sm:$0xf] }
 0x145   : > { %v3076_v3 = vpop.f32.mrf.mxu0 }
 0x148   : > { %2111 = vmatmul.msk.bf16.gmra.mxu0 %vm566_vm0, %v2403_v2  ;;  %1549 = vmatpush.bf16.msrb.mxu1 %v861_v37 }
 0x14c   : > { %1550 = vmatpush.bf16.msrb.mxu1 %v860_v40  ;;  %v2430_v40 = vld [vmem:[%s2929_s21 + $0x64] sm:$0xf] }
 0x14d   : > { %v3081_v8 = vpop.f32.mrf.mxu0 }
 0x14e   : > { %v842_v10 = vpack.c.bf16 %v3081_v8, %v3076_v3  ;;  %v2159_v3 = vld [vmem:[%s2929_s21 + $0x40] sm:$0xf] }
 0x150   : > { %1333 = vmatmul.bf16.gmra.mxu2 %v2272_v7  ;;  %1551 = vmatpush.bf16.msrb.mxu1 %v859_v45  ;;  %v2180_v45 = vor.u32 %v2430_v40, %v2177_v42 }
 0x154   : > { %1552 = vmatpush.bf16.msrb.mxu1 %v858_v49  ;;  %v2440_v49 = vld [vmem:[%s2929_s21 + $0xac] sm:$0xf0] }
 0x155   : > { %v3088_v12 = vpop.f32.mrf.mxu0 }
 0x158   : > { %2112 = vmatmul.msk.bf16.gmra.mxu0 %vm566_vm0, %v2404_v11  ;;  %1553 = vmatpush.bf16.msrb.mxu1 %v857_v52 }
 0x15d   : > { %v3093_v17 = vpop.f32.mrf.mxu0 }
 0x15e   : > { %v843_v19 = vpack.c.bf16 %v3093_v17, %v3088_v12 }
 0x160   : > { %1338 = vmatmul.bf16.gmra.mxu2 %v2288_v16  ;;  %v2144_v16 = vor.u32 %v2424_v15, %v2143_v13  ;;  %v2239_v13 = vld [vmem:[%s2929_s21 + $0xe0] sm:$0xf]  ;;  %v2448_v15 = vld [vmem:[%s2929_s21 + $0xec] sm:$0xf0] }
 0x162   : > { %1293 = vmatmul.bf16.gmra.mxu1 %v2144_v16  ;;  %v2240_v16 = vor.u32 %v2448_v15, %v2239_v13 }
 0x165   : > { %v3100_v21 = vpop.f32.mrf.mxu0 }
 0x168   : > { %2113 = vmatmul.msk.bf16.gmra.mxu0 %vm566_vm0, %v2405_v20  ;;  %v2418_v20 = vld [vmem:[%s2929_s21 + $0x4] sm:$0xf] }
 0x16d   : > { %v734_v26 = vpop.f32.mrf.mxu0 }
 0x16e   : > { %v844_v7 = vpack.c.bf16 %v734_v26, %v3100_v21  ;;  %v2129_v21 = vld [vmem:[%s2929_s21 + $0x10] sm:$0xf0] }
 0x16f   : > { %v2132_v22 = vor.u32 %v2418_v20, %v2129_v21 }
 0x170   : > { %1343 = vmatmul.bf16.gmra.mxu2 %v2304_v25  ;;  %v2432_v25 = vld [vmem:[%s2929_s21 + $0x6c] sm:$0xf0] }
 0x171   : > { %v2176_v26 = vor.u32 %v2432_v25, %v2175_v23 }
 0x175   : > { %v737_v29 = vpop.f32.mrf.mxu0 }
 0x178   : > { %2114 = vmatmul.msk.bf16.gmra.mxu0 %vm566_vm0, %v2406_v28 }
 0x17d   : > { %v739_v36 = vpop.f32.mrf.mxu0 }
 0x17e   : > { %v845_v4 = vpack.c.bf16 %v739_v36, %v737_v29  ;;  %v2426_v29 = vld [vmem:[%s2929_s21 + $0x44] sm:$0xf]  ;;  %v2436_v36 = vld [vmem:[%s2929_s21 + $0x8c] sm:$0xf0] }
 0x17f   : > { %v2164_v32 = vor.u32 %v2426_v29, %v2161_v30  ;;  %v2192_v37 = vor.u32 %v2436_v36, %v2191_v34  ;;  %v2241_v34 = vld [vmem:[%s2929_s21 + $0xf0] sm:$0xf0] }
 0x180   : > { %1348 = vmatmul.bf16.gmra.mxu2 %v2320_v35 }
 0x185   : > { %v742_v39 = vpop.f32.mrf.mxu0 }
 0x188   : > { %2115 = vmatmul.msk.bf16.gmra.mxu0 %vm566_vm0, %v2407_v38 }
 0x18d   : > { %v744_v48 = vpop.f32.mrf.mxu0 }
 0x18e   : > { %v846_v41 = vpack.c.bf16 %v744_v48, %v742_v39  ;;  %v2207_v48 = vld [vmem:[%s2929_s21 + $0xa0] sm:$0xf] }
 0x18f   : > { %v2208_v52 = vor.u32 %v2440_v49, %v2207_v48  ;;  %v2137_v48 = vld [vmem:[%s2929_s21 + $0x18] sm:$0xf0] }
 0x190   : > { %1353 = vmatmul.bf16.gmra.mxu2 %v2336_v47 }
 0x195   : > { %v747_v57 = vpop.f32.mrf.mxu0 }
 0x198   : > { %2116 = vmatmul.msk.bf16.gmra.mxu0 %vm566_vm0, %v2408_v53 }
 0x19d   : > { %v749_v61 = vpop.f32.mrf.mxu0 }
 0x19e   : > { %v847_v51 = vpack.c.bf16 %v749_v61, %v747_v57  ;;  %v2196_v61 = vor.u32 %v2434_v55, %v2193_v59  ;;  %v2135_v55 = vld [vmem:[%s2929_s21 + $0x8] sm:$0xf] }
 0x1a0   : > { %1358 = vmatmul.bf16.gmra.mxu2 %v2352_v60 }
 0x1a1   : > { %1369 = vmatpush.bf16.msrb.mxu2 %v847_v51  ;;  %v2223_v51 = vld [vmem:[%s2929_s21 + $0xc0] sm:$0xf] }
 0x1a2   : > { %v2224_v0 = vor.u32 %v2444_v62, %v2223_v51  ;;  %v2151_v62 = vld [vmem:[%s2929_s21 + $0x28] sm:$0xf] }
 0x1a5   : > { %1370 = vmatpush.bf16.msrb.mxu2 %v846_v41  ;;  %v3134_v2 = vpop.f32.mrf.mxu0 }
 0x1a8   : > { %2117 = vmatmul.msk.bf16.gmra.mxu0 %vm566_vm0, %v2409_v44 }
 0x1a9   : > { %1371 = vmatpush.bf16.msrb.mxu2 %v845_v4  ;;  %v2438_v4 = vld [vmem:[%s2929_s21 + $0xa4] sm:$0xf] }
 0x1ad   : > { %1372 = vmatpush.bf16.msrb.mxu2 %v844_v7  ;;  %v3140_v11 = vpop.f32.mrf.mxu0  ;;  %v2212_v7 = vor.u32 %v2438_v4, %v2209_v5  ;;  %v2427_v5 = vld [vmem:[%s2929_s21 + $0x4c] sm:$0xf] }
 0x1ae   : > { %v848_v14 = vpack.c.bf16 %v3140_v11, %v3134_v2  ;;  %v2454_v2 = vld [vmem:[%s2929_s21 + $0x124] sm:$0xf]  ;;  %v2273_v11 = vld [vmem:[%s2929_s21 + $0x130] sm:$0xf0] }
 0x1af   : > { %v2276_v4 = vor.u32 %v2454_v2, %v2273_v11  ;;  %v2439_v11 = vld [vmem:[%s2929_s21 + $0xac] sm:$0xf] }
 0x1b0   : > { %1363 = vmatmul.bf16.gmra.mxu2 %v2368_v9 }
 0x1b1   : > { %1373 = vmatpush.bf16.msrb.mxu2 %v843_v19 }
 0x1b5   : > { %1374 = vmatpush.bf16.msrb.mxu2 %v842_v10  ;;  %v3152_v18 = vpop.f32.mrf.mxu0  ;;  %v2428_v10 = vld [vmem:[%s2929_s21 + $0x4c] sm:$0xf0] }
 0x1b6   : > { %v2160_v17 = vor.u32 %v2428_v10, %v2159_v3  ;;  %v2225_v3 = vld [vmem:[%s2929_s21 + $0xd0] sm:$0xf0] }
 0x1b8   : > { %1298 = vmatmul.bf16.gmra.mxu1 %v2160_v17 }
 0x1b9   : > { %1375 = vmatpush.bf16.msrb.mxu2 %v841_v1  ;;  %v2148_v1 = vor.u32 %v2422_v50, %v2145_v54 }
 0x1bd   : > { %1376 = vmatpush.bf16.msrb.mxu2 %v840_v56  ;;  %v3162_v12 = vpop.f32.mrf.mxu0 }
 0x1be   : > { %v849_v8 = vpack.c.bf16 %v3162_v12, %v3152_v18 }
 0x1c0   : > { %1377 = vmatmul.bf16.vlgmr.msrb.gmra.mxu2 %v2132_v22  ;;  %v2442_v22 = vld [vmem:[%s2929_s21 + $0xc4] sm:$0xf] }
 0x1c1   : > { %v2228_v17 = vor.u32 %v2442_v22, %v2225_v3  ;;  %v2167_v22 = vld [vmem:[%s2929_s21 + $0x48] sm:$0xf]  ;;  %v2429_v3 = vld [vmem:[%s2929_s21 + $0x54] sm:$0xf0] }
 0x1c3   : > { %v3168_v58 = vpop.f32.mrf.mxu2 }
 0x1c5   : > { %v3170_v63 = vpop.f32.mrf.mxu0 }
 0x1c8   : > { %1303 = vmatmul.bf16.gmra.mxu1 %v2176_v26 }
 0x1cb   : > { %v3174_v56 = vpop.f32.mrf.mxu2 }
 0x1cd   : > { %v3176_v19 = vpop.f32.mrf.mxu0 }
 0x1ce   : > { %v850_v24 = vpack.c.bf16 %v3176_v19, %v3170_v63  ;;  %v2423_v19 = vld [vmem:[%s2929_s21 + $0x2c] sm:$0xf] }
 0x1d0   : > { %1382 = vmatmul.bf16.gmra.mxu2 %v2148_v1  ;;  %v1289_v1 = vpop.f32.mrf.mxu1 }
 0x1d3   : > { %v3182_v27 = vpop.f32.mrf.mxu2 }
 0x1d5   : > { %v3184_v28 = vpop.f32.mrf.mxu0 }
 0x1d8   : > { %1308 = vmatmul.bf16.gmra.mxu1 %v2192_v37  ;;  %v3228_v30 = vpop.f32.mrf.mxu1 }
 0x1db   : > { %v3188_v31 = vpop.f32.mrf.mxu2 }
 0x1dd   : > { %v3190_v33 = vpop.f32.mrf.mxu0 }
 0x1de   : > { %v851_v35 = vpack.c.bf16 %v3190_v33, %v3184_v28  ;;  %v2421_v28 = vld [vmem:[%s2929_s21 + $0x14] sm:$0xf0]  ;;  %v2450_v33 = vld [vmem:[%s2929_s21 + $0x104] sm:$0xf] }
 0x1e0   : > { %1387 = vmatmul.bf16.gmra.mxu2 %v2164_v32  ;;  %v2446_v32 = vld [vmem:[%s2929_s21 + $0xe4] sm:$0xf] }
 0x1e1   : > { %v2244_v40 = vor.u32 %v2446_v32, %v2241_v34 }
 0x1e3   : > { %v3196_v38 = vpop.f32.mrf.mxu2 }
 0x1e5   : > { %v772_v39 = vpop.f32.mrf.mxu0 }
 0x1e8   : > { %1313 = vmatmul.bf16.gmra.mxu1 %v2208_v52  ;;  %v1294_v52 = vpop.f32.mrf.mxu1 }
 0x1eb   : > { %v3200_v43 = vpop.f32.mrf.mxu2 }
 0x1ed   : > { %v774_v47 = vpop.f32.mrf.mxu0 }
 0x1ee   : > { %v852_v36 = vpack.c.bf16 %v774_v47, %v772_v39 }
 0x1f0   : > { %1392 = vmatmul.bf16.gmra.mxu2 %v2180_v45  ;;  %v2419_v45 = vld [vmem:[%s2929_s21 + $0xc] sm:$0xf] }
 0x1f1   : > { %v2140_v39 = vor.u32 %v2419_v45, %v2137_v48  ;;  %v2433_v45 = vld [vmem:[%s2929_s21 + $0x74] sm:$0xf0]  ;;  %v2462_v48 = vld [vmem:[%s2929_s21 + $0x164] sm:$0xf] }
 0x1f3   : > { %v3204_v53 = vpop.f32.mrf.mxu2 }
 0x1f5   : > { %v777_v57 = vpop.f32.mrf.mxu0 }
 0x1f8   : > { %1318 = vmatmul.bf16.gmra.mxu1 %v2224_v0  ;;  %v2425_v0 = vld [vmem:[%s2929_s21 + $0x34] sm:$0xf0] }
 0x1fb   : > { %v3208_v60 = vpop.f32.mrf.mxu2 }
 0x1fd   : > { %v779_v46 = vpop.f32.mrf.mxu0 }
 0x1fe   : > { %v853_v29 = vpack.c.bf16 %v779_v46, %v777_v57  ;;  %v3244_v57 = vpop.f32.mrf.mxu1 }
 0x200   : > { %1397 = vmatmul.bf16.gmra.mxu2 %v2196_v61  ;;  %v2136_v61 = vor.u32 %v2421_v28, %v2135_v55 }
 0x203   : > { %v3212_v41 = vpop.f32.mrf.mxu2 }
 0x205   : > { %v782_v44 = vpop.f32.mrf.mxu0 }
 0x208   : > { %1323 = vmatmul.bf16.gmra.mxu1 %v2240_v16 }
 0x20b   : > { %v3216_v6 = vpop.f32.mrf.mxu2 }
 0x20d   : > { %v784_v9 = vpop.f32.mrf.mxu0 }
 0x20e   : > { %v854_v23 = vpack.c.bf16 %v784_v9, %v782_v44  ;;  %v2152_v44 = vor.u32 %v2425_v0, %v2151_v62  ;;  %v2321_v62 = vld [vmem:[%s2929_s21 + $0x190] sm:$0xf0] }
 0x210   : > { %1402 = vmatmul.bf16.gmra.mxu2 %v2212_v7  ;;  %v2169_v7 = vld [vmem:[%s2929_s21 + $0x58] sm:$0xf0] }
 0x211   : > { %v2172_v13 = vor.u32 %v2427_v5, %v2169_v7  ;;  %v2215_v7 = vld [vmem:[%s2929_s21 + $0xa8] sm:$0xf] }
 0x213   : > { %v3220_v20 = vpop.f32.mrf.mxu2 }
 0x215   : > { %v787_v21 = vpop.f32.mrf.mxu0 }
 0x21b   : > { %v3224_v10 = vpop.f32.mrf.mxu2 }
 0x21d   : > { %v789_v50 = vpop.f32.mrf.mxu0 }
 0x21e   : > { %v855_v54 = vpack.c.bf16 %v789_v50, %v787_v21  ;;  %v2289_v50 = vld [vmem:[%s2929_s21 + $0x150] sm:$0xf0] }
 0x220   : > { %1407 = vmatmul.bf16.gmra.mxu2 %v2228_v17  ;;  %1458 = vmatpush.bf16.msrb.mxu3 %v855_v54  ;;  %v2458_v17 = vld [vmem:[%s2929_s21 + $0x144] sm:$0xf] }
 0x223   : > { %v3226_v25 = vpop.f32.mrf.mxu2 }
 0x224   : > { %1459 = vmatpush.bf16.msrb.mxu3 %v854_v23  ;;  %v2292_v23 = vor.u32 %v2458_v17, %v2289_v50  ;;  %v2443_v50 = vld [vmem:[%s2929_s21 + $0xcc] sm:$0xf] }
 0x225   : > { %v792_v26 = vpop.f32.mrf.mxu0 }
 0x228   : > { %1460 = vmatpush.bf16.msrb.mxu3 %v853_v29  ;;  %v2185_v29 = vld [vmem:[%s2929_s21 + $0x78] sm:$0xf0] }
 0x22b   : > { %v3232_v37 = vpop.f32.mrf.mxu2 }
 0x22c   : > { %1461 = vmatpush.bf16.msrb.mxu3 %v852_v36 }
 0x22d   : > { %v794_v42 = vpop.f32.mrf.mxu0 }
 0x22e   : > { %v856_v49 = vpack.c.bf16 %v794_v42, %v792_v26  ;;  %v2431_v26 = vld [vmem:[%s2929_s21 + $0x6c] sm:$0xf]  ;;  %v2183_v42 = vld [vmem:[%s2929_s21 + $0x68] sm:$0xf] }
 0x22f   : > { %v2188_v32 = vor.u32 %v2431_v26, %v2185_v29  ;;  %v2231_v29 = vld [vmem:[%s2929_s21 + $0xc8] sm:$0xf] }
 0x230   : > { %1412 = vmatmul.bf16.gmra.mxu2 %v2244_v40  ;;  %1462 = vmatpush.bf16.msrb.mxu3 %v851_v35  ;;  %v2257_v35 = vld [vmem:[%s2929_s21 + $0x110] sm:$0xf0] }
 0x231   : > { %1554 = vmatpush.bf16.msrb.mxu1 %v856_v49  ;;  %v2260_v63 = vor.u32 %v2450_v33, %v2257_v35  ;;  %v2305_v49 = vld [vmem:[%s2929_s21 + $0x170] sm:$0xf0]  ;;  %v2435_v33 = vld [vmem:[%s2929_s21 + $0x8c] sm:$0xf]  ;;  %v2201_v35 = vld [vmem:[%s2929_s21 + $0x98] sm:$0xf0] }
 0x232   : > { %v2308_v28 = vor.u32 %v2462_v48, %v2305_v49 }
 0x233   : > { %v3239_v47 = vpop.f32.mrf.mxu2 }
 0x234   : > { %1463 = vmatpush.bf16.msrb.mxu3 %v850_v24  ;;  %1555 = vmatmul.bf16.vlgmr.msrb.gmra.mxu1 %v2140_v39  ;;  %v2153_v24 = vld [vmem:[%s2929_s21 + $0x38] sm:$0xf0]  ;;  %v2184_v39 = vor.u32 %v2433_v45, %v2183_v42  ;;  %v2353_v42 = vld [vmem:[%s2929_s21 + $0x1d0] sm:$0xf0] }
 0x235   : > { %v1299_v18 = vpop.f32.mrf.mxu1  ;;  %v2156_v12 = vor.u32 %v2423_v19, %v2153_v24 }
 0x238   : > { %1464 = vmatpush.bf16.msrb.mxu3 %v849_v8 }
 0x23b   : > { %v3253_v59 = vpop.f32.mrf.mxu2 }
 0x23c   : > { %1465 = vmatpush.bf16.msrb.mxu3 %v848_v14 }
 0x23d   : > { %v3262_v51 = vpop.f32.mrf.mxu1 }
 0x23f   : > { %1466 = vmatmul.bf16.vlgmr.msrb.gmra.mxu3 %v2136_v61  ;;  %v2204_v61 = vor.u32 %v2435_v33, %v2201_v35 }
 0x240   : > { %1417 = vmatmul.bf16.gmra.mxu2 %v2260_v63 }
 0x243   : > { %v1378_v8 = vpop.f32.mrf.mxu2 }
 0x244   : > { %v3260_v46 = vadd.f32 %v1378_v8, %v1289_v1  ;;  %1560 = vmatmul.bf16.gmra.mxu1 %v2156_v12  ;;  %v2168_v1 = vor.u32 %v2429_v3, %v2167_v22  ;;  %v2437_v12 = vld [vmem:[%s2929_s21 + $0x94] sm:$0xf0]  ;;  %v2466_v8 = vld [vmem:[%s2929_s21 + $0x184] sm:$0xf] }
 0x245   : > { %v1304_v9 = vpop.f32.mrf.mxu1  ;;  %v2324_v2 = vor.u32 %v2466_v8, %v2321_v62 }
 0x24b   : > { %v3268_v14 = vpop.f32.mrf.mxu2 }
 0x24d   : > { %v3274_v21 = vpop.f32.mrf.mxu1 }
 0x24f   : > { %1471 = vmatmul.bf16.gmra.mxu3 %v2152_v44  ;;  %v2217_v44 = vld [vmem:[%s2929_s21 + $0xb8] sm:$0xf0] }
 0x250   : > { %1422 = vmatmul.bf16.gmra.mxu2 %v2276_v4  ;;  %v2220_v5 = vor.u32 %v2439_v11, %v2217_v44 }
 0x253   : > { %v1383_v15 = vpop.f32.mrf.mxu2 }
 0x254   : > { %v3272_v16 = vadd.f32 %v1383_v15, %v1294_v52  ;;  %1565 = vmatmul.bf16.gmra.mxu1 %v2172_v13  ;;  %v2470_v13 = vld [vmem:[%s2929_s21 + $0x1a4] sm:$0xf]  ;;  %v2337_v15 = vld [vmem:[%s2929_s21 + $0x1b0] sm:$0xf0] }
 0x255   : > { %v3284_v34 = vpop.f32.mrf.mxu1  ;;  %v2340_v17 = vor.u32 %v2470_v13, %v2337_v15 }
 0x25b   : > { %v3280_v54 = vpop.f32.mrf.mxu2 }
 0x25d   : > { %v3294_v55 = vpop.f32.mrf.mxu1 }
 0x25f   : > { %1476 = vmatmul.bf16.gmra.mxu3 %v2168_v1  ;;  %v2233_v1 = vld [vmem:[%s2929_s21 + $0xd8] sm:$0xf0] }
 0x260   : > { %1427 = vmatmul.bf16.gmra.mxu2 %v2292_v23  ;;  %v2236_v23 = vor.u32 %v2443_v50, %v2233_v1 }
 0x263   : > { %v1388_v36 = vpop.f32.mrf.mxu2 }
 0x264   : > { %v3286_v40 = vadd.f32 %v1388_v36, %v1299_v18  ;;  %1570 = vmatmul.bf16.gmra.mxu1 %v2188_v32  ;;  %v2199_v18 = vld [vmem:[%s2929_s21 + $0x88] sm:$0xf]  ;;  %v2445_v32 = vld [vmem:[%s2929_s21 + $0xd4] sm:$0xf0]  ;;  %v2474_v36 = vld [vmem:[%s2929_s21 + $0x1c4] sm:$0xf] }
 0x265   : > { %v3300_v24 = vpop.f32.mrf.mxu1  ;;  %v2200_v0 = vor.u32 %v2437_v12, %v2199_v18  ;;  %v2232_v45 = vor.u32 %v2445_v32, %v2231_v29  ;;  %v2356_v48 = vor.u32 %v2474_v36, %v2353_v42  ;;  %v2478_v18 = vld [vmem:[%s2929_s21 + $0x1e4] sm:$0xf]  ;;  %v2369_v12 = vld [vmem:[%s2929_s21 + $0x1f0] sm:$0xf0]  ;;  %v2279_v32 = vld [vmem:[%s2929_s21 + $0x128] sm:$0xf]  ;;  %v1381_v42 = vadd.f32 %v3268_v14, %v3228_v30 }
 0x266   : > { %v2372_v62 = vor.u32 %v2478_v18, %v2369_v12  ;;  %v2457_v36 = vld [vmem:[%s2929_s21 + $0x134] sm:$0xf0]  ;;  %v2459_v12 = vld [vmem:[%s2929_s21 + $0x14c] sm:$0xf] }
 0x26b   : > { %v3292_v52 = vpop.f32.mrf.mxu2 }
 0x26d   : > { %v3308_v4 = vpop.f32.mrf.mxu1 }
 0x26f   : > { %1481 = vmatmul.bf16.gmra.mxu3 %v2184_v39  ;;  %v2447_v39 = vld [vmem:[%s2929_s21 + $0xec] sm:$0xf] }
 0x270   : > { %1432 = vmatmul.bf16.gmra.mxu2 %v2308_v28  ;;  %v2249_v28 = vld [vmem:[%s2929_s21 + $0xf8] sm:$0xf0] }
 0x271   : > { %v2252_v33 = vor.u32 %v2447_v39, %v2249_v28 }
 0x273   : > { %v1393_v63 = vpop.f32.mrf.mxu2 }
 0x274   : > { %v3298_v19 = vadd.f32 %v1393_v63, %v1304_v9  ;;  %1575 = vmatmul.bf16.gmra.mxu1 %v2204_v61  ;;  %v2441_v9 = vld [vmem:[%s2929_s21 + $0xb4] sm:$0xf0]  ;;  %v2247_v61 = vld [vmem:[%s2929_s21 + $0xe8] sm:$0xf] }
 0x275   : > { %v3314_v22 = vpop.f32.mrf.mxu1  ;;  %v2216_v3 = vor.u32 %v2441_v9, %v2215_v7  ;;  %v2449_v63 = vld [vmem:[%s2929_s21 + $0xf4] sm:$0xf0]  ;;  %v2263_v7 = vld [vmem:[%s2929_s21 + $0x108] sm:$0xf] }
 0x276   : > { %v2248_v8 = vor.u32 %v2449_v63, %v2247_v61  ;;  %v2453_v9 = vld [vmem:[%s2929_s21 + $0x114] sm:$0xf0]  ;;  %v2280_v61 = vor.u32 %v2457_v36, %v2279_v32 }
 0x277   : > { %v2264_v15 = vor.u32 %v2453_v9, %v2263_v7  ;;  %v2295_v9 = vld [vmem:[%s2929_s21 + $0x148] sm:$0xf] }
 0x27b   : > { %v3336_v11 = vpop.f32.mrf.mxu2 }
 0x27d   : > { %v3318_v26 = vpop.f32.mrf.mxu1 }
 0x27f   : > { %1486 = vmatmul.bf16.gmra.mxu3 %v2200_v0  ;;  %v2451_v0 = vld [vmem:[%s2929_s21 + $0x10c] sm:$0xf] }
 0x280   : > { %1437 = vmatmul.bf16.gmra.mxu2 %v2324_v2  ;;  %v2265_v2 = vld [vmem:[%s2929_s21 + $0x118] sm:$0xf0] }
 0x281   : > { %v2268_v44 = vor.u32 %v2451_v0, %v2265_v2 }
 0x283   : > { %v3354_v30 = vpop.f32.mrf.mxu2 }
 0x284   : > { %1580 = vmatmul.bf16.gmra.mxu1 %v2220_v5 }
 0x285   : > { %v3324_v49 = vpop.f32.mrf.mxu1 }
 0x28d   : > { %v3328_v35 = vpop.f32.mrf.mxu1 }
 0x28f   : > { %1491 = vmatmul.bf16.gmra.mxu3 %v2216_v3  ;;  %v2455_v3 = vld [vmem:[%s2929_s21 + $0x12c] sm:$0xf] }
 0x290   : > { %1442 = vmatmul.bf16.gmra.mxu2 %v2340_v17  ;;  %v2281_v17 = vld [vmem:[%s2929_s21 + $0x138] sm:$0xf0] }
 0x291   : > { %v2284_v50 = vor.u32 %v2455_v3, %v2281_v17 }
 0x294   : > { %1585 = vmatmul.bf16.gmra.mxu1 %v2236_v23 }
 0x29f   : > { %1496 = vmatmul.bf16.gmra.mxu3 %v2232_v45  ;;  %v3348_v45 = vld [vmem:[#allocation7] ss:$0 sm:$0xff] }
 0x2a0   : > { %1447 = vmatmul.bf16.gmra.mxu2 %v2356_v48 }
 0x2a4   : > { %1590 = vmatmul.bf16.gmra.mxu1 %v2252_v33 }
 0x2af   : > { %1501 = vmatmul.bf16.gmra.mxu3 %v2248_v8 }
 0x2b0   : > { %1452 = vmatmul.bf16.gmra.mxu2 %v2372_v62 }
 0x2b1   : > { %v1556_v5 = vpop.f32.mrf.mxu1 }
 0x2b4   : > { %1595 = vmatmul.bf16.gmra.mxu1 %v2268_v44 }
 0x2b9   : > { %v1558_v13 = vpop.f32.mrf.mxu1 }
 0x2bf   : > { %1506 = vmatmul.bf16.gmra.mxu3 %v2264_v15  ;;  %v1386_v15 = vadd.f32 %v3280_v54, %v3244_v57 }
 0x2c1   : > { %v1561_v1 = vpop.f32.mrf.mxu1 }
 0x2c2   : > { %v1467_v23 = vpop.f32.mrf.mxu3 }
 0x2c3   : > { %v1468_v29 = vadd.f32 %v1467_v23, %v3260_v46  ;;  %v2297_v46 = vld [vmem:[%s2929_s21 + $0x158] sm:$0xf0] }
 0x2c4   : > { %1600 = vmatmul.bf16.gmra.mxu1 %v2284_v50  ;;  %v2300_v14 = vor.u32 %v2459_v12, %v2297_v46  ;;  %v3367_v50 = vpop.f32.mrf.mxu2  ;;  %v2311_v12 = vld [vmem:[%s2929_s21 + $0x168] sm:$0xf]  ;;  %v2465_v46 = vld [vmem:[%s2929_s21 + $0x174] sm:$0xf0] }
 0x2c5   : > { %v1557_v48 = vadd.f32 %v1556_v5, %v1468_v29 }
 0x2c7   : > { %v1636_v63 = vadd.f32 %v3348_v45, %v1557_v48  ;;  %v2463_v48 = vld [vmem:[%s2929_s21 + $0x16c] sm:$0xf] }
 0x2c9   : > { %v1563_v39 = vpop.f32.mrf.mxu1  ;;  %v1735_v62 = vmax.f32 %v1636_v63, 0.0 }
 0x2ca   : > { %v1469_v28 = vpop.f32.mrf.mxu3 }
 0x2cb   : > { %v1470_v33 = vadd.f32 %v1469_v28, %v1381_v42 }
 0x2cd   : > { %v1559_v18 = vadd.f32 %v1558_v13, %v1470_v33  ;;  %v2461_v13 = vld [vmem:[%s2929_s21 + $0x154] sm:$0xf0] }
 0x2ce   : > { %v2296_v32 = vor.u32 %v2461_v13, %v2295_v9  ;;  %v2467_v13 = vld [vmem:[%s2929_s21 + $0x18c] sm:$0xf] }
 0x2cf   : > { %v1637_v8 = vadd.f32 %v3348_v45, %v1559_v18  ;;  %1511 = vmatmul.bf16.gmra.mxu3 %v2280_v61  ;;  %v3373_v18 = vpop.f32.mrf.mxu2 }
 0x2d1   : > { %v1736_v0 = vmax.f32 %v1637_v8, 0.0  ;;  %v1566_v2 = vpop.f32.mrf.mxu1  ;;  %v1391_v8 = vadd.f32 %v3292_v52, %v3262_v51 }
 0x2d2   : > { %v1472_v44 = vpop.f32.mrf.mxu3 }
 0x2d3   : > { %v2485_v5 = vpack.c.bf16 %v1736_v0, %v1735_v62  ;;  %v1473_v7 = vadd.f32 %v1472_v44, %v3272_v16  ;;  %v2313_v16 = vld [vmem:[%s2929_s21 + $0x178] sm:$0xf0] }
 0x2d4   : > { %1605 = vmatmul.bf16.gmra.mxu1 %v2300_v14  ;;  %v2316_v33 = vor.u32 %v2463_v48, %v2313_v16  ;;  %v2469_v48 = vld [vmem:[%s2929_s21 + $0x194] sm:$0xf0]  ;;  %v1396_v16 = vadd.f32 %v3336_v11, %v3274_v21 }
 0x2d5   : > { %2486 = vst [vmem:[%s3359_s8] sm:$0xff] %v2485_v5   ;;  %v1562_v3 = vadd.f32 %v1561_v1, %v1473_v7  ;;  %v2312_v5 = vor.u32 %v2465_v46, %v2311_v12  ;;  %v2471_v12 = vld [vmem:[%s2929_s21 + $0x1ac] sm:$0xf] }
 0x2d7   : > { %v1638_v36 = vadd.f32 %v3348_v45, %v1562_v3  ;;  %v3384_v3 = vpop.f32.mrf.mxu2 }
 0x2d9   : > { %v1568_v17 = vpop.f32.mrf.mxu1  ;;  %v1737_v57 = vmax.f32 %v1638_v36, 0.0 }
 0x2da   : > { %v1474_v23 = vpop.f32.mrf.mxu3 }
 0x2db   : > { %v1475_v29 = vadd.f32 %v1474_v23, %v1386_v15  ;;  %v2329_v15 = vld [vmem:[%s2929_s21 + $0x198] sm:$0xf0] }
 0x2dc   : > { %v2332_v23 = vor.u32 %v2467_v13, %v2329_v15  ;;  %v1401_v13 = vadd.f32 %v3367_v50, %v3294_v55 }
 0x2dd   : > { %v1564_v42 = vadd.f32 %v1563_v39, %v1475_v29 }
 0x2df   : > { %v1639_v28 = vadd.f32 %v3348_v45, %v1564_v42  ;;  %1516 = vmatmul.bf16.gmra.mxu3 %v2296_v32  ;;  %v3389_v36 = vpop.f32.mrf.mxu2  ;;  %v2327_v42 = vld [vmem:[%s2929_s21 + $0x188] sm:$0xf] }
 0x2e1   : > { %v1738_v54 = vmax.f32 %v1639_v28, 0.0  ;;  %v1571_v1 = vpop.f32.mrf.mxu1 }
 0x2e2   : > { %v1477_v61 = vpop.f32.mrf.mxu3 }
 0x2e3   : > { %v2490_v63 = vpack.c.bf16 %v1738_v54, %v1737_v57  ;;  %v1478_v39 = vadd.f32 %v1477_v61, %v3286_v40  ;;  %v2328_v61 = vor.u32 %v2469_v48, %v2327_v42 }
 0x2e4   : > { %1610 = vmatmul.bf16.gmra.mxu1 %v2316_v33 }
 0x2e5   : > { %2562 = vst [vmem:[%s3359_s8 + $0x8] sm:$0xff] %v2490_v63   ;;  %v1567_v14 = vadd.f32 %v1566_v2, %v1478_v39 }
 0x2e7   : > { %v1640_v7 = vadd.f32 %v3348_v45, %v1567_v14  ;;  %v1410_v11 = vpop.f32.mrf.mxu2 }
 0x2e9   : > { %v1573_v62 = vpop.f32.mrf.mxu1  ;;  %v1739_v51 = vmax.f32 %v1640_v7, 0.0  ;;  %v2343_v7 = vld [vmem:[%s2929_s21 + $0x1a8] sm:$0xf] }
 0x2ea   : > { %v1479_v0 = vpop.f32.mrf.mxu3 }
 0x2eb   : > { %v1480_v44 = vadd.f32 %v1479_v0, %v1391_v8 }
 0x2ed   : > { %v1569_v9 = vadd.f32 %v1568_v17, %v1480_v44  ;;  %v1399_v44 = vadd.f32 %v3354_v30, %v3284_v34 }
 0x2ef   : > { %v1641_v40 = vadd.f32 %v3348_v45, %v1569_v9  ;;  %1521 = vmatmul.bf16.gmra.mxu3 %v2312_v5  ;;  %v2473_v9 = vld [vmem:[%s2929_s21 + $0x1b4] sm:$0xf0] }
 0x2f1   : > { %v1740_v52 = vmax.f32 %v1641_v40, 0.0  ;;  %v1576_v2 = vpop.f32.mrf.mxu1 }
 0x2f2   : > { %v1482_v29 = vpop.f32.mrf.mxu3 }
 0x2f3   : > { %v2495_v32 = vpack.c.bf16 %v1740_v52, %v1739_v51  ;;  %v1483_v17 = vadd.f32 %v1482_v29, %v3298_v19  ;;  %v2345_v19 = vld [vmem:[%s2929_s21 + $0x1b8] sm:$0xf0]  ;;  %v2344_v52 = vor.u32 %v2473_v9, %v2343_v7  ;;  %v1413_v29 = vpop.f32.mrf.mxu2  ;;  %v1409_v9 = vadd.f32 %v3389_v36, %v3314_v22 }
 0x2f4   : > { %1615 = vmatmul.bf16.gmra.mxu1 %v2332_v23  ;;  %v2348_v8 = vor.u32 %v2471_v12, %v2345_v19 }
 0x2f5   : > { %2563 = vst [vmem:[%s3359_s8 + $0x10] sm:$0xff] %v2495_v32   ;;  %v1572_v28 = vadd.f32 %v1571_v1, %v1483_v17  ;;  %v2475_v32 = vld [vmem:[%s2929_s21 + $0x1cc] sm:$0xf]  ;;  %v2361_v17 = vld [vmem:[%s2929_s21 + $0x1d8] sm:$0xf0] }
 0x2f6   : > { %v2364_v48 = vor.u32 %v2475_v32, %v2361_v17 }
 0x2f7   : > { %v1642_v63 = vadd.f32 %v3348_v45, %v1572_v28  ;;  %v1404_v28 = vadd.f32 %v3373_v18, %v3300_v24 }
 0x2f9   : > { %v1578_v33 = vpop.f32.mrf.mxu1  ;;  %v1741_v14 = vmax.f32 %v1642_v63, 0.0  ;;  %v2477_v63 = vld [vmem:[%s2929_s21 + $0x1d4] sm:$0xf0] }
 0x2fa   : > { %v1484_v57 = vpop.f32.mrf.mxu3 }
 0x2fb   : > { %v1485_v54 = vadd.f32 %v1484_v57, %v1396_v16 }
 0x2fd   : > { %v1574_v39 = vadd.f32 %v1573_v62, %v1485_v54  ;;  %v1415_v54 = vpop.f32.mrf.mxu2 }
 0x2ff   : > { %v1643_v46 = vadd.f32 %v3348_v45, %v1574_v39  ;;  %1526 = vmatmul.bf16.gmra.mxu3 %v2328_v61  ;;  %v2359_v61 = vld [vmem:[%s2929_s21 + $0x1c8] sm:$0xf]  ;;  %v1406_v39 = vadd.f32 %v3384_v3, %v3308_v4 }
 0x301   : > { %v1742_v0 = vmax.f32 %v1643_v46, 0.0  ;;  %v1581_v21 = vpop.f32.mrf.mxu1 }
 0x302   : > { %v1487_v1 = vpop.f32.mrf.mxu3 }
 0x303   : > { %v2500_v5 = vpack.c.bf16 %v1742_v0, %v1741_v14  ;;  %v1488_v62 = vadd.f32 %v1487_v1, %v1399_v44  ;;  %v2360_v14 = vor.u32 %v2477_v63, %v2359_v61  ;;  %v2479_v0 = vld [vmem:[%s2929_s21 + $0x1ec] sm:$0xf]  ;;  %v2377_v1 = vld [vmem:[%s2929_s21 + $0x1f8] sm:$0xf0] }
 0x304   : > { %1620 = vmatmul.bf16.gmra.mxu1 %v2348_v8 }
 0x305   : > { %2564 = vst [vmem:[%s3359_s8 + $0x18] sm:$0xff] %v2500_v5   ;;  %v1577_v15 = vadd.f32 %v1576_v2, %v1488_v62  ;;  %v1418_v5 = vpop.f32.mrf.mxu2  ;;  %v2380_v62 = vor.u32 %v2479_v0, %v2377_v1 }
 0x306   : > { %v1419_v0 = vadd.f32 %v1418_v5, %v3168_v58 }
 0x307   : > { %v1644_v34 = vadd.f32 %v3348_v45, %v1577_v15 }
 0x309   : > { %v1583_v40 = vpop.f32.mrf.mxu1  ;;  %v1743_v16 = vmax.f32 %v1644_v34, 0.0 }
 0x30a   : > { %v1489_v23 = vpop.f32.mrf.mxu3 }
 0x30b   : > { %v1490_v51 = vadd.f32 %v1489_v23, %v1401_v13  ;;  %v2481_v23 = vld [vmem:[%s2929_s21 + $0x1f4] sm:$0xf0] }
 0x30d   : > { %v1579_v30 = vadd.f32 %v1578_v33, %v1490_v51  ;;  %v1411_v51 = vadd.f32 %v1410_v11, %v3318_v26 }
 0x30f   : > { %v1645_v42 = vadd.f32 %v3348_v45, %v1579_v30  ;;  %1531 = vmatmul.bf16.gmra.mxu3 %v2344_v52  ;;  %v1420_v30 = vpop.f32.mrf.mxu2 }
 0x311   : > { %v1744_v55 = vmax.f32 %v1645_v42, 0.0  ;;  %v1586_v50 = vpop.f32.mrf.mxu1 }
 0x312   : > { %v1492_v2 = vpop.f32.mrf.mxu3 }
 0x313   : > { %v2505_v57 = vpack.c.bf16 %v1744_v55, %v1743_v16  ;;  %v1493_v33 = vadd.f32 %v1492_v2, %v1404_v28 }
 0x314   : > { %1625 = vmatmul.bf16.gmra.mxu1 %v2364_v48 }
 0x315   : > { %2565 = vst [vmem:[%s3359_s8 + $0x20] sm:$0xff] %v2505_v57   ;;  %v1582_v12 = vadd.f32 %v1581_v21, %v1493_v33  ;;  %v1414_v57 = vadd.f32 %v1413_v29, %v3324_v49  ;;  %v1416_v33 = vadd.f32 %v1415_v54, %v3328_v35  ;;  %v1421_v54 = vadd.f32 %v1420_v30, %v3174_v56 }
 0x317   : > { %v1646_v24 = vadd.f32 %v3348_v45, %v1582_v12  ;;  %v1423_v11 = vpop.f32.mrf.mxu2 }
 0x319   : > { %v1588_v19 = vpop.f32.mrf.mxu1  ;;  %v1745_v7 = vmax.f32 %v1646_v24, 0.0 }
 0x31a   : > { %v1494_v46 = vpop.f32.mrf.mxu3 }
 0x31b   : > { %v1495_v8 = vadd.f32 %v1494_v46, %v1406_v39 }
 0x31d   : > { %v1584_v18 = vadd.f32 %v1583_v40, %v1495_v8  ;;  %v2375_v40 = vld [vmem:[%s2929_s21 + $0x1e8] sm:$0xf] }
 0x31e   : > { %v2376_v42 = vor.u32 %v2481_v23, %v2375_v40 }
 0x31f   : > { %v1647_v44 = vadd.f32 %v3348_v45, %v1584_v18  ;;  %1536 = vmatmul.bf16.gmra.mxu3 %v2360_v14  ;;  %v1425_v8 = vpop.f32.mrf.mxu2 }
 0x320   : > { %v1426_v56 = vadd.f32 %v1425_v8, %v3188_v31 }
 0x321   : > { %v1746_v4 = vmax.f32 %v1647_v44, 0.0  ;;  %v1591_v3 = vpop.f32.mrf.mxu1 }
 0x322   : > { %v1497_v21 = vpop.f32.mrf.mxu3 }
 0x323   : > { %v2510_v13 = vpack.c.bf16 %v1746_v4, %v1745_v7  ;;  %v1498_v15 = vadd.f32 %v1497_v21, %v1409_v9 }
 0x324   : > { %1630 = vmatmul.bf16.gmra.mxu1 %v2380_v62 }
 0x325   : > { %2566 = vst [vmem:[%s3359_s8 + $0x28] sm:$0xff] %v2510_v13   ;;  %v1587_v52 = vadd.f32 %v1586_v50, %v1498_v15 }
 0x327   : > { %v1648_v48 = vadd.f32 %v3348_v45, %v1587_v52  ;;  %v1428_v35 = vpop.f32.mrf.mxu2 }
 0x329   : > { %v1593_v34 = vpop.f32.mrf.mxu1  ;;  %v1747_v36 = vmax.f32 %v1648_v48, 0.0 }
 0x32a   : > { %v1499_v32 = vpop.f32.mrf.mxu3 }
 0x32b   : > { %v1500_v17 = vadd.f32 %v1499_v32, %v1411_v51  ;;  %v1424_v51 = vadd.f32 %v1423_v11, %v3182_v27 }
 0x32d   : > { %v1589_v16 = vadd.f32 %v1588_v19, %v1500_v17 }
 0x32f   : > { %v1649_v22 = vadd.f32 %v3348_v45, %v1589_v16  ;;  %1541 = vmatmul.bf16.gmra.mxu3 %v2376_v42  ;;  %v1430_v58 = vpop.f32.mrf.mxu2 }
 0x331   : > { %v1748_v55 = vmax.f32 %v1649_v22, 0.0  ;;  %v1596_v2 = vpop.f32.mrf.mxu1 }
 0x332   : > { %v1502_v28 = vpop.f32.mrf.mxu3 }
 0x333   : > { %v2515_v26 = vpack.c.bf16 %v1748_v55, %v1747_v36  ;;  %v1503_v50 = vadd.f32 %v1502_v28, %v1414_v57  ;;  %v1429_v57 = vadd.f32 %v1428_v35, %v3196_v38 }
 0x335   : > { %2567 = vst [vmem:[%s3359_s8 + $0x30] sm:$0xff] %v2515_v26   ;;  %v1592_v61 = vadd.f32 %v1591_v3, %v1503_v50  ;;  %v1431_v50 = vadd.f32 %v1430_v58, %v3200_v43 }
 0x337   : > { %v1650_v19 = vadd.f32 %v3348_v45, %v1592_v61  ;;  %v1433_v48 = vpop.f32.mrf.mxu2 }
 0x339   : > { %v1598_v63 = vpop.f32.mrf.mxu1  ;;  %v1749_v24 = vmax.f32 %v1650_v19, 0.0 }
 0x33a   : > { %v1504_v39 = vpop.f32.mrf.mxu3 }
 0x33b   : > { %v1505_v12 = vadd.f32 %v1504_v39, %v1416_v33 }
 0x33d   : > { %v1594_v46 = vadd.f32 %v1593_v34, %v1505_v12 }
 0x33f   : > { %v1651_v14 = vadd.f32 %v3348_v45, %v1594_v46  ;;  %v1435_v31 = vpop.f32.mrf.mxu2 }
 0x340   : > { %v1436_v43 = vadd.f32 %v1435_v31, %v3208_v60 }
 0x341   : > { %v1750_v18 = vmax.f32 %v1651_v14, 0.0  ;;  %v1601_v49 = vpop.f32.mrf.mxu1 }
 0x342   : > { %v1507_v29 = vpop.f32.mrf.mxu3 }
 0x343   : > { %v2520_v1 = vpack.c.bf16 %v1750_v18, %v1749_v24  ;;  %v1508_v44 = vadd.f32 %v1507_v29, %v1419_v0  ;;  %v1434_v18 = vadd.f32 %v1433_v48, %v3204_v53 }
 0x345   : > { %2568 = vst [vmem:[%s3359_s8 + $0x38] sm:$0xff] %v2520_v1   ;;  %v1597_v62 = vadd.f32 %v1596_v2, %v1508_v44 }
 0x347   : > { %v1652_v21 = vadd.f32 %v3348_v45, %v1597_v62  ;;  %v1438_v8 = vpop.f32.mrf.mxu2 }
 0x349   : > { %v1603_v7 = vpop.f32.mrf.mxu1  ;;  %v1751_v15 = vmax.f32 %v1652_v21, 0.0 }
 0x34a   : > { %v1509_v4 = vpop.f32.mrf.mxu3 }
 0x34b   : > { %v1510_v3 = vadd.f32 %v1509_v4, %v1421_v54 }
 0x34d   : > { %v1599_v9 = vadd.f32 %v1598_v63, %v1510_v3 }
 0x34f   : > { %v1653_v13 = vadd.f32 %v3348_v45, %v1599_v9  ;;  %v1440_v44 = vpop.f32.mrf.mxu2 }
 0x350   : > { %v1441_v60 = vadd.f32 %v1440_v44, %v3216_v6 }
 0x351   : > { %v1752_v40 = vmax.f32 %v1653_v13, 0.0  ;;  %v1606_v23 = vpop.f32.mrf.mxu1  ;;  %v1439_v13 = vadd.f32 %v1438_v8, %v3212_v41 }
 0x352   : > { %v1512_v5 = vpop.f32.mrf.mxu3 }
 0x353   : > { %v2525_v52 = vpack.c.bf16 %v1752_v40, %v1751_v15  ;;  %v1513_v34 = vadd.f32 %v1512_v5, %v1424_v51 }
 0x355   : > { %2569 = vst [vmem:[%s3359_s8 + $0x40] sm:$0xff] %v2525_v52   ;;  %v1602_v30 = vadd.f32 %v1601_v49, %v1513_v34 }
 0x357   : > { %v1654_v16 = vadd.f32 %v3348_v45, %v1602_v30  ;;  %v1443_v40 = vpop.f32.mrf.mxu2 }
 0x358   : > { %v1444_v48 = vadd.f32 %v1443_v40, %v3220_v20 }
 0x359   : > { %v1608_v32 = vpop.f32.mrf.mxu1  ;;  %v1753_v55 = vmax.f32 %v1654_v16, 0.0 }
 0x35a   : > { %v1514_v17 = vpop.f32.mrf.mxu3 }
 0x35b   : > { %v1515_v42 = vadd.f32 %v1514_v17, %v1426_v56 }
 0x35d   : > { %v1604_v22 = vadd.f32 %v1603_v7, %v1515_v42 }
 0x35f   : > { %v1655_v36 = vadd.f32 %v3348_v45, %v1604_v22  ;;  %v1445_v30 = vpop.f32.mrf.mxu2 }
 0x361   : > { %v1754_v2 = vmax.f32 %v1655_v36, 0.0  ;;  %v1611_v27 = vpop.f32.mrf.mxu1 }
 0x362   : > { %v1517_v28 = vpop.f32.mrf.mxu3 }
 0x363   : > { %v2530_v26 = vpack.c.bf16 %v1754_v2, %v1753_v55  ;;  %v1518_v11 = vadd.f32 %v1517_v28, %v1429_v57  ;;  %v1446_v55 = vadd.f32 %v1445_v30, %v3224_v10 }
 0x365   : > { %2570 = vst [vmem:[%s3359_s8 + $0x48] sm:$0xff] %v2530_v26   ;;  %v1607_v33 = vadd.f32 %v1606_v23, %v1518_v11 }
 0x367   : > { %v1656_v12 = vadd.f32 %v3348_v45, %v1607_v33  ;;  %v1448_v6 = vpop.f32.mrf.mxu2 }
 0x369   : > { %v1613_v39 = vpop.f32.mrf.mxu1  ;;  %v1755_v14 = vmax.f32 %v1656_v12, 0.0 }
 0x36a   : > { %v1519_v61 = vpop.f32.mrf.mxu3 }
 0x36b   : > { %v1520_v63 = vadd.f32 %v1519_v61, %v1431_v50 }
 0x36d   : > { %v1609_v19 = vadd.f32 %v1608_v32, %v1520_v63  ;;  %v1449_v63 = vadd.f32 %v1448_v6, %v3226_v25 }
 0x36f   : > { %v1657_v46 = vadd.f32 %v3348_v45, %v1609_v19  ;;  %v1450_v20 = vpop.f32.mrf.mxu2 }
 0x370   : > { %v1451_v19 = vadd.f32 %v1450_v20, %v3232_v37 }
 0x371   : > { %v1756_v24 = vmax.f32 %v1657_v46, 0.0  ;;  %v1616_v0 = vpop.f32.mrf.mxu1 }
 0x372   : > { %v1522_v38 = vpop.f32.mrf.mxu3 }
 0x373   : > { %v2535_v49 = vpack.c.bf16 %v1756_v24, %v1755_v14  ;;  %v1523_v29 = vadd.f32 %v1522_v38, %v1434_v18 }
 0x375   : > { %2571 = vst [vmem:[%s3359_s8 + $0x50] sm:$0xff] %v2535_v49   ;;  %v1612_v1 = vadd.f32 %v1611_v27, %v1523_v29 }
 0x377   : > { %v1658_v62 = vadd.f32 %v3348_v45, %v1612_v1  ;;  %v1453_v24 = vpop.f32.mrf.mxu2 }
 0x378   : > { %v1454_v1 = vadd.f32 %v1453_v24, %v3239_v47 }
 0x379   : > { %v1618_v3 = vpop.f32.mrf.mxu1  ;;  %v1757_v21 = vmax.f32 %v1658_v62, 0.0 }
 0x37a   : > { %v1524_v35 = vpop.f32.mrf.mxu3 }
 0x37b   : > { %v1525_v54 = vadd.f32 %v1524_v35, %v1436_v43 }
 0x37d   : > { %v1614_v7 = vadd.f32 %v1613_v39, %v1525_v54 }
 0x37f   : > { %v1659_v4 = vadd.f32 %v3348_v45, %v1614_v7  ;;  %v1455_v37 = vpop.f32.mrf.mxu2 }
 0x380   : > { %v1456_v54 = vadd.f32 %v1455_v37, %v3253_v59 }
 0x381   : > { %v1758_v9 = vmax.f32 %v1659_v4, 0.0  ;;  %v1621_v51 = vpop.f32.mrf.mxu1 }
 0x382   : > { %v1527_v53 = vpop.f32.mrf.mxu3 }
 0x383   : > { %v2540_v15 = vpack.c.bf16 %v1758_v9, %v1757_v21  ;;  %v1528_v23 = vadd.f32 %v1527_v53, %v1439_v13 }
 0x385   : > { %2572 = vst [vmem:[%s3359_s8 + $0x58] sm:$0xff] %v2540_v15   ;;  %v1617_v58 = vadd.f32 %v1616_v0, %v1528_v23 }
 0x387   : > { %v1660_v34 = vadd.f32 %v3348_v45, %v1617_v58 }
 0x389   : > { %v1759_v17 = vmax.f32 %v1660_v34, 0.0  ;;  %v1623_v22 = vpop.f32.mrf.mxu1 }
 0x38a   : > { %v1529_v5 = vpop.f32.mrf.mxu3 }
 0x38b   : > { %v1530_v52 = vadd.f32 %v1529_v5, %v1441_v60 }
 0x38d   : > { %v1619_v56 = vadd.f32 %v1618_v3, %v1530_v52 }
 0x38f   : > { %v1661_v32 = vadd.f32 %v3348_v45, %v1619_v56 }
 0x391   : > { %v1760_v42 = vmax.f32 %v1661_v32, 0.0  ;;  %v1626_v11 = vpop.f32.mrf.mxu1 }
 0x392   : > { %v1532_v41 = vpop.f32.mrf.mxu3 }
 0x393   : > { %v2545_v16 = vpack.c.bf16 %v1760_v42, %v1759_v17  ;;  %v1533_v36 = vadd.f32 %v1532_v41, %v1444_v48 }
 0x395   : > { %2573 = vst [vmem:[%s3359_s8 + $0x60] sm:$0xff] %v2545_v16   ;;  %v1622_v2 = vadd.f32 %v1621_v51, %v1533_v36 }
 0x397   : > { %v1662_v57 = vadd.f32 %v3348_v45, %v1622_v2 }
 0x399   : > { %v1761_v50 = vmax.f32 %v1662_v57, 0.0  ;;  %v1628_v10 = vpop.f32.mrf.mxu1 }
 0x39a   : > { %v1534_v28 = vpop.f32.mrf.mxu3 }
 0x39b   : > { %v1535_v27 = vadd.f32 %v1534_v28, %v1446_v55 }
 0x39d   : > { %v1624_v26 = vadd.f32 %v1623_v22, %v1535_v27 }
 0x39f   : > { %v1663_v31 = vadd.f32 %v3348_v45, %v1624_v26 }
 0x3a1   : > { %v1762_v33 = vmax.f32 %v1663_v31, 0.0  ;;  %v1631_v25 = vpop.f32.mrf.mxu1 }
 0x3a2   : > { %v1537_v61 = vpop.f32.mrf.mxu3 }
 0x3a3   : > { %v2550_v39 = vpack.c.bf16 %v1762_v33, %v1761_v50  ;;  %v1538_v12 = vadd.f32 %v1537_v61, %v1449_v63 }
 0x3a5   : > { %2574 = vst [vmem:[%s3359_s8 + $0x68] sm:$0xff] %v2550_v39   ;;  %v1627_v46 = vadd.f32 %v1626_v11, %v1538_v12 }
 0x3a7   : > { %v1664_v38 = vadd.f32 %v3348_v45, %v1627_v46 }
 0x3a9   : > { %v1763_v29 = vmax.f32 %v1664_v38, 0.0  ;;  %v1633_v3 = vpop.f32.mrf.mxu1 }
 0x3aa   : > { %v1539_v8 = vpop.f32.mrf.mxu3 }
 0x3ab   : > { %v1540_v14 = vadd.f32 %v1539_v8, %v1451_v19 }
 0x3ad   : > { %v1629_v18 = vadd.f32 %v1628_v10, %v1540_v14 }
 0x3af   : > { %v1665_v49 = vadd.f32 %v3348_v45, %v1629_v18 }
 0x3b1   : > { %v1764_v0 = vmax.f32 %v1665_v49, 0.0 }
 0x3b2   : > { %v1542_v43 = vpop.f32.mrf.mxu3 }
 0x3b3   : > { %v2555_v44 = vpack.c.bf16 %v1764_v0, %v1763_v29  ;;  %v1543_v35 = vadd.f32 %v1542_v43, %v1454_v1 }
 0x3b5   : > { %2575 = vst [vmem:[%s3359_s8 + $0x70] sm:$0xff] %v2555_v44   ;;  %v1632_v62 = vadd.f32 %v1631_v25, %v1543_v35 }
 0x3b7   : > { %v1666_v21 = vadd.f32 %v3348_v45, %v1632_v62 }
 0x3b9   : > { %v1765_v13 = vmax.f32 %v1666_v21, 0.0 }
 0x3ba   : > { %v1544_v7 = vpop.f32.mrf.mxu3 }
 0x3bb   : > { %v1545_v4 = vadd.f32 %v1544_v7, %v1456_v54 }
 0x3bd   : > { %v1634_v9 = vadd.f32 %v1633_v3, %v1545_v4 }
 0x3bf   : > { %v1667_v53 = vadd.f32 %v3348_v45, %v1634_v9 }
 0x3c1   : > { %v1766_v15 = vmax.f32 %v1667_v53, 0.0 }
 0x3c3   : > { %v2560_v40 = vpack.c.bf16 %v1766_v15, %v1765_v13 }
 0x3c5   : > { %2576 = vst [vmem:[%s3359_s8 + $0x78] sm:$0xff] %v2560_v40  }
 0x3c6 PF: > { %s18_s20 = sadd.s32 1, %s2811_s20   ;;  %s3502_s15 = smov %s2795_s16 }
 0x3c7   : > { %p15_p2 = scmp.ge.s32.totalorder %s18_s20, 4   ;;  %s3503_s16 = smov %s2799_s17 }
 0x3c8   : > { %s3504_s17 = smov %s2917_s25  ;;  %s3505_s18 = smov %s2807_s19 }
 0x3c9   : > { %s3506_s19 = smov %s3508_s11  ;;  %17 = sbr.rel (!%p15_p2) target bundleno = 5 (0x5), region = 95 }
 0x3ce   :  { %1853 = vsyncpa [#allocation4], 1 }
 0x3cf   :  { %1855 = vsyncpa [#allocation4 + $0x1], 1 }
 0x3d0   :  { %1856 = vsyncpa [#allocation6], 1 }

// kernel: gcn_apply.3
= control target key start
LH: loop header
LB: loop body
LE: loop exit
PB: predicated region body
PF: predicated region fallthrough
CT: control target
= control target key end

     0   :  { %s2975_s15 = smov 0   ;;  %s2977_s16 = smov 0   ;;  %s3999_s0 = inlined_call_operand.vmem [shape: bf16[512,512], index: 0, kind: input, shape index: {}]   ;;  %s4000_s1 = inlined_call_operand.vmem [shape: bf16[512,128], index: 1, kind: input, shape index: {}]   ;;  %s4001_s2 = inlined_call_operand.vmem [shape: bf16[128,128], index: 2, kind: input, shape index: {}]   ;;  %s4002_s3 = inlined_call_operand.vmem [shape: f32[1,128], index: 3, kind: input, shape index: {}]   ;;  %s4003_s4 = inlined_call_operand.vmem [shape: f32[512,128], index: 4, kind: output, shape index: {}]  }
   0x1   :  { %s2979_s17 = smov 0  }
   0x2 LB: > { %s26_s18 = sadd.s32 1, %s2944_s16  ;;  %p2228_p0 = scmp.ge.s32.totalorder %s2948_s17, 1  ;;  %s2948_s17 = sphi %s2979_s17, %s14_s17   ;;  %s2944_s16 = sphi %s2977_s16, %s4005_s16   ;;  %s2940_s15 = sphi %s2975_s15, %s4004_s15  }
   0x3   : > { %p28_p1 = scmp.ge.s32.totalorder %s26_s18, 2  ;;  %p194_p2 = scmp.lt.s32.totalorder %s2948_s17, 3 }
   0x5   : > { %s4007_s18 = smov (%p28_p1, %s26_s18), 0  ;;  %p195_p3 = pnand %p2228_p0, %p194_p2 }
   0x6   : > { %s2229_s5 = sshll.u32 (!%p195_p3), %s2940_s15, 5 }
   0x7   : > { %198 = sbr.rel (%p195_p3) target bundleno = 1223 (0x4c7), region = 36  ;;  %p232_p4 = scmp.lt.s32.totalorder (!%p195_p3), %s2229_s5, 63 }
   0xc   : > { %v2692_v0 = vld [vmem:[%s4001_s2 + $0x38] sm:$0xff]  ;;  %v2691_v1 = vld [vmem:[%s4001_s2 + $0x30] sm:$0xff]  ;;  %v2690_v2 = vld [vmem:[%s4001_s2 + $0x28] sm:$0xff]  ;;  %s4009_s5 = smov (!%p232_p4, %s2229_s5), 63 }
   0xd   : > { %614 = vmatpush.bf16.msra.mxu0 %v2692_v0  ;;  %2757 = vmatpush.bf16.msra.mxu2 %v2692_v0  ;;  %v2689_v3 = vld [vmem:[%s4001_s2 + $0x20] sm:$0xff]  ;;  %v2688_v4 = vld [vmem:[%s4001_s2 + $0x18] sm:$0xff]  ;;  %v2687_v5 = vld [vmem:[%s4001_s2 + $0x10] sm:$0xff]  ;;  %s2652_s15 = sshll.u32 %s4009_s5, 4  ;;  %s2233_s13 = sshll.u32 %s4009_s5, 3 }
   0xe   : > { %v2686_v6 = vld [vmem:[%s4001_s2 + $0x8] sm:$0xff]  ;;  %v2685_v7 = vld [vmem:[%s4001_s2] sm:$0xff]  ;;  %v2655_v10 = vld [vmem:[%s4000_s1 + $0x10] sm:$0xff]  ;;  %s3169_s8 = scalar_lea.vmem %s3999_s0, %s2652_s15  ;;  %s3764_s20 = scalar_lea.vmem %s4003_s4, %s2233_s13 }
   0xf   : > { %v2653_v8 = vld [vmem:[%s4000_s1] sm:$0xff]  ;;  %v2654_v9 = vld [vmem:[%s4000_s1 + $0x8] sm:$0xff]  ;;  %v2656_v11 = vld [vmem:[%s4000_s1 + $0x18] sm:$0xff] }
  0x10   : > { %v2657_v12 = vld [vmem:[%s4000_s1 + $0x20] sm:$0xff]  ;;  %v2658_v14 = vld [vmem:[%s4000_s1 + $0x28] sm:$0xff]  ;;  %v2659_v15 = vld [vmem:[%s4000_s1 + $0x30] sm:$0xff] }
  0x11   : > { %615 = vmatpush.bf16.msra.mxu0 %v2691_v1  ;;  %2758 = vmatpush.bf16.msra.mxu2 %v2691_v1  ;;  %v2677_v13 = vld [vmem:[%s4000_s1 + $0xc0] sm:$0xff]  ;;  %v2678_v16 = vld [vmem:[%s4000_s1 + $0xc8] sm:$0xff]  ;;  %v2660_v17 = vld [vmem:[%s4000_s1 + $0x38] sm:$0xff] }
  0x12   : > { %v2679_v18 = vld [vmem:[%s4000_s1 + $0xd0] sm:$0xff]  ;;  %v2661_v19 = vld [vmem:[%s4000_s1 + $0x40] sm:$0xff]  ;;  %v2680_v20 = vld [vmem:[%s4000_s1 + $0xd8] sm:$0xff] }
  0x13   : > { %v2662_v24 = vld [vmem:[%s4000_s1 + $0x48] sm:$0xff]  ;;  %v2681_v25 = vld [vmem:[%s4000_s1 + $0xe0] sm:$0xff]  ;;  %v2663_v29 = vld [vmem:[%s4000_s1 + $0x50] sm:$0xff] }
  0x14   : > { %v2682_v30 = vld [vmem:[%s4000_s1 + $0xe8] sm:$0xff]  ;;  %v2664_v34 = vld [vmem:[%s4000_s1 + $0x58] sm:$0xff]  ;;  %v2683_v35 = vld [vmem:[%s4000_s1 + $0xf0] sm:$0xff] }
  0x15   : > { %616 = vmatpush.bf16.msra.mxu0 %v2690_v2  ;;  %2759 = vmatpush.bf16.msra.mxu2 %v2690_v2  ;;  %v2665_v39 = vld [vmem:[%s4000_s1 + $0x60] sm:$0xff]  ;;  %v2684_v40 = vld [vmem:[%s4000_s1 + $0xf8] sm:$0xff]  ;;  %v2666_v43 = vld [vmem:[%s4000_s1 + $0x68] sm:$0xff] }
  0x16   : > { %v2667_v48 = vld [vmem:[%s4000_s1 + $0x70] sm:$0xff]  ;;  %v2668_v53 = vld [vmem:[%s4000_s1 + $0x78] sm:$0xff]  ;;  %v2669_v60 = vld [vmem:[%s4000_s1 + $0x80] sm:$0xff] }
  0x19   : > { %617 = vmatpush.bf16.msra.mxu0 %v2689_v3  ;;  %2760 = vmatpush.bf16.msra.mxu2 %v2689_v3 }
  0x1d   : > { %618 = vmatpush.bf16.msra.mxu0 %v2688_v4  ;;  %2761 = vmatpush.bf16.msra.mxu2 %v2688_v4  ;;  %v2670_v4 = vld [vmem:[%s4000_s1 + $0x88] sm:$0xff] }
  0x21   : > { %619 = vmatpush.bf16.msra.mxu0 %v2687_v5  ;;  %2762 = vmatpush.bf16.msra.mxu2 %v2687_v5 }
  0x25   : > { %620 = vmatpush.bf16.msra.mxu0 %v2686_v6  ;;  %2763 = vmatpush.bf16.msra.mxu2 %v2686_v6 }
  0x29   : > { %621 = vmatpush.bf16.msra.mxu0 %v2685_v7  ;;  %2764 = vmatpush.bf16.msra.mxu2 %v2685_v7 }
  0x2c   : > { %622 = vmatmul.bf16.vlgmr.msra.gmra.mxu0 %v2653_v8  ;;  %742 = vmatmul.bf16.vlgmr.msra.gmra.mxu2 %v2677_v13 }
  0x3c   : > { %627 = vmatmul.bf16.gmra.mxu0 %v2654_v9  ;;  %747 = vmatmul.bf16.gmra.mxu2 %v2678_v16  ;;  %v2672_v16 = vld [vmem:[%s4000_s1 + $0x98] sm:$0xff] }
  0x4c   : > { %632 = vmatmul.bf16.gmra.mxu0 %v2655_v10  ;;  %752 = vmatmul.bf16.gmra.mxu2 %v2679_v18  ;;  %v2671_v10 = vld [vmem:[%s4000_s1 + $0x90] sm:$0xff] }
  0x5c   : > { %637 = vmatmul.bf16.gmra.mxu0 %v2656_v11  ;;  %757 = vmatmul.bf16.gmra.mxu2 %v2680_v20 }
  0x6c   : > { %642 = vmatmul.bf16.gmra.mxu0 %v2657_v12  ;;  %762 = vmatmul.bf16.gmra.mxu2 %v2681_v25 }
  0x7c   : > { %647 = vmatmul.bf16.gmra.mxu0 %v2658_v14  ;;  %767 = vmatmul.bf16.gmra.mxu2 %v2682_v30 }
  0x8c   : > { %652 = vmatmul.bf16.gmra.mxu0 %v2659_v15  ;;  %772 = vmatmul.bf16.gmra.mxu2 %v2683_v35  ;;  %v2675_v35 = vld [vmem:[%s4000_s1 + $0xb0] sm:$0xff] }
  0x9c   : > { %657 = vmatmul.bf16.gmra.mxu0 %v2660_v17  ;;  %777 = vmatmul.bf16.gmra.mxu2 %v2684_v40 }
  0xa9   : > { %v623_v21 = vpop.f32.mrf.mxu0 }
  0xac   : > { %662 = vmatmul.bf16.gmra.mxu0 %v2661_v19 }
  0xaf   : > { %v3089_v45 = vpop.f32.mrf.mxu2 }
  0xb1   : > { %v625_v22 = vpop.f32.mrf.mxu0 }
  0xb2   : > { %v3058_v23 = vpack.c.bf16 %v625_v22, %v623_v21  ;;  %v2673_v22 = vld [vmem:[%s4000_s1 + $0xa0] sm:$0xff] }
  0xb7   : > { %v3091_v47 = vpop.f32.mrf.mxu2 }
  0xb8   : > { %v807_v40 = vpack.c.bf16 %v3091_v47, %v3089_v45  ;;  %v2396_v47 = vld [vmem:[%s3169_s8] sm:$0xf] }
  0xb9   : > { %v628_v26 = vpop.f32.mrf.mxu0 }
  0xbc   : > { %667 = vmatmul.bf16.gmra.mxu0 %v2662_v24 }
  0xbf   : > { %v3096_v50 = vpop.f32.mrf.mxu2 }
  0xc1   : > { %v630_v27 = vpop.f32.mrf.mxu0 }
  0xc2   : > { %v3066_v28 = vpack.c.bf16 %v630_v27, %v628_v26 }
  0xc7   : > { %v3098_v52 = vpop.f32.mrf.mxu2 }
  0xc9   : > { %v633_v31 = vpop.f32.mrf.mxu0 }
  0xcc   : > { %672 = vmatmul.bf16.gmra.mxu0 %v2663_v29 }
  0xcf   : > { %v3103_v55 = vpop.f32.mrf.mxu2 }
  0xd1   : > { %v635_v32 = vpop.f32.mrf.mxu0 }
  0xd2   : > { %v785_v33 = vpack.c.bf16 %v635_v32, %v633_v31 }
  0xd7   : > { %v3105_v58 = vpop.f32.mrf.mxu2 }
  0xd9   : > { %v638_v36 = vpop.f32.mrf.mxu0 }
  0xdc   : > { %677 = vmatmul.bf16.gmra.mxu0 %v2664_v34 }
  0xdf   : > { %v758_v63 = vpop.f32.mrf.mxu2 }
  0xe1   : > { %v640_v37 = vpop.f32.mrf.mxu0 }
  0xe2   : > { %v786_v38 = vpack.c.bf16 %v640_v37, %v638_v36  ;;  %v809_v37 = vpack.c.bf16 %v3105_v58, %v3103_v55 }
  0xe7   : > { %v760_v3 = vpop.f32.mrf.mxu2 }
  0xe8   : > { %v810_v34 = vpack.c.bf16 %v760_v3, %v758_v63  ;;  %v2556_v3 = vld [vmem:[%s3169_s8 + $0x140] sm:$0xf] }
  0xe9   : > { %v643_v41 = vpop.f32.mrf.mxu0 }
  0xec   : > { %682 = vmatmul.bf16.gmra.mxu0 %v2665_v39 }
  0xef   : > { %v763_v6 = vpop.f32.mrf.mxu2 }
  0xf1   : > { %v645_v42 = vpop.f32.mrf.mxu0 }
  0xf2   : > { %v787_v0 = vpack.c.bf16 %v645_v42, %v643_v41  ;;  %v2676_v41 = vld [vmem:[%s4000_s1 + $0xb8] sm:$0xff] }
  0xf7   : > { %v765_v9 = vpop.f32.mrf.mxu2 }
  0xf9   : > { %v648_v44 = vpop.f32.mrf.mxu0 }
  0xfc   : > { %687 = vmatmul.bf16.gmra.mxu0 %v2666_v43  ;;  %v2524_v43 = vld [vmem:[%s3169_s8 + $0x100] sm:$0xf] }
  0xff   : > { %v768_v12 = vpop.f32.mrf.mxu2 }
 0x101   : > { %v650_v46 = vpop.f32.mrf.mxu0 }
 0x102   : > { %v788_v62 = vpack.c.bf16 %v650_v46, %v648_v44  ;;  %v2727_v44 = vld [vmem:[%s3169_s8 + $0x10c] sm:$0xf0] }
 0x103   : > { %v2525_v45 = vor.u32 %v2727_v44, %v2524_v43  ;;  %v2476_v43 = vld [vmem:[%s3169_s8 + $0xa0] sm:$0xf]  ;;  %v2715_v44 = vld [vmem:[%s3169_s8 + $0xac] sm:$0xf0] }
 0x107   : > { %v770_v15 = vpop.f32.mrf.mxu2 }
 0x108   : > { %v812_v31 = vpack.c.bf16 %v770_v15, %v768_v12  ;;  %v2572_v15 = vld [vmem:[%s3169_s8 + $0x160] sm:$0xf] }
 0x109   : > { %v653_v49 = vpop.f32.mrf.mxu0 }
 0x10c   : > { %692 = vmatmul.bf16.gmra.mxu0 %v2667_v48 }
 0x10f   : > { %v773_v18 = vpop.f32.mrf.mxu2 }
 0x111   : > { %v655_v51 = vpop.f32.mrf.mxu0 }
 0x112   : > { %v789_v59 = vpack.c.bf16 %v655_v51, %v653_v49  ;;  %v2695_v49 = vld [vmem:[%s3169_s8 + $0xc] sm:$0xf0] }
 0x117   : > { %v775_v21 = vpop.f32.mrf.mxu2 }
 0x118   : > { %v813_v30 = vpack.c.bf16 %v775_v21, %v773_v18  ;;  %v2707_v21 = vld [vmem:[%s3169_s8 + $0x6c] sm:$0xf0] }
 0x119   : > { %v658_v54 = vpop.f32.mrf.mxu0 }
 0x11c   : > { %697 = vmatmul.bf16.gmra.mxu0 %v2668_v53  ;;  %v2540_v53 = vld [vmem:[%s3169_s8 + $0x120] sm:$0xf] }
 0x11f   : > { %v778_v24 = vpop.f32.mrf.mxu2 }
 0x121   : > { %v660_v56 = vpop.f32.mrf.mxu0 }
 0x122   : > { %v790_v57 = vpack.c.bf16 %v660_v56, %v658_v54  ;;  %v2731_v54 = vld [vmem:[%s3169_s8 + $0x12c] sm:$0xf0] }
 0x123   : > { %v2541_v56 = vor.u32 %v2731_v54, %v2540_v53 }
 0x124   : > { %1231 = vmatpush.bf16.msra.mxu1 %v790_v57  ;;  %2765 = vmatpush.bf16.msra.mxu3 %v790_v57 }
 0x127   : > { %v780_v26 = vpop.f32.mrf.mxu2 }
 0x128   : > { %1232 = vmatpush.bf16.msra.mxu1 %v789_v59  ;;  %2766 = vmatpush.bf16.msra.mxu3 %v789_v59  ;;  %v814_v27 = vpack.c.bf16 %v780_v26, %v778_v24  ;;  %v2412_v59 = vld [vmem:[%s3169_s8 + $0x20] sm:$0xf] }
 0x129   : > { %v3110_v61 = vpop.f32.mrf.mxu0  ;;  %v2588_v24 = vld [vmem:[%s3169_s8 + $0x180] sm:$0xf] }
 0x12c   : > { %702 = vmatmul.bf16.gmra.mxu0 %v2669_v60  ;;  %1233 = vmatpush.bf16.msra.mxu1 %v788_v62 }
 0x12d   : > { %2767 = vmatpush.bf16.msra.mxu3 %v788_v62  ;;  %v2699_v62 = vld [vmem:[%s3169_s8 + $0x2c] sm:$0xf0] }
 0x12e   : > { %v2413_v63 = vor.u32 %v2699_v62, %v2412_v59  ;;  %v2636_v62 = vld [vmem:[%s3169_s8 + $0x1e0] sm:$0xf] }
 0x130   : > { %1234 = vmatpush.bf16.msra.mxu1 %v787_v0 }
 0x131   : > { %2768 = vmatpush.bf16.msra.mxu3 %v787_v0  ;;  %v3112_v1 = vpop.f32.mrf.mxu0 }
 0x132   : > { %v791_v2 = vpack.c.bf16 %v3112_v1, %v3110_v61  ;;  %v2697_v1 = vld [vmem:[%s3169_s8 + $0x24] sm:$0xf] }
 0x134   : > { %1235 = vmatpush.bf16.msra.mxu1 %v786_v38 }
 0x135   : > { %2769 = vmatpush.bf16.msra.mxu3 %v786_v38  ;;  %v808_v38 = vpack.c.bf16 %v3098_v52, %v3096_v50  ;;  %v2397_v50 = vor.u32 %v2695_v49, %v2396_v47  ;;  %v2620_v47 = vld [vmem:[%s3169_s8 + $0x1c0] sm:$0xf] }
 0x138   : > { %1236 = vmatpush.bf16.msra.mxu1 %v785_v33 }
 0x139   : > { %2770 = vmatpush.bf16.msra.mxu3 %v785_v33  ;;  %v3119_v5 = vpop.f32.mrf.mxu0  ;;  %v811_v33 = vpack.c.bf16 %v765_v9, %v763_v6  ;;  %v2693_v9 = vld [vmem:[%s3169_s8 + $0x4] sm:$0xf] }
 0x13c   : > { %707 = vmatmul.bf16.gmra.mxu0 %v2670_v4  ;;  %1237 = vmatpush.bf16.msra.mxu1 %v3066_v28  ;;  %v2735_v4 = vld [vmem:[%s3169_s8 + $0x14c] sm:$0xf0] }
 0x13d   : > { %2771 = vmatpush.bf16.msra.mxu3 %v3066_v28  ;;  %v2674_v28 = vld [vmem:[%s4000_s1 + $0xa8] sm:$0xff]  ;;  %v2557_v6 = vor.u32 %v2735_v4, %v2556_v3  ;;  %v2713_v4 = vld [vmem:[%s3169_s8 + $0xa4] sm:$0xf] }
 0x140   : > { %1238 = vmatpush.bf16.msra.mxu1 %v3058_v23 }
 0x141   : > { %2772 = vmatpush.bf16.msra.mxu3 %v3058_v23  ;;  %v3125_v7 = vpop.f32.mrf.mxu0 }
 0x142   : > { %v792_v8 = vpack.c.bf16 %v3125_v7, %v3119_v5  ;;  %v2703_v5 = vld [vmem:[%s3169_s8 + $0x4c] sm:$0xf0] }
 0x143   : > { %1239 = vmatmul.bf16.vlgmr.msra.gmra.mxu1 %v2397_v50  ;;  %v2709_v50 = vld [vmem:[%s3169_s8 + $0x84] sm:$0xf] }
 0x144   : > { %1498 = vmatpush.bf16.msrb.mxu1 %v814_v27  ;;  %1279 = vmatmul.bf16.vlgmr.msra.gmra.mxu3 %v2525_v45  ;;  %v2701_v27 = vld [vmem:[%s3169_s8 + $0x44] sm:$0xf]  ;;  %v2477_v45 = vor.u32 %v2715_v44, %v2476_v43  ;;  %v2696_v43 = vld [vmem:[%s3169_s8 + $0x14] sm:$0xf0] }
 0x148   : > { %1499 = vmatpush.bf16.msrb.mxu1 %v813_v30 }
 0x149   : > { %v3132_v11 = vpop.f32.mrf.mxu0 }
 0x14c   : > { %712 = vmatmul.bf16.gmra.mxu0 %v2671_v10  ;;  %1500 = vmatpush.bf16.msrb.mxu1 %v812_v31  ;;  %v2398_v10 = vld [vmem:[%s3169_s8 + $0x10] sm:$0xf0]  ;;  %v2460_v31 = vld [vmem:[%s3169_s8 + $0x80] sm:$0xf] }
 0x14d   : > { %v2401_v12 = vor.u32 %v2693_v9, %v2398_v10 }
 0x150   : > { %1501 = vmatpush.bf16.msrb.mxu1 %v811_v33  ;;  %v2711_v33 = vld [vmem:[%s3169_s8 + $0x8c] sm:$0xf0] }
 0x151   : > { %v3134_v13 = vpop.f32.mrf.mxu0 }
 0x152   : > { %v793_v14 = vpack.c.bf16 %v3134_v13, %v3132_v11  ;;  %v2428_v13 = vld [vmem:[%s3169_s8 + $0x40] sm:$0xf] }
 0x153   : > { %1244 = vmatmul.bf16.gmra.mxu1 %v2413_v63  ;;  %v2429_v7 = vor.u32 %v2703_v5, %v2428_v13  ;;  %v2755_v63 = vld [vmem:[%s3169_s8 + $0x1ec] sm:$0xf0] }
 0x154   : > { %1502 = vmatpush.bf16.msrb.mxu1 %v810_v34  ;;  %1284 = vmatmul.bf16.gmra.mxu3 %v2541_v56  ;;  %v2461_v34 = vor.u32 %v2711_v33, %v2460_v31  ;;  %v2719_v56 = vld [vmem:[%s3169_s8 + $0xcc] sm:$0xf0]  ;;  %v2637_v3 = vor.u32 %v2755_v63, %v2636_v62 }
 0x155   : > { %v2723_v13 = vld [vmem:[%s3169_s8 + $0xec] sm:$0xf0] }
 0x158   : > { %1503 = vmatpush.bf16.msrb.mxu1 %v809_v37  ;;  %v2747_v37 = vld [vmem:[%s3169_s8 + $0x1ac] sm:$0xf0] }
 0x159   : > { %v3141_v17 = vpop.f32.mrf.mxu0 }
 0x15c   : > { %717 = vmatmul.bf16.gmra.mxu0 %v2672_v16  ;;  %1504 = vmatpush.bf16.msrb.mxu1 %v808_v38  ;;  %v2739_v16 = vld [vmem:[%s3169_s8 + $0x16c] sm:$0xf0] }
 0x15d   : > { %v2573_v61 = vor.u32 %v2739_v16, %v2572_v15  ;;  %v2717_v15 = vld [vmem:[%s3169_s8 + $0xc4] sm:$0xf]  ;;  %v2494_v16 = vld [vmem:[%s3169_s8 + $0xd0] sm:$0xf0] }
 0x160   : > { %1505 = vmatpush.bf16.msrb.mxu1 %v807_v40  ;;  %v2446_v40 = vld [vmem:[%s3169_s8 + $0x70] sm:$0xf0] }
 0x161   : > { %v3143_v19 = vpop.f32.mrf.mxu0 }
 0x162   : > { %v794_v20 = vpack.c.bf16 %v3143_v19, %v3141_v17  ;;  %v2444_v19 = vld [vmem:[%s3169_s8 + $0x60] sm:$0xf] }
 0x163   : > { %1249 = vmatmul.bf16.gmra.mxu1 %v2429_v7 }
 0x164   : > { %1289 = vmatmul.bf16.gmra.mxu3 %v2557_v6  ;;  %v2478_v6 = vld [vmem:[%s3169_s8 + $0xb0] sm:$0xf0] }
 0x165   : > { %v2481_v9 = vor.u32 %v2713_v4, %v2478_v6  ;;  %v2558_v4 = vld [vmem:[%s3169_s8 + $0x150] sm:$0xf0]  ;;  %v2436_v6 = vld [vmem:[%s3169_s8 + $0x48] sm:$0xf] }
 0x169   : > { %v683_v23 = vpop.f32.mrf.mxu0 }
 0x16c   : > { %722 = vmatmul.bf16.gmra.mxu0 %v2673_v22  ;;  %v2445_v22 = vor.u32 %v2707_v21, %v2444_v19  ;;  %v2406_v21 = vld [vmem:[%s3169_s8 + $0x18] sm:$0xf0] }
 0x171   : > { %v685_v25 = vpop.f32.mrf.mxu0 }
 0x172   : > { %v795_v57 = vpack.c.bf16 %v685_v25, %v683_v23  ;;  %v2743_v25 = vld [vmem:[%s3169_s8 + $0x18c] sm:$0xf0] }
 0x173   : > { %1254 = vmatmul.bf16.gmra.mxu1 %v2445_v22  ;;  %v2589_v26 = vor.u32 %v2743_v25, %v2588_v24 }
 0x174   : > { %1294 = vmatmul.bf16.gmra.mxu3 %v2573_v61  ;;  %v2497_v61 = vor.u32 %v2717_v15, %v2494_v16  ;;  %v2470_v16 = vld [vmem:[%s3169_s8 + $0x98] sm:$0xf0] }
 0x179   : > { %v688_v29 = vpop.f32.mrf.mxu0 }
 0x17c   : > { %727 = vmatmul.bf16.gmra.mxu0 %v2674_v28  ;;  %v2430_v28 = vld [vmem:[%s3169_s8 + $0x50] sm:$0xf0] }
 0x181   : > { %v690_v32 = vpop.f32.mrf.mxu0 }
 0x182   : > { %v796_v55 = vpack.c.bf16 %v690_v32, %v688_v29  ;;  %v2433_v29 = vor.u32 %v2701_v27, %v2430_v28  ;;  %v2721_v28 = vld [vmem:[%s3169_s8 + $0xe4] sm:$0xf] }
 0x183   : > { %1259 = vmatmul.bf16.gmra.mxu1 %v2461_v34  ;;  %v2698_v34 = vld [vmem:[%s3169_s8 + $0x2c] sm:$0xf] }
 0x184   : > { %1299 = vmatmul.bf16.gmra.mxu3 %v2589_v26 }
 0x189   : > { %v693_v36 = vpop.f32.mrf.mxu0 }
 0x18c   : > { %732 = vmatmul.bf16.gmra.mxu0 %v2675_v35 }
 0x191   : > { %v695_v39 = vpop.f32.mrf.mxu0 }
 0x192   : > { %v797_v51 = vpack.c.bf16 %v695_v39, %v693_v36  ;;  %v2604_v36 = vld [vmem:[%s3169_s8 + $0x1a0] sm:$0xf]  ;;  %v2705_v39 = vld [vmem:[%s3169_s8 + $0x64] sm:$0xf] }
 0x193   : > { %v2605_v38 = vor.u32 %v2747_v37, %v2604_v36  ;;  %1264 = vmatmul.bf16.gmra.mxu1 %v2477_v45 }
 0x195   : > { %1304 = vmatmul.bf16.gmra.mxu3 %v2605_v38  ;;  %v2422_v38 = vld [vmem:[%s3169_s8 + $0x38] sm:$0xf0] }
 0x199   : > { %v698_v42 = vpop.f32.mrf.mxu0 }
 0x19c   : > { %737 = vmatmul.bf16.gmra.mxu0 %v2676_v41  ;;  %v2449_v41 = vor.u32 %v2705_v39, %v2446_v40  ;;  %v2425_v39 = vor.u32 %v2698_v34, %v2422_v38  ;;  %v2725_v40 = vld [vmem:[%s3169_s8 + $0x104] sm:$0xf]  ;;  %v2714_v34 = vld [vmem:[%s3169_s8 + $0xac] sm:$0xf]  ;;  %v2486_v38 = vld [vmem:[%s3169_s8 + $0xb8] sm:$0xf0] }
 0x1a1   : > { %v700_v46 = vpop.f32.mrf.mxu0 }
 0x1a2   : > { %v798_v48 = vpack.c.bf16 %v700_v46, %v698_v42 }
 0x1a4   : > { %1320 = vmatpush.bf16.msrb.mxu2 %v798_v48  ;;  %v2751_v48 = vld [vmem:[%s3169_s8 + $0x1cc] sm:$0xf0] }
 0x1a5   : > { %v2621_v49 = vor.u32 %v2751_v48, %v2620_v47  ;;  %v2542_v47 = vld [vmem:[%s3169_s8 + $0x130] sm:$0xf0] }
 0x1a7   : > { %1309 = vmatmul.bf16.gmra.mxu3 %v2621_v49 }
 0x1a8   : > { %1321 = vmatpush.bf16.msrb.mxu2 %v797_v51  ;;  %v2462_v51 = vld [vmem:[%s3169_s8 + $0x90] sm:$0xf0] }
 0x1a9   : > { %v3178_v52 = vpop.f32.mrf.mxu0  ;;  %v2465_v53 = vor.u32 %v2709_v50, %v2462_v51 }
 0x1ac   : > { %1322 = vmatpush.bf16.msrb.mxu2 %v796_v55  ;;  %v2492_v55 = vld [vmem:[%s3169_s8 + $0xc0] sm:$0xf] }
 0x1b0   : > { %1323 = vmatpush.bf16.msrb.mxu2 %v795_v57  ;;  %v2493_v57 = vor.u32 %v2719_v56, %v2492_v55  ;;  %v2454_v55 = vld [vmem:[%s3169_s8 + $0x78] sm:$0xf0] }
 0x1b1   : > { %v3182_v58 = vpop.f32.mrf.mxu0 }
 0x1b2   : > { %v799_v60 = vpack.c.bf16 %v3182_v58, %v3178_v52  ;;  %1269 = vmatmul.bf16.gmra.mxu1 %v2493_v57  ;;  %v2420_v52 = vld [vmem:[%s3169_s8 + $0x28] sm:$0xf]  ;;  %v2700_v58 = vld [vmem:[%s3169_s8 + $0x34] sm:$0xf0] }
 0x1b3   : > { %v2421_v50 = vor.u32 %v2700_v58, %v2420_v52  ;;  %v2502_v52 = vld [vmem:[%s3169_s8 + $0xd8] sm:$0xf0] }
 0x1b4   : > { %1324 = vmatpush.bf16.msrb.mxu2 %v794_v20 }
 0x1b7   : > { %1314 = vmatmul.bf16.gmra.mxu3 %v2637_v3  ;;  %v2733_v3 = vld [vmem:[%s3169_s8 + $0x144] sm:$0xf] }
 0x1b8   : > { %1325 = vmatpush.bf16.msrb.mxu2 %v793_v14 }
 0x1b9   : > { %v3194_v0 = vpop.f32.mrf.mxu0 }
 0x1bc   : > { %1326 = vmatpush.bf16.msrb.mxu2 %v792_v8 }
 0x1c0   : > { %1327 = vmatpush.bf16.msrb.mxu2 %v791_v2  ;;  %v2414_v2 = vld [vmem:[%s3169_s8 + $0x30] sm:$0xf0]  ;;  %v1240_v19 = vpop.f32.mrf.mxu1 }
 0x1c1   : > { %v3206_v11 = vpop.f32.mrf.mxu0  ;;  %v2417_v17 = vor.u32 %v2697_v1, %v2414_v2  ;;  %v2694_v2 = vld [vmem:[%s3169_s8 + $0xc] sm:$0xf] }
 0x1c2   : > { %v800_v14 = vpack.c.bf16 %v3206_v11, %v3194_v0  ;;  %v2409_v22 = vor.u32 %v2694_v2, %v2406_v21  ;;  %v2737_v21 = vld [vmem:[%s3169_s8 + $0x164] sm:$0xf] }
 0x1c3   : > { %1328 = vmatmul.bf16.vlgmr.msrb.gmra.mxu2 %v2401_v12  ;;  %v2508_v12 = vld [vmem:[%s3169_s8 + $0xe0] sm:$0xf] }
 0x1c4   : > { %v2509_v5 = vor.u32 %v2723_v13, %v2508_v12  ;;  %v2561_v13 = vor.u32 %v2733_v3, %v2558_v4  ;;  %v2518_v4 = vld [vmem:[%s3169_s8 + $0xf8] sm:$0xf0] }
 0x1c6   : > { %1274 = vmatmul.bf16.gmra.mxu1 %v2509_v5 }
 0x1c7   : > { %v3260_v25 = vpop.f32.mrf.mxu3 }
 0x1c8   : > { %v1242_v27 = vpop.f32.mrf.mxu1 }
 0x1c9   : > { %v3212_v8 = vpop.f32.mrf.mxu0 }
 0x1cf   : > { %v3266_v36 = vpop.f32.mrf.mxu3 }
 0x1d0   : > { %v1245_v37 = vpop.f32.mrf.mxu1 }
 0x1d1   : > { %v3218_v18 = vpop.f32.mrf.mxu0 }
 0x1d2   : > { %v801_v20 = vpack.c.bf16 %v3218_v18, %v3212_v8  ;;  %v2702_v8 = vld [vmem:[%s3169_s8 + $0x4c] sm:$0xf] }
 0x1d3   : > { %1333 = vmatmul.bf16.gmra.mxu2 %v2417_v17 }
 0x1d6   : > { %1506 = vmatmul.bf16.vlgmr.msrb.gmra.mxu1 %v2409_v22  ;;  %v2574_v22 = vld [vmem:[%s3169_s8 + $0x170] sm:$0xf0] }
 0x1d7   : > { %v3282_v44 = vpop.f32.mrf.mxu3 }
 0x1d9   : > { %v3224_v23 = vpop.f32.mrf.mxu0 }
 0x1e1   : > { %v3230_v30 = vpop.f32.mrf.mxu0 }
 0x1e2   : > { %v802_v32 = vpack.c.bf16 %v3230_v30, %v3224_v23 }
 0x1e3   : > { %1338 = vmatmul.bf16.gmra.mxu2 %v2433_v29  ;;  %v2510_v29 = vld [vmem:[%s3169_s8 + $0xf0] sm:$0xf0] }
 0x1e4   : > { %v2513_v33 = vor.u32 %v2721_v28, %v2510_v29 }
 0x1e6   : > { %1511 = vmatmul.bf16.gmra.mxu1 %v2425_v39  ;;  %v2489_v39 = vor.u32 %v2714_v34, %v2486_v38  ;;  %v2753_v34 = vld [vmem:[%s3169_s8 + $0x1e4] sm:$0xf]  ;;  %v2638_v38 = vld [vmem:[%s3169_s8 + $0x1f0] sm:$0xf0] }
 0x1e9   : > { %v3236_v35 = vpop.f32.mrf.mxu0 }
 0x1f1   : > { %v725_v42 = vpop.f32.mrf.mxu0 }
 0x1f2   : > { %v803_v31 = vpack.c.bf16 %v725_v42, %v3236_v35  ;;  %v1247_v35 = vpop.f32.mrf.mxu1  ;;  %v2404_v42 = vld [vmem:[%s3169_s8 + $0x8] sm:$0xf] }
 0x1f3   : > { %1343 = vmatmul.bf16.gmra.mxu2 %v2449_v41  ;;  %v2526_v41 = vld [vmem:[%s3169_s8 + $0x110] sm:$0xf0]  ;;  %v2405_v30 = vor.u32 %v2696_v43, %v2404_v42  ;;  %v2741_v43 = vld [vmem:[%s3169_s8 + $0x184] sm:$0xf] }
 0x1f4   : > { %v2529_v23 = vor.u32 %v2725_v40, %v2526_v41 }
 0x1f9   : > { %v728_v46 = vpop.f32.mrf.mxu0 }
 0x1fa   : > { %v1250_v18 = vpop.f32.mrf.mxu1 }
 0x201   : > { %v730_v54 = vpop.f32.mrf.mxu0 }
 0x202   : > { %v804_v26 = vpack.c.bf16 %v730_v54, %v728_v46  ;;  %v1252_v45 = vpop.f32.mrf.mxu1  ;;  %v2729_v46 = vld [vmem:[%s3169_s8 + $0x124] sm:$0xf] }
 0x203   : > { %1348 = vmatmul.bf16.gmra.mxu2 %v2465_v53  ;;  %v2545_v49 = vor.u32 %v2729_v46, %v2542_v47  ;;  %v2706_v53 = vld [vmem:[%s3169_s8 + $0x6c] sm:$0xf] }
 0x204   : > { %v2457_v56 = vor.u32 %v2706_v53, %v2454_v55  ;;  %v2484_v53 = vld [vmem:[%s3169_s8 + $0xa8] sm:$0xf] }
 0x209   : > { %v733_v59 = vpop.f32.mrf.mxu0 }
 0x20a   : > { %v1255_v54 = vpop.f32.mrf.mxu1 }
 0x211   : > { %v735_v10 = vpop.f32.mrf.mxu0 }
 0x212   : > { %v805_v24 = vpack.c.bf16 %v735_v10, %v733_v59  ;;  %v1257_v63 = vpop.f32.mrf.mxu1 }
 0x213   : > { %1353 = vmatmul.bf16.gmra.mxu2 %v2481_v9  ;;  %v2704_v9 = vld [vmem:[%s3169_s8 + $0x54] sm:$0xf0] }
 0x214   : > { %v2437_v5 = vor.u32 %v2704_v9, %v2436_v6 }
 0x219   : > { %v738_v7 = vpop.f32.mrf.mxu0 }
 0x21a   : > { %v3314_v15 = vpop.f32.mrf.mxu1 }
 0x221   : > { %v740_v1 = vpop.f32.mrf.mxu0 }
 0x222   : > { %v806_v17 = vpack.c.bf16 %v740_v1, %v738_v7  ;;  %v2710_v7 = vld [vmem:[%s3169_s8 + $0x8c] sm:$0xf] }
 0x223   : > { %1358 = vmatmul.bf16.gmra.mxu2 %v2497_v61  ;;  %v2473_v61 = vor.u32 %v2710_v7, %v2470_v16  ;;  %v2500_v7 = vld [vmem:[%s3169_s8 + $0xc8] sm:$0xf]  ;;  %v2720_v16 = vld [vmem:[%s3169_s8 + $0xd4] sm:$0xf0] }
 0x224   : > { %1409 = vmatpush.bf16.msrb.mxu3 %v806_v17 }
 0x228   : > { %1410 = vmatpush.bf16.msrb.mxu3 %v805_v24  ;;  %v2452_v24 = vld [vmem:[%s3169_s8 + $0x68] sm:$0xf] }
 0x22c   : > { %1411 = vmatpush.bf16.msrb.mxu3 %v804_v26  ;;  %v2708_v26 = vld [vmem:[%s3169_s8 + $0x74] sm:$0xf0] }
 0x230   : > { %1412 = vmatpush.bf16.msrb.mxu3 %v803_v31  ;;  %v2577_v31 = vor.u32 %v2737_v21, %v2574_v22  ;;  %v2726_v22 = vld [vmem:[%s3169_s8 + $0x10c] sm:$0xf] }
 0x233   : > { %1363 = vmatmul.bf16.gmra.mxu2 %v2513_v33  ;;  %v2453_v33 = vor.u32 %v2708_v26, %v2452_v24  ;;  %v2534_v24 = vld [vmem:[%s3169_s8 + $0x118] sm:$0xf0] }
 0x234   : > { %1413 = vmatpush.bf16.msrb.mxu3 %v802_v32 }
 0x238   : > { %1414 = vmatpush.bf16.msrb.mxu3 %v801_v20  ;;  %v2438_v20 = vld [vmem:[%s3169_s8 + $0x58] sm:$0xf0] }
 0x239   : > { %v2441_v0 = vor.u32 %v2702_v8, %v2438_v20  ;;  %v2712_v8 = vld [vmem:[%s3169_s8 + $0x94] sm:$0xf0] }
 0x23b   : > { %1516 = vmatmul.bf16.gmra.mxu1 %v2441_v0 }
 0x23c   : > { %1415 = vmatpush.bf16.msrb.mxu3 %v800_v14  ;;  %v3289_v14 = vpop.f32.mrf.mxu3 }
 0x240   : > { %1416 = vmatpush.bf16.msrb.mxu3 %v799_v60 }
 0x243   : > { %1368 = vmatmul.bf16.gmra.mxu2 %v2529_v23  ;;  %1417 = vmatmul.bf16.vlgmr.msrb.gmra.mxu3 %v2405_v30  ;;  %v2590_v23 = vld [vmem:[%s3169_s8 + $0x190] sm:$0xf0]  ;;  %v2468_v30 = vld [vmem:[%s3169_s8 + $0x88] sm:$0xf] }
 0x244   : > { %v3299_v51 = vpop.f32.mrf.mxu3  ;;  %v2593_v0 = vor.u32 %v2741_v43, %v2590_v23  ;;  %v2641_v43 = vor.u32 %v2753_v34, %v2638_v38 }
 0x246   : > { %v1329_v11 = vpop.f32.mrf.mxu2 }
 0x247   : > { %v3291_v32 = vadd.f32 %v1329_v11, %v1240_v19  ;;  %v3321_v19 = vpop.f32.mrf.mxu1  ;;  %v2469_v11 = vor.u32 %v2712_v8, %v2468_v30  ;;  %v2730_v30 = vld [vmem:[%s3169_s8 + $0x12c] sm:$0xf] }
 0x24b   : > { %1521 = vmatmul.bf16.gmra.mxu1 %v2457_v56 }
 0x24c   : > { %v3305_v62 = vpop.f32.mrf.mxu3 }
 0x24e   : > { %v1331_v60 = vpop.f32.mrf.mxu2 }
 0x24f   : > { %v3297_v48 = vadd.f32 %v1331_v60, %v1242_v27 }
 0x253   : > { %1373 = vmatmul.bf16.gmra.mxu2 %v2545_v49  ;;  %1422 = vmatmul.bf16.gmra.mxu3 %v2421_v50  ;;  %v2745_v49 = vld [vmem:[%s3169_s8 + $0x1a4] sm:$0xf]  ;;  %v2606_v50 = vld [vmem:[%s3169_s8 + $0x1b0] sm:$0xf0] }
 0x254   : > { %v3317_v1 = vpop.f32.mrf.mxu3  ;;  %v2609_v56 = vor.u32 %v2745_v49, %v2606_v50 }
 0x256   : > { %v1334_v57 = vpop.f32.mrf.mxu2 }
 0x257   : > { %v3303_v59 = vadd.f32 %v1334_v57, %v1245_v37  ;;  %v3332_v37 = vpop.f32.mrf.mxu1 }
 0x25b   : > { %1526 = vmatmul.bf16.gmra.mxu1 %v2473_v61 }
 0x25c   : > { %v3327_v28 = vpop.f32.mrf.mxu3 }
 0x25e   : > { %v1336_v10 = vpop.f32.mrf.mxu2 }
 0x25f   : > { %v3311_v12 = vadd.f32 %v1336_v10, %v1247_v35  ;;  %v3339_v42 = vpop.f32.mrf.mxu1 }
 0x263   : > { %1378 = vmatmul.bf16.gmra.mxu2 %v2561_v13  ;;  %1427 = vmatmul.bf16.gmra.mxu3 %v2437_v5  ;;  %v2749_v13 = vld [vmem:[%s3169_s8 + $0x1c4] sm:$0xf]  ;;  %v2622_v5 = vld [vmem:[%s3169_s8 + $0x1d0] sm:$0xf0] }
 0x264   : > { %v3337_v41 = vpop.f32.mrf.mxu3  ;;  %v2625_v61 = vor.u32 %v2749_v13, %v2622_v5  ;;  %v3399_v5 = vld [vmem:[%s4002_s3] ss:$0 sm:$0xff] }
 0x266   : > { %v1339_v2 = vpop.f32.mrf.mxu2 }
 0x267   : > { %v3319_v17 = vadd.f32 %v1339_v2, %v1250_v18  ;;  %v3350_v47 = vpop.f32.mrf.mxu1  ;;  %v2501_v2 = vor.u32 %v2720_v16, %v2500_v7 }
 0x26b   : > { %1531 = vmatmul.bf16.gmra.mxu1 %v2489_v39  ;;  %v2516_v39 = vld [vmem:[%s3169_s8 + $0xe8] sm:$0xf] }
 0x26c   : > { %v3348_v46 = vpop.f32.mrf.mxu3 }
 0x26e   : > { %v1341_v27 = vpop.f32.mrf.mxu2 }
 0x26f   : > { %v3329_v29 = vadd.f32 %v1341_v27, %v1252_v45  ;;  %v2718_v45 = vld [vmem:[%s3169_s8 + $0xcc] sm:$0xf]  ;;  %v3353_v60 = vpop.f32.mrf.mxu1  ;;  %v2537_v27 = vor.u32 %v2726_v22, %v2534_v24  ;;  %v2732_v22 = vld [vmem:[%s3169_s8 + $0x134] sm:$0xf0] }
 0x270   : > { %v2505_v58 = vor.u32 %v2718_v45, %v2502_v52  ;;  %v2532_v52 = vld [vmem:[%s3169_s8 + $0x108] sm:$0xf] }
 0x273   : > { %1383 = vmatmul.bf16.gmra.mxu2 %v2577_v31  ;;  %1432 = vmatmul.bf16.gmra.mxu3 %v2453_v33 }
 0x274   : > { %v3359_v55 = vpop.f32.mrf.mxu3 }
 0x276   : > { %v1344_v35 = vpop.f32.mrf.mxu2 }
 0x277   : > { %v3335_v40 = vadd.f32 %v1344_v35, %v1255_v54  ;;  %v2716_v54 = vld [vmem:[%s3169_s8 + $0xb4] sm:$0xf0]  ;;  %v3362_v3 = vpop.f32.mrf.mxu1 }
 0x278   : > { %v2485_v57 = vor.u32 %v2716_v54, %v2484_v53  ;;  %v2724_v35 = vld [vmem:[%s3169_s8 + $0xf4] sm:$0xf0]  ;;  %v2734_v53 = vld [vmem:[%s3169_s8 + $0x14c] sm:$0xf]  ;;  %v1686_v54 = vlaneseq }
 0x279   : > { %v2517_v23 = vor.u32 %v2724_v35, %v2516_v39  ;;  %v2582_v35 = vld [vmem:[%s3169_s8 + $0x178] sm:$0xf0] }
 0x27b   : > { %1536 = vmatmul.bf16.gmra.mxu1 %v2505_v58  ;;  %v2728_v58 = vld [vmem:[%s3169_s8 + $0x114] sm:$0xf0] }
 0x27c   : > { %v3365_v9 = vpop.f32.mrf.mxu3  ;;  %v2533_v50 = vor.u32 %v2728_v58, %v2532_v52 }
 0x27e   : > { %v1346_v18 = vpop.f32.mrf.mxu2 }
 0x27f   : > { %v3345_v20 = vadd.f32 %v1346_v18, %v1257_v63  ;;  %v2722_v63 = vld [vmem:[%s3169_s8 + $0xec] sm:$0xf]  ;;  %v3367_v10 = vpop.f32.mrf.mxu1  ;;  %v2550_v18 = vld [vmem:[%s3169_s8 + $0x138] sm:$0xf0] }
 0x280   : > { %v2521_v6 = vor.u32 %v2722_v63, %v2518_v4 }
 0x283   : > { %1388 = vmatmul.bf16.gmra.mxu2 %v2593_v0  ;;  %1437 = vmatmul.bf16.gmra.mxu3 %v2469_v11  ;;  %v2553_v0 = vor.u32 %v2730_v30, %v2550_v18 }
 0x284   : > { %v3373_v21 = vpop.f32.mrf.mxu3 }
 0x286   : > { %v3414_v30 = vpop.f32.mrf.mxu2 }
 0x287   : > { %v1507_v26 = vpop.f32.mrf.mxu1 }
 0x28b   : > { %1541 = vmatmul.bf16.gmra.mxu1 %v2521_v6  ;;  %v3393_v6 = vand.u32 127, %v1686_v54 }
 0x28c   : > { %v3377_v31 = vpop.f32.mrf.mxu3 }
 0x28d   : > { %vm1688_vm0 = vcmp.lt.s32.totalorder %v3393_v6, 8 }
 0x28f   : > { %v1509_v33 = vpop.f32.mrf.mxu1 }
 0x293   : > { %1393 = vmatmul.bf16.gmra.mxu2 %v2609_v56  ;;  %1442 = vmatmul.bf16.gmra.mxu3 %v2485_v57  ;;  %v2566_v57 = vld [vmem:[%s3169_s8 + $0x158] sm:$0xf0] }
 0x294   : > { %v3385_v11 = vpop.f32.mrf.mxu3  ;;  %v2569_v63 = vor.u32 %v2734_v53, %v2566_v57  ;;  %v2736_v53 = vld [vmem:[%s3169_s8 + $0x154] sm:$0xf0]  ;;  %v3429_v57 = vpop.f32.mrf.mxu2 }
 0x297   : > { %v1512_v8 = vpop.f32.mrf.mxu1 }
 0x29b   : > { %1546 = vmatmul.bf16.gmra.mxu1 %v2537_v27 }
 0x29c   : > { %v3389_v49 = vpop.f32.mrf.mxu3 }
 0x29f   : > { %v1514_v45 = vpop.f32.mrf.mxu1 }
 0x2a3   : > { %1398 = vmatmul.bf16.gmra.mxu2 %v2625_v61  ;;  %1447 = vmatmul.bf16.gmra.mxu3 %v2501_v2  ;;  %v2548_v2 = vld [vmem:[%s3169_s8 + $0x128] sm:$0xf] }
 0x2a4   : > { %v2549_v34 = vor.u32 %v2732_v22, %v2548_v2 }
 0x2ab   : > { %1551 = vmatmul.bf16.gmra.mxu1 %v2553_v0 }
 0x2b3   : > { %1403 = vmatmul.bf16.gmra.mxu2 %v2641_v43  ;;  %1452 = vmatmul.bf16.gmra.mxu3 %v2517_v23 }
 0x2b8   : > { %v1517_v56 = vpop.f32.mrf.mxu1 }
 0x2bb   : > { %1556 = vmatmul.bf16.gmra.mxu1 %v2569_v63 }
 0x2c0   : > { %v1519_v16 = vpop.f32.mrf.mxu1 }
 0x2c3   : > { %1457 = vmatmul.bf16.gmra.mxu3 %v2533_v50  ;;  %v2564_v50 = vld [vmem:[%s3169_s8 + $0x148] sm:$0xf] }
 0x2c6   : > { %v1418_v4 = vpop.f32.mrf.mxu3 }
 0x2c7   : > { %v1419_v13 = vadd.f32 %v1418_v4, %v3291_v32 }
 0x2c8   : > { %v1522_v39 = vpop.f32.mrf.mxu1 }
 0x2c9   : > { %v1508_v7 = vadd.f32 %v1507_v26, %v1419_v13  ;;  %v2738_v26 = vld [vmem:[%s3169_s8 + $0x16c] sm:$0xf]  ;;  %v2565_v13 = vor.u32 %v2736_v53, %v2564_v50  ;;  %v2614_v53 = vld [vmem:[%s3169_s8 + $0x1b8] sm:$0xf0] }
 0x2ca   : > { %v2585_v23 = vor.u32 %v2738_v26, %v2582_v35  ;;  %v2580_v35 = vld [vmem:[%s3169_s8 + $0x168] sm:$0xf] }
 0x2cb   : > { %v1587_v61 = vadd.f32 %v3399_v5, %v1508_v7 }
 0x2cc   : > { %1561 = vmatmul.bf16.gmra.mxu1 %v2585_v23 }
 0x2cd   : > { %v3407_v24 = vsel %vm1688_vm0, %v1587_v61, -inf  ;;  %v2598_v61 = vld [vmem:[%s3169_s8 + $0x198] sm:$0xf0] }
 0x2ce   : > { %v1420_v27 = vpop.f32.mrf.mxu3  ;;  %1721 = vmax.xlane.f32.xlu0 %v3407_v24 }
 0x2cf   : > { %v1421_v32 = vadd.f32 %v1420_v27, %v3297_v48 }
 0x2d0   : > { %v1524_v52 = vpop.f32.mrf.mxu1 }
 0x2d1   : > { %v1510_v38 = vadd.f32 %v1509_v33, %v1421_v32 }
 0x2d3   : > { %1462 = vmatmul.bf16.gmra.mxu3 %v2549_v34  ;;  %v1588_v43 = vadd.f32 %v3399_v5, %v1510_v38 }
 0x2d5   : > { %v3418_v18 = vsel %vm1688_vm0, %v1588_v43, -inf  ;;  %v2740_v43 = vld [vmem:[%s3169_s8 + $0x174] sm:$0xf0] }
 0x2d6   : > { %v1423_v48 = vpop.f32.mrf.mxu3  ;;  %1723 = vmax.xlane.f32.xlu0 %v3418_v18 }
 0x2d7   : > { %v1424_v33 = vadd.f32 %v1423_v48, %v3303_v59  ;;  %v2742_v59 = vld [vmem:[%s3169_s8 + $0x18c] sm:$0xf] }
 0x2d8   : > { %v2601_v22 = vor.u32 %v2742_v59, %v2598_v61 }
 0x2d9   : > { %v1513_v0 = vadd.f32 %v1512_v8, %v1424_v33  ;;  %v1527_v8 = vpop.f32.mrf.mxu1 }
 0x2db   : > { %v1589_v58 = vadd.f32 %v3399_v5, %v1513_v0  ;;  %v2581_v0 = vor.u32 %v2740_v43, %v2580_v35 }
 0x2dc   : > { %1566 = vmatmul.bf16.gmra.mxu1 %v2601_v22  ;;  %v2596_v22 = vld [vmem:[%s3169_s8 + $0x188] sm:$0xf] }
 0x2dd   : > { %v3427_v54 = vsel %vm1688_vm0, %v1589_v58, -inf  ;;  %v2746_v58 = vld [vmem:[%s3169_s8 + $0x1ac] sm:$0xf] }
 0x2de   : > { %v1425_v63 = vpop.f32.mrf.mxu3  ;;  %1725 = vmax.xlane.f32.xlu1 %v3427_v54 }
 0x2df   : > { %v1426_v4 = vadd.f32 %v1425_v63, %v3311_v12 }
 0x2e1   : > { %v1515_v7 = vadd.f32 %v1514_v45, %v1426_v4  ;;  %v3442_v45 = vpop.f32.mrf.mxu2  ;;  %v1529_v38 = vpop.f32.mrf.mxu1  ;;  %v2617_v4 = vor.u32 %v2746_v58, %v2614_v53 }
 0x2e3   : > { %1467 = vmatmul.bf16.gmra.mxu3 %v2565_v13  ;;  %v1590_v2 = vadd.f32 %v3399_v5, %v1515_v7 }
 0x2e5   : > { %v3438_v27 = vsel %vm1688_vm0, %v1590_v2, -inf }
 0x2e6   : > { %v1428_v32 = vpop.f32.mrf.mxu3  ;;  %1727 = vmax.xlane.f32.xlu1 %v3438_v27 }
 0x2e7   : > { %v1429_v12 = vadd.f32 %v1428_v32, %v3319_v17  ;;  %v2744_v32 = vld [vmem:[%s3169_s8 + $0x194] sm:$0xf0] }
 0x2e8   : > { %v2597_v35 = vor.u32 %v2744_v32, %v2596_v22 }
 0x2e9   : > { %v1518_v34 = vadd.f32 %v1517_v56, %v1429_v12  ;;  %v3454_v50 = vpop.f32.mrf.mxu2  ;;  %v1532_v56 = vpop.f32.mrf.mxu1 }
 0x2eb   : > { %v1591_v26 = vadd.f32 %v3399_v5, %v1518_v34 }
 0x2ec   : > { %1571 = vmatmul.bf16.gmra.mxu1 %v2617_v4 }
 0x2ed   : > { %v3449_v23 = vsel %vm1688_vm0, %v1591_v26, -inf }
 0x2ee   : > { %v1430_v48 = vpop.f32.mrf.mxu3  ;;  %1729 = vmax.xlane.f32.xlu2 %v3449_v23 }
 0x2ef   : > { %v1431_v33 = vadd.f32 %v1430_v48, %v3329_v29  ;;  %v2630_v48 = vld [vmem:[%s3169_s8 + $0x1d8] sm:$0xf0] }
 0x2f1   : > { %v1520_v17 = vadd.f32 %v1519_v16, %v1431_v33  ;;  %v1534_v59 = vpop.f32.mrf.mxu1  ;;  %v3465_v2 = vpop.f32.mrf.mxu2 }
 0x2f3   : > { %1472 = vmatmul.bf16.gmra.mxu3 %v2581_v0  ;;  %v1592_v63 = vadd.f32 %v3399_v5, %v1520_v17  ;;  %v1350_v17 = vadd.f32 %v3414_v30, %v3314_v15  ;;  %v1352_v15 = vadd.f32 %v3429_v57, %v3321_v19  ;;  %v1355_v19 = vadd.f32 %v3442_v45, %v3332_v37 }
 0x2f5   : > { %v3460_v13 = vsel %vm1688_vm0, %v1592_v63, -inf }
 0x2f6   : > { %v1433_v29 = vpop.f32.mrf.mxu3  ;;  %1731 = vmax.xlane.f32.xlu2 %v3460_v13 }
 0x2f7   : > { %v1434_v16 = vadd.f32 %v1433_v29, %v3335_v40  ;;  %v2750_v40 = vld [vmem:[%s3169_s8 + $0x1cc] sm:$0xf]  ;;  %v2612_v29 = vld [vmem:[%s3169_s8 + $0x1a8] sm:$0xf] }
 0x2f8   : > { %v2633_v0 = vor.u32 %v2750_v40, %v2630_v48 }
 0x2f9   : > { %v1523_v7 = vadd.f32 %v1522_v39, %v1434_v16  ;;  %v1537_v39 = vpop.f32.mrf.mxu1  ;;  %v2748_v16 = vld [vmem:[%s3169_s8 + $0x1b4] sm:$0xf0] }
 0x2fa   : > { %v2613_v32 = vor.u32 %v2748_v16, %v2612_v29 }
 0x2fb   : > { %v1593_v61 = vadd.f32 %v3399_v5, %v1523_v7 }
 0x2fc   : > { %1576 = vmatmul.bf16.gmra.mxu1 %v2633_v0 }
 0x2fd   : > { %v3471_v12 = vsel %vm1688_vm0, %v1593_v61, -inf }
 0x2fe   : > { %v1435_v34 = vpop.f32.mrf.mxu3  ;;  %1733 = vmax.xlane.f32.xlu0 %v3471_v12 }
 0x2ff   : > { %v1436_v26 = vadd.f32 %v1435_v34, %v3345_v20  ;;  %v1361_v20 = vpop.f32.mrf.mxu2 }
 0x301   : > { %v1525_v43 = vadd.f32 %v1524_v52, %v1436_v26  ;;  %v1539_v7 = vpop.f32.mrf.mxu1 }
 0x303   : > { %1477 = vmatmul.bf16.gmra.mxu3 %v2597_v35  ;;  %v1594_v33 = vadd.f32 %v3399_v5, %v1525_v43  ;;  %v2646_v35 = vld [vmem:[%s3169_s8 + $0x1f8] sm:$0xf0] }
 0x305   : > { %v3482_v58 = vsel %vm1688_vm0, %v1594_v33, -inf }
 0x306   : > { %v1438_v53 = vpop.f32.mrf.mxu3  ;;  %1735 = vmax.xlane.f32.xlu1 %v3482_v58 }
 0x307   : > { %v1439_v52 = vadd.f32 %v1438_v53, %v1350_v17  ;;  %v1364_v34 = vpop.f32.mrf.mxu2 }
 0x309   : > { %v1528_v63 = vadd.f32 %v1527_v8, %v1439_v52  ;;  %v2754_v8 = vld [vmem:[%s3169_s8 + $0x1ec] sm:$0xf]  ;;  %v2628_v52 = vld [vmem:[%s3169_s8 + $0x1c8] sm:$0xf] }
 0x30a   : > { %v2649_v40 = vor.u32 %v2754_v8, %v2646_v35 }
 0x30b   : > { %v1595_v4 = vadd.f32 %v3399_v5, %v1528_v63  ;;  %v2752_v63 = vld [vmem:[%s3169_s8 + $0x1d4] sm:$0xf0] }
 0x30c   : > { %1581 = vmatmul.bf16.gmra.mxu1 %v2649_v40  ;;  %v2629_v16 = vor.u32 %v2752_v63, %v2628_v52  ;;  %v2756_v40 = vld [vmem:[%s3169_s8 + $0x1f4] sm:$0xf0]  ;;  %v1365_v63 = vadd.f32 %v1364_v34, %v3362_v3 }
 0x30d   : > { %v3492_v30 = vsel %vm1688_vm0, %v1595_v4, -inf  ;;  %v1357_v4 = vadd.f32 %v3454_v50, %v3339_v42  ;;  %v1360_v42 = vadd.f32 %v3465_v2, %v3350_v47 }
 0x30e   : > { %v1440_v61 = vpop.f32.mrf.mxu3  ;;  %1737 = vmax.xlane.f32.xlu2 %v3492_v30 }
 0x30f   : > { %v1441_v22 = vadd.f32 %v1440_v61, %v1352_v15  ;;  %v1366_v17 = vpop.f32.mrf.mxu2 }
 0x311   : > { %v1530_v26 = vadd.f32 %v1529_v38, %v1441_v22  ;;  %v1542_v38 = vpop.f32.mrf.mxu1 }
 0x313   : > { %1482 = vmatmul.bf16.gmra.mxu3 %v2613_v32  ;;  %v1596_v43 = vadd.f32 %v3399_v5, %v1530_v26 }
 0x315   : > { %v3502_v57 = vsel %vm1688_vm0, %v1596_v43, -inf }
 0x316   : > { %v1443_v48 = vpop.f32.mrf.mxu3  ;;  %1739 = vmax.xlane.f32.xlu0 %v3502_v57 }
 0x317   : > { %v1444_v33 = vadd.f32 %v1443_v48, %v1355_v19  ;;  %v1369_v22 = vpop.f32.mrf.mxu2  ;;  %v1362_v19 = vadd.f32 %v1361_v20, %v3353_v60 }
 0x319   : > { %v1533_v0 = vadd.f32 %v1532_v56, %v1444_v33  ;;  %v1544_v56 = vpop.f32.mrf.mxu1 }
 0x31b   : > { %v1597_v53 = vadd.f32 %v3399_v5, %v1533_v0 }
 0x31d   : > { %v3512_v37 = vsel %vm1688_vm0, %v1597_v53, -inf }
 0x31e   : > { %v1445_v45 = vpop.f32.mrf.mxu3  ;;  %1741 = vmax.xlane.f32.xlu1 %v3512_v37 }
 0x31f   : > { %v1446_v29 = vadd.f32 %v1445_v45, %v1357_v4  ;;  %v1371_v47 = vpop.f32.mrf.mxu2 }
 0x321   : > { %v1535_v15 = vadd.f32 %v1534_v59, %v1446_v29  ;;  %v1547_v35 = vpop.f32.mrf.mxu1  ;;  %v2644_v59 = vld [vmem:[%s3169_s8 + $0x1e8] sm:$0xf] }
 0x322   : > { %v2645_v0 = vor.u32 %v2756_v40, %v2644_v59 }
 0x323   : > { %1487 = vmatmul.bf16.gmra.mxu3 %v2629_v16  ;;  %v1598_v61 = vadd.f32 %v3399_v5, %v1535_v15 }
 0x325   : > { %v3520_v50 = vsel %vm1688_vm0, %v1598_v61, -inf }
 0x326   : > { %v1448_v32 = vpop.f32.mrf.mxu3  ;;  %1743 = vmax.xlane.f32.xlu2 %v3520_v50 }
 0x327   : > { %v1449_v26 = vadd.f32 %v1448_v32, %v1360_v42  ;;  %v1374_v45 = vpop.f32.mrf.mxu2 }
 0x329   : > { %v1538_v8 = vadd.f32 %v1537_v39, %v1449_v26  ;;  %v1549_v52 = vpop.f32.mrf.mxu1 }
 0x32b   : > { %v1599_v43 = vadd.f32 %v3399_v5, %v1538_v8 }
 0x32d   : > { %v3529_v48 = vsel %vm1688_vm0, %v1599_v43, -inf }
 0x32e   : > { %v1450_v2 = vpop.f32.mrf.mxu3  ;;  %1745 = vmax.xlane.f32.xlu0 %v3529_v48 }
 0x32f   : > { %v1451_v33 = vadd.f32 %v1450_v2, %v1362_v19  ;;  %v1376_v26 = vpop.f32.mrf.mxu2 }
 0x331   : > { %v1540_v53 = vadd.f32 %v1539_v7, %v1451_v33  ;;  %v1367_v7 = vadd.f32 %v1366_v17, %v3367_v10  ;;  %v1552_v3 = vpop.f32.mrf.mxu1  ;;  %v1370_v10 = vadd.f32 %v1369_v22, %v3260_v25  ;;  %v1372_v22 = vadd.f32 %v1371_v47, %v3266_v36 }
 0x333   : > { %1492 = vmatmul.bf16.gmra.mxu3 %v2645_v0  ;;  %v1600_v39 = vadd.f32 %v3399_v5, %v1540_v53 }
 0x335   : > { %v3536_v60 = vsel %vm1688_vm0, %v1600_v39, -inf }
 0x336   : > { %v1453_v20 = vpop.f32.mrf.mxu3  ;;  %1747 = vmax.xlane.f32.xlu1 %v3536_v60 }
 0x337   : > { %v1454_v4 = vadd.f32 %v1453_v20, %v1365_v63  ;;  %v1379_v53 = vpop.f32.mrf.mxu2 }
 0x339   : > { %v1543_v29 = vadd.f32 %v1542_v38, %v1454_v4  ;;  %v1554_v40 = vpop.f32.mrf.mxu1 }
 0x33b   : > { %v1601_v16 = vadd.f32 %v3399_v5, %v1543_v29 }
 0x33d   : > { %v3543_v15 = vsel %vm1688_vm0, %v1601_v16, -inf }
 0x33e   : > { %v1455_v61 = vpop.f32.mrf.mxu3  ;;  %1749 = vmax.xlane.f32.xlu2 %v3543_v15 }
 0x33f   : > { %v1456_v34 = vadd.f32 %v1455_v61, %v1367_v7  ;;  %v1375_v61 = vadd.f32 %v1374_v45, %v3282_v44 }
 0x341   : > { %v1545_v42 = vadd.f32 %v1544_v56, %v1456_v34  ;;  %v1722_v32 = vpop.xlane.xlu0 %1721  ;;  %v1557_v16 = vpop.f32.mrf.mxu1 }
 0x342   : > { %v3547_v8 = vsub.f32 %v3407_v24, %v1722_v32 }
 0x343   : > { %v1602_v38 = vadd.f32 %v3399_v5, %v1545_v42 }
 0x344   : > { %v1817_v43 = vmul.f32 1.442695, %v3547_v8 }
 0x345   : > { %v3554_v17 = vsel %vm1688_vm0, %v1602_v38, -inf }
 0x346   : > { %2798 = vpow2.f32 %v1817_v43  ;;  %v1458_v59 = vpop.f32.mrf.mxu3  ;;  %1751 = vmax.xlane.f32.xlu0 %v3554_v17 }
 0x347   : > { %v1459_v56 = vadd.f32 %v1458_v59, %v1370_v10 }
 0x349   : > { %v1548_v19 = vadd.f32 %v1547_v35, %v1459_v56  ;;  %v1724_v2 = vpop.xlane.xlu0 %1723  ;;  %v1559_v56 = vpop.f32.mrf.mxu1 }
 0x34a   : > { %v3558_v24 = vsub.f32 %v3418_v18, %v1724_v2 }
 0x34b   : > { %v1603_v33 = vadd.f32 %v3399_v5, %v1548_v19  ;;  %v1377_v19 = vadd.f32 %v1376_v26, %v3289_v14 }
 0x34c   : > { %v2799_v0 = vpop.eup %2798  ;;  %v1819_v25 = vmul.f32 1.442695, %v3558_v24 }
 0x34d   : > { %v3565_v39 = vsel %vm1688_vm0, %v1603_v33, -inf  ;;  %v1881_v63 = vsel %vm1688_vm0, %v2799_v0, 0.0 }
 0x34e   : > { %2800 = vpow2.f32 %v1819_v25  ;;  %v1460_v35 = vpop.f32.mrf.mxu3  ;;  %1753 = vmax.xlane.f32.xlu1 %v3565_v39  ;;  %1913 = vadd.xlane.f32.xlu2 %v1881_v63 }
 0x34f   : > { %v1461_v18 = vadd.f32 %v1460_v35, %v1372_v22 }
 0x351   : > { %v1550_v20 = vadd.f32 %v1549_v52, %v1461_v18  ;;  %v1726_v4 = vpop.xlane.xlu1 %1725  ;;  %v1381_v52 = vpop.f32.mrf.mxu2  ;;  %v1380_v18 = vadd.f32 %v1379_v53, %v3299_v51 }
 0x352   : > { %v3571_v29 = vsub.f32 %v3427_v54, %v1726_v4 }
 0x353   : > { %v1604_v36 = vadd.f32 %v3399_v5, %v1550_v20 }
 0x354   : > { %v2801_v47 = vpop.eup %2800  ;;  %v1821_v7 = vmul.f32 1.442695, %v3571_v29 }
 0x355   : > { %v3578_v34 = vsel %vm1688_vm0, %v1604_v36, -inf  ;;  %v1882_v42 = vsel %vm1688_vm0, %v2801_v47, 0.0 }
 0x356   : > { %2802 = vpow2.f32 %v1821_v7  ;;  %v1463_v32 = vpop.f32.mrf.mxu3  ;;  %1755 = vmax.xlane.f32.xlu2 %v3578_v34  ;;  %1915 = vadd.xlane.f32.xlu0 %v1882_v42 }
 0x357   : > { %v1464_v54 = vadd.f32 %v1463_v32, %v1375_v61 }
 0x359   : > { %v1553_v38 = vadd.f32 %v1552_v3, %v1464_v54  ;;  %v1728_v43 = vpop.xlane.xlu1 %1727  ;;  %v1384_v0 = vpop.f32.mrf.mxu2  ;;  %v1382_v54 = vadd.f32 %v1381_v52, %v3305_v62 }
 0x35a   : > { %v3584_v10 = vsub.f32 %v3438_v27, %v1728_v43 }
 0x35b   : > { %v1605_v44 = vadd.f32 %v3399_v5, %v1553_v38 }
 0x35c   : > { %v2803_v45 = vpop.eup %2802  ;;  %v1823_v59 = vmul.f32 1.442695, %v3584_v10 }
 0x35d   : > { %v1883_v2 = vsel %vm1688_vm0, %v2803_v45, 0.0  ;;  %v3593_v33 = vsel %vm1688_vm0, %v1605_v44, -inf }
 0x35e   : > { %2804 = vpow2.f32 %v1823_v59  ;;  %v1465_v3 = vpop.f32.mrf.mxu3  ;;  %1917 = vadd.xlane.f32.xlu1 %v1883_v2  ;;  %1757 = vmax.xlane.f32.xlu0 %v3593_v33 }
 0x35f   : > { %v1466_v27 = vadd.f32 %v1465_v3, %v1377_v19 }
 0x361   : > { %v1555_v25 = vadd.f32 %v1554_v40, %v1466_v27  ;;  %v1730_v22 = vpop.xlane.xlu2 %1729  ;;  %v1386_v61 = vpop.f32.mrf.mxu2  ;;  %v1385_v27 = vadd.f32 %v1384_v0, %v3317_v1 }
 0x362   : > { %v3597_v63 = vsub.f32 %v3449_v23, %v1730_v22  ;;  %v1562_v23 = vpop.f32.mrf.mxu1 }
 0x363   : > { %v1606_v14 = vadd.f32 %v3399_v5, %v1555_v25 }
 0x364   : > { %v2805_v26 = vpop.eup %2804  ;;  %v1825_v35 = vmul.f32 1.442695, %v3597_v63 }
 0x365   : > { %v3604_v20 = vsel %vm1688_vm0, %v1606_v14, -inf  ;;  %v1884_v4 = vsel %vm1688_vm0, %v2805_v26, 0.0 }
 0x366   : > { %2806 = vpow2.f32 %v1825_v35  ;;  %v1468_v40 = vpop.f32.mrf.mxu3  ;;  %1759 = vmax.xlane.f32.xlu1 %v3604_v20  ;;  %1919 = vadd.xlane.f32.xlu2 %v1884_v4 }
 0x367   : > { %v1469_v36 = vadd.f32 %v1468_v40, %v1380_v18  ;;  %v1387_v40 = vadd.f32 %v1386_v61, %v3327_v28 }
 0x369   : > { %v1558_v47 = vadd.f32 %v1557_v16, %v1469_v36  ;;  %v1732_v7 = vpop.xlane.xlu2 %1731  ;;  %v1389_v2 = vpop.f32.mrf.mxu2 }
 0x36a   : > { %v3610_v42 = vsub.f32 %v3460_v13, %v1732_v7  ;;  %v1564_v44 = vpop.f32.mrf.mxu1 }
 0x36b   : > { %v1607_v51 = vadd.f32 %v3399_v5, %v1558_v47 }
 0x36c   : > { %v2807_v53 = vpop.eup %2806  ;;  %v1827_v32 = vmul.f32 1.442695, %v3610_v42 }
 0x36d   : > { %v3617_v38 = vsel %vm1688_vm0, %v1607_v51, -inf  ;;  %v1885_v43 = vsel %vm1688_vm0, %v2807_v53, 0.0 }
 0x36e   : > { %2808 = vpow2.f32 %v1827_v32  ;;  %v1470_v16 = vpop.f32.mrf.mxu3  ;;  %1761 = vmax.xlane.f32.xlu2 %v3617_v38  ;;  %1921 = vadd.xlane.f32.xlu0 %v1885_v43 }
 0x36f   : > { %v1471_v13 = vadd.f32 %v1470_v16, %v1382_v54  ;;  %v1390_v16 = vadd.f32 %v1389_v2, %v3337_v41 }
 0x371   : > { %v1560_v45 = vadd.f32 %v1559_v56, %v1471_v13  ;;  %v1734_v59 = vpop.xlane.xlu0 %1733 }
 0x372   : > { %v3623_v19 = vsub.f32 %v3471_v12, %v1734_v59  ;;  %v1567_v18 = vpop.f32.mrf.mxu1 }
 0x373   : > { %v1608_v62 = vadd.f32 %v3399_v5, %v1560_v45 }
 0x374   : > { %v2809_v52 = vpop.eup %2808  ;;  %v1829_v3 = vmul.f32 1.442695, %v3623_v19 }
 0x375   : > { %v1886_v25 = vsel %vm1688_vm0, %v2809_v52, 0.0  ;;  %v3632_v22 = vsel %vm1688_vm0, %v1608_v62, -inf }
 0x376   : > { %2810 = vpow2.f32 %v1829_v3  ;;  %v1473_v56 = vpop.f32.mrf.mxu3  ;;  %1923 = vadd.xlane.f32.xlu1 %v1886_v25  ;;  %1763 = vmax.xlane.f32.xlu0 %v3632_v22 }
 0x377   : > { %v1474_v12 = vadd.f32 %v1473_v56, %v1385_v27 }
 0x379   : > { %v1563_v14 = vadd.f32 %v1562_v23, %v1474_v12  ;;  %v1736_v26 = vpop.xlane.xlu1 %1735  ;;  %v1391_v23 = vpop.f32.mrf.mxu2 }
 0x37a   : > { %v3636_v35 = vsub.f32 %v3482_v58, %v1736_v26  ;;  %v1569_v43 = vpop.f32.mrf.mxu1  ;;  %v1392_v25 = vadd.f32 %v1391_v23, %v3348_v46 }
 0x37b   : > { %v1609_v1 = vadd.f32 %v3399_v5, %v1563_v14 }
 0x37c   : > { %v2811_v0 = vpop.eup %2810  ;;  %v1831_v4 = vmul.f32 1.442695, %v3636_v35 }
 0x37d   : > { %v3643_v36 = vsel %vm1688_vm0, %v1609_v1, -inf  ;;  %v1887_v47 = vsel %vm1688_vm0, %v2811_v0, 0.0 }
 0x37e   : > { %2812 = vpow2.f32 %v1831_v4  ;;  %v1475_v7 = vpop.f32.mrf.mxu3  ;;  %1765 = vmax.xlane.f32.xlu1 %v3643_v36  ;;  %1925 = vadd.xlane.f32.xlu2 %v1887_v47 }
 0x37f   : > { %v1476_v58 = vadd.f32 %v1475_v7, %v1387_v40 }
 0x381   : > { %v1565_v51 = vadd.f32 %v1564_v44, %v1476_v58  ;;  %v1738_v53 = vpop.xlane.xlu2 %1737  ;;  %v1394_v59 = vpop.f32.mrf.mxu2 }
 0x382   : > { %v3649_v32 = vsub.f32 %v3492_v30, %v1738_v53  ;;  %v1395_v23 = vadd.f32 %v1394_v59, %v3359_v55 }
 0x383   : > { %v1610_v28 = vadd.f32 %v3399_v5, %v1565_v51 }
 0x384   : > { %v2813_v61 = vpop.eup %2812  ;;  %v1833_v54 = vmul.f32 1.442695, %v3649_v32 }
 0x385   : > { %v1888_v13 = vsel %vm1688_vm0, %v2813_v61, 0.0  ;;  %v3658_v45 = vsel %vm1688_vm0, %v1610_v28, -inf }
 0x386   : > { %2814 = vpow2.f32 %v1833_v54  ;;  %v1478_v44 = vpop.f32.mrf.mxu3  ;;  %1927 = vadd.xlane.f32.xlu0 %v1888_v13  ;;  %1767 = vmax.xlane.f32.xlu2 %v3658_v45 }
 0x387   : > { %v1479_v30 = vadd.f32 %v1478_v44, %v1390_v16 }
 0x389   : > { %v1568_v62 = vadd.f32 %v1567_v18, %v1479_v30  ;;  %v1740_v52 = vpop.xlane.xlu0 %1739  ;;  %v1396_v0 = vpop.f32.mrf.mxu2 }
 0x38a   : > { %v3662_v3 = vsub.f32 %v3502_v57, %v1740_v52  ;;  %v1572_v57 = vpop.f32.mrf.mxu1  ;;  %v1397_v55 = vadd.f32 %v1396_v0, %v3365_v9 }
 0x38b   : > { %v1611_v41 = vadd.f32 %v3399_v5, %v1568_v62 }
 0x38c   : > { %v2815_v2 = vpop.eup %2814  ;;  %v1835_v27 = vmul.f32 1.442695, %v3662_v3 }
 0x38d   : > { %v1889_v56 = vsel %vm1688_vm0, %v2815_v2, 0.0  ;;  %v3671_v12 = vsel %vm1688_vm0, %v1611_v41, -inf }
 0x38e   : > { %2816 = vpow2.f32 %v1835_v27  ;;  %v1480_v14 = vpop.f32.mrf.mxu3  ;;  %1929 = vadd.xlane.f32.xlu1 %v1889_v56  ;;  %1769 = vmax.xlane.f32.xlu0 %v3671_v12 }
 0x38f   : > { %v1481_v26 = vadd.f32 %v1480_v14, %v1392_v25 }
 0x391   : > { %v1570_v18 = vadd.f32 %v1569_v43, %v1481_v26  ;;  %v1742_v1 = vpop.xlane.xlu1 %1741  ;;  %v1399_v43 = vpop.f32.mrf.mxu2 }
 0x392   : > { %v3675_v4 = vsub.f32 %v3512_v37, %v1742_v1  ;;  %v1574_v53 = vpop.f32.mrf.mxu1  ;;  %v1400_v41 = vadd.f32 %v1399_v43, %v3373_v21 }
 0x393   : > { %v1612_v46 = vadd.f32 %v3399_v5, %v1570_v18 }
 0x394   : > { %v2817_v40 = vpop.eup %2816  ;;  %v1837_v47 = vmul.f32 1.442695, %v3675_v4 }
 0x395   : > { %v3682_v7 = vsel %vm1688_vm0, %v1612_v46, -inf  ;;  %v1890_v58 = vsel %vm1688_vm0, %v2817_v40, 0.0 }
 0x396   : > { %2818 = vpow2.f32 %v1837_v47  ;;  %v1483_v51 = vpop.f32.mrf.mxu3  ;;  %1771 = vmax.xlane.f32.xlu1 %v3682_v7  ;;  %1931 = vadd.xlane.f32.xlu2 %v1890_v58 }
 0x397   : > { %v1484_v37 = vadd.f32 %v1483_v51, %v1395_v23 }
 0x399   : > { %v1573_v28 = vadd.f32 %v1572_v57, %v1484_v37  ;;  %v1401_v2 = vpop.f32.mrf.mxu2  ;;  %v1744_v23 = vpop.xlane.xlu2 %1743 }
 0x39a   : > { %v1577_v62 = vpop.f32.mrf.mxu1  ;;  %v1402_v1 = vadd.f32 %v1401_v2, %v3377_v31 }
 0x39b   : > { %v1613_v61 = vadd.f32 %v3399_v5, %v1573_v28 }
 0x39c   : > { %v2819_v54 = vpop.eup %2818 }
 0x39d   : > { %v1891_v16 = vsel %vm1688_vm0, %v2819_v54, 0.0  ;;  %v3693_v13 = vsel %vm1688_vm0, %v1613_v61, -inf }
 0x39e   : > { %v1485_v44 = vpop.f32.mrf.mxu3  ;;  %1933 = vadd.xlane.f32.xlu0 %v1891_v16  ;;  %1773 = vmax.xlane.f32.xlu2 %v3693_v13 }
 0x39f   : > { %v1486_v30 = vadd.f32 %v1485_v44, %v1397_v55 }
 0x3a1   : > { %v1575_v59 = vadd.f32 %v1574_v53, %v1486_v30  ;;  %v1746_v56 = vpop.xlane.xlu0 %1745  ;;  %v1404_v40 = vpop.f32.mrf.mxu2 }
 0x3a2   : > { %v3705_v26 = vsub.f32 %v3529_v48, %v1746_v56  ;;  %v1579_v18 = vpop.f32.mrf.mxu1  ;;  %v1405_v31 = vadd.f32 %v1404_v40, %v3385_v11 }
 0x3a3   : > { %v1614_v52 = vadd.f32 %v3399_v5, %v1575_v59 }
 0x3a4   : > { %v1841_v47 = vmul.f32 1.442695, %v3705_v26 }
 0x3a5   : > { %v3700_v9 = vsel %vm1688_vm0, %v1614_v52, -inf }
 0x3a6   : > { %v1488_v27 = vpop.f32.mrf.mxu3  ;;  %1775 = vmax.xlane.f32.xlu0 %v3700_v9  ;;  %2820 = vpow2.f32 %v1841_v47 }
 0x3a7   : > { %v1489_v25 = vadd.f32 %v1488_v27, %v1400_v41 }
 0x3a9   : > { %v1578_v14 = vadd.f32 %v1577_v62, %v1489_v25  ;;  %v1748_v58 = vpop.xlane.xlu1 %1747  ;;  %v1406_v59 = vpop.f32.mrf.mxu2  ;;  %v3730_v62 = vsub.f32 %v3520_v50, %v1744_v23 }
 0x3aa   : > { %v3716_v37 = vsub.f32 %v3536_v60, %v1748_v58  ;;  %v1582_v61 = vpop.f32.mrf.mxu1  ;;  %v1407_v41 = vadd.f32 %v1406_v59, %v3389_v49 }
 0x3ab   : > { %v1615_v57 = vadd.f32 %v3399_v5, %v1578_v14  ;;  %v1839_v50 = vmul.f32 1.442695, %v3730_v62 }
 0x3ac   : > { %v1843_v43 = vmul.f32 1.442695, %v3716_v37  ;;  %v2821_v30 = vpop.eup %2820 }
 0x3ad   : > { %v3710_v21 = vsel %vm1688_vm0, %v1615_v57, -inf  ;;  %v1893_v27 = vsel %vm1688_vm0, %v2821_v30, 0.0 }
 0x3ae   : > { %v1490_v0 = vpop.f32.mrf.mxu3  ;;  %1777 = vmax.xlane.f32.xlu1 %v3710_v21  ;;  %2822 = vpow2.f32 %v1843_v43 }
 0x3af   : > { %v1491_v46 = vadd.f32 %v1490_v0, %v1402_v1 }
 0x3b1   : > { %v1580_v51 = vadd.f32 %v1579_v18, %v1491_v46  ;;  %v1750_v55 = vpop.xlane.xlu2 %1749 }
 0x3b2   : > { %v1584_v56 = vpop.f32.mrf.mxu1  ;;  %v3747_v40 = vsub.f32 %v3543_v15, %v1750_v55 }
 0x3b3   : > { %v1616_v48 = vadd.f32 %v3399_v5, %v1580_v51 }
 0x3b4   : > { %v2823_v49 = vpop.eup %2822  ;;  %v1845_v15 = vmul.f32 1.442695, %v3747_v40 }
 0x3b5   : > { %v3721_v53 = vsel %vm1688_vm0, %v1616_v48, -inf  ;;  %v1894_v58 = vsel %vm1688_vm0, %v2823_v49, 0.0 }
 0x3b6   : > { %v1493_v28 = vpop.f32.mrf.mxu3  ;;  %1779 = vmax.xlane.f32.xlu2 %v3721_v53 }
 0x3b7   : > { %v1494_v54 = vadd.f32 %v1493_v28, %v1405_v31 }
 0x3b9   : > { %v1583_v16 = vadd.f32 %v1582_v61, %v1494_v54  ;;  %v1752_v44 = vpop.xlane.xlu0 %1751 }
 0x3ba   : > { %v3726_v60 = vsub.f32 %v3554_v17, %v1752_v44 }
 0x3bb   : > { %v1617_v11 = vadd.f32 %v3399_v5, %v1583_v16 }
 0x3bc   : > { %v1847_v52 = vmul.f32 1.442695, %v3726_v60 }
 0x3bd   : > { %v3736_v2 = vsel %vm1688_vm0, %v1617_v11, -inf }
 0x3be   : > { %2824 = vpow2.f32 %v1847_v52  ;;  %v1495_v17 = vpop.f32.mrf.mxu3  ;;  %1781 = vmax.xlane.f32.xlu0 %v3736_v2  ;;  %1937 = vadd.xlane.f32.xlu2 %v1893_v27 }
 0x3bf   : > { %v1496_v25 = vadd.f32 %v1495_v17, %v1407_v41 }
 0x3c1   : > { %v1585_v14 = vadd.f32 %v1584_v56, %v1496_v25  ;;  %v1754_v57 = vpop.xlane.xlu1 %1753  ;;  %v1914_v18 = vpop.xlane.xlu2 %1913 }
 0x3c2   : > { %v3743_v1 = vsub.f32 %v3565_v39, %v1754_v57  ;;  %2826 = vlog2.f32 %v1914_v18 }
 0x3c3   : > { %v1618_v0 = vadd.f32 %v3399_v5, %v1585_v14  ;;  %2828 = vpow2.f32 %v1839_v50 }
 0x3c4   : > { %v2825_v46 = vpop.eup %2824  ;;  %v1849_v47 = vmul.f32 1.442695, %v3743_v1 }
 0x3c5   : > { %v3752_v23 = vsel %vm1688_vm0, %v1618_v0, -inf  ;;  %v1896_v39 = vsel %vm1688_vm0, %v2825_v46, 0.0 }
 0x3c6   : > { %2830 = vpow2.f32 %v1849_v47  ;;  %1783 = vmax.xlane.f32.xlu1 %v3752_v23  ;;  %1939 = vadd.xlane.f32.xlu0 %v1894_v58 }
 0x3c7   : > { %1943 = vadd.xlane.f32.xlu2 %v1896_v39 }
 0x3c8   : > { %v2827_v5 = vpop.eup %2826 }
 0x3c9   : > { %v1978_v51 = vmul.f32 0.6931472, %v2827_v5  ;;  %v1756_v48 = vpop.xlane.xlu2 %1755  ;;  %v1916_v31 = vpop.xlane.xlu0 %1915 }
 0x3ca   : > { %v2829_v28 = vpop.eup %2828  ;;  %2832 = vlog2.f32 %v1916_v31  ;;  %v3768_v43 = vsub.f32 %v3578_v34, %v1756_v48 }
 0x3cb   : > { %v2041_v61 = vsub.f32 %v3547_v8, %v1978_v51  ;;  %2834 = vpow2.f32 %v1845_v15  ;;  %v1892_v16 = vsel %vm1688_vm0, %v2829_v28, 0.0 }
 0x3cc   : > { %v2831_v54 = vpop.eup %2830  ;;  %v1851_v8 = vmul.f32 1.442695, %v3768_v43 }
 0x3cd   : > { %v2073_v55 = vsel %vm1688_vm0, %v2041_v61, 0.0  ;;  %v1897_v44 = vsel %vm1688_vm0, %v2831_v54, 0.0 }
 0x3ce   : > { %2105 = vst [vmem:[%s3764_s20] sm:$0xff] %v2073_v55  ;;  %1935 = vadd.xlane.f32.xlu1 %v1892_v16  ;;  %1945 = vadd.xlane.f32.xlu0 %v1897_v44 }
 0x3d0   : > { %v2833_v30 = vpop.eup %2832 }
 0x3d1   : > { %v1980_v59 = vmul.f32 0.6931472, %v2833_v30  ;;  %v1918_v11 = vpop.xlane.xlu1 %1917  ;;  %v1758_v34 = vpop.xlane.xlu0 %1757 }
 0x3d2   : > { %v2835_v52 = vpop.eup %2834  ;;  %2836 = vlog2.f32 %v1918_v11  ;;  %v3779_v41 = vsub.f32 %v3593_v33, %v1758_v34 }
 0x3d3   : > { %v2042_v27 = vsub.f32 %v3558_v24, %v1980_v59  ;;  %2838 = vpow2.f32 %v1851_v8  ;;  %v1895_v50 = vsel %vm1688_vm0, %v2835_v52, 0.0 }
 0x3d4   : > { %v1853_v17 = vmul.f32 1.442695, %v3779_v41 }
 0x3d5   : > { %v2074_v25 = vsel %vm1688_vm0, %v2042_v27, 0.0 }
 0x3d6   : > { %2106 = vst [vmem:[%s3764_s20 + $0x8] sm:$0xff] %v2074_v25  ;;  %2840 = vpow2.f32 %v1853_v17  ;;  %1941 = vadd.xlane.f32.xlu1 %v1895_v50 }
 0x3d8   : > { %v2837_v56 = vpop.eup %2836 }
 0x3d9   : > { %v1982_v14 = vmul.f32 0.6931472, %v2837_v56  ;;  %v1760_v57 = vpop.xlane.xlu1 %1759  ;;  %v1920_v33 = vpop.xlane.xlu2 %1919 }
 0x3da   : > { %v2839_v18 = vpop.eup %2838  ;;  %v3789_v24 = vsub.f32 %v3604_v20, %v1760_v57  ;;  %2842 = vlog2.f32 %v1920_v33 }
 0x3db   : > { %v2043_v49 = vsub.f32 %v3571_v29, %v1982_v14  ;;  %v1898_v58 = vsel %vm1688_vm0, %v2839_v18, 0.0 }
 0x3dc   : > { %v2841_v0 = vpop.eup %2840  ;;  %v1855_v46 = vmul.f32 1.442695, %v3789_v24 }
 0x3dd   : > { %v2075_v47 = vsel %vm1688_vm0, %v2043_v49, 0.0  ;;  %v1899_v39 = vsel %vm1688_vm0, %v2841_v0, 0.0 }
 0x3de   : > { %2107 = vst [vmem:[%s3764_s20 + $0x10] sm:$0xff] %v2075_v47  ;;  %2844 = vpow2.f32 %v1855_v46  ;;  %1947 = vadd.xlane.f32.xlu1 %v1898_v58  ;;  %1949 = vadd.xlane.f32.xlu2 %v1899_v39 }
 0x3e0   : > { %v2843_v20 = vpop.eup %2842 }
 0x3e1   : > { %v1984_v5 = vmul.f32 0.6931472, %v2843_v20  ;;  %v1762_v29 = vpop.xlane.xlu2 %1761  ;;  %v1922_v15 = vpop.xlane.xlu0 %1921 }
 0x3e2   : > { %v3801_v51 = vsub.f32 %v3617_v38, %v1762_v29  ;;  %2846 = vlog2.f32 %v1922_v15 }
 0x3e3   : > { %v2044_v48 = vsub.f32 %v3584_v10, %v1984_v5 }
 0x3e4   : > { %v2845_v31 = vpop.eup %2844  ;;  %v1857_v28 = vmul.f32 1.442695, %v3801_v51 }
 0x3e5   : > { %v2076_v61 = vsel %vm1688_vm0, %v2044_v48, 0.0  ;;  %v1900_v54 = vsel %vm1688_vm0, %v2845_v31, 0.0 }
 0x3e6   : > { %2108 = vst [vmem:[%s3764_s20 + $0x18] sm:$0xff] %v2076_v61  ;;  %2848 = vpow2.f32 %v1857_v28  ;;  %1951 = vadd.xlane.f32.xlu0 %v1900_v54 }
 0x3e8   : > { %v2847_v55 = vpop.eup %2846 }
 0x3e9   : > { %v1986_v16 = vmul.f32 0.6931472, %v2847_v55  ;;  %v1924_v38 = vpop.xlane.xlu1 %1923  ;;  %v1764_v44 = vpop.xlane.xlu0 %1763 }
 0x3ea   : > { %2850 = vlog2.f32 %v1924_v38  ;;  %v3811_v10 = vsub.f32 %v3632_v22, %v1764_v44 }
 0x3eb   : > { %v2045_v30 = vsub.f32 %v3597_v63, %v1986_v16 }
 0x3ec   : > { %v2849_v8 = vpop.eup %2848  ;;  %v1859_v59 = vmul.f32 1.442695, %v3811_v10 }
 0x3ed   : > { %v2077_v11 = vsel %vm1688_vm0, %v2045_v30, 0.0  ;;  %v1901_v34 = vsel %vm1688_vm0, %v2849_v8, 0.0 }
 0x3ee   : > { %2109 = vst [vmem:[%s3764_s20 + $0x20] sm:$0xff] %v2077_v11  ;;  %2852 = vpow2.f32 %v1859_v59  ;;  %1953 = vadd.xlane.f32.xlu1 %v1901_v34 }
 0x3f0   : > { %v2851_v52 = vpop.eup %2850 }
 0x3f1   : > { %v1988_v27 = vmul.f32 0.6931472, %v2851_v52  ;;  %v1766_v17 = vpop.xlane.xlu1 %1765  ;;  %v1926_v22 = vpop.xlane.xlu2 %1925 }
 0x3f2   : > { %v3821_v25 = vsub.f32 %v3643_v36, %v1766_v17  ;;  %2854 = vlog2.f32 %v1926_v22 }
 0x3f3   : > { %v2046_v63 = vsub.f32 %v3610_v42, %v1988_v27 }
 0x3f4   : > { %v2853_v50 = vpop.eup %2852  ;;  %v1861_v56 = vmul.f32 1.442695, %v3821_v25 }
 0x3f5   : > { %v2078_v14 = vsel %vm1688_vm0, %v2046_v63, 0.0  ;;  %v1902_v57 = vsel %vm1688_vm0, %v2853_v50, 0.0 }
 0x3f6   : > { %2110 = vst [vmem:[%s3764_s20 + $0x28] sm:$0xff] %v2078_v14  ;;  %2856 = vpow2.f32 %v1861_v56  ;;  %1955 = vadd.xlane.f32.xlu2 %v1902_v57 }
 0x3f8   : > { %v2855_v33 = vpop.eup %2854 }
 0x3f9   : > { %v1990_v18 = vmul.f32 0.6931472, %v2855_v33  ;;  %v1768_v36 = vpop.xlane.xlu2 %1767  ;;  %v1928_v49 = vpop.xlane.xlu0 %1927 }
 0x3fa   : > { %v3831_v0 = vsub.f32 %v3658_v45, %v1768_v36  ;;  %2858 = vlog2.f32 %v1928_v49 }
 0x3fb   : > { %v2047_v42 = vsub.f32 %v3623_v19, %v1990_v18 }
 0x3fc   : > { %v2857_v46 = vpop.eup %2856  ;;  %v1863_v47 = vmul.f32 1.442695, %v3831_v0 }
 0x3fd   : > { %v2079_v58 = vsel %vm1688_vm0, %v2047_v42, 0.0  ;;  %v1903_v39 = vsel %vm1688_vm0, %v2857_v46, 0.0 }
 0x3fe   : > { %2111 = vst [vmem:[%s3764_s20 + $0x30] sm:$0xff] %v2079_v58  ;;  %2860 = vpow2.f32 %v1863_v47  ;;  %1957 = vadd.xlane.f32.xlu0 %v1903_v39 }
 0x400   : > { %v2859_v20 = vpop.eup %2858 }
 0x401   : > { %v1992_v5 = vmul.f32 0.6931472, %v2859_v20  ;;  %v1930_v45 = vpop.xlane.xlu1 %1929  ;;  %v1770_v29 = vpop.xlane.xlu0 %1769 }
 0x402   : > { %2862 = vlog2.f32 %v1930_v45  ;;  %v3841_v19 = vsub.f32 %v3671_v12, %v1770_v29 }
 0x403   : > { %v2048_v15 = vsub.f32 %v3636_v35, %v1992_v5 }
 0x404   : > { %v2861_v48 = vpop.eup %2860  ;;  %v1865_v31 = vmul.f32 1.442695, %v3841_v19 }
 0x405   : > { %v2080_v28 = vsel %vm1688_vm0, %v2048_v15, 0.0  ;;  %v1904_v61 = vsel %vm1688_vm0, %v2861_v48, 0.0 }
 0x406   : > { %2112 = vst [vmem:[%s3764_s20 + $0x38] sm:$0xff] %v2080_v28  ;;  %2864 = vpow2.f32 %v1865_v31  ;;  %1959 = vadd.xlane.f32.xlu1 %v1904_v61 }
 0x408   : > { %v2863_v54 = vpop.eup %2862 }
 0x409   : > { %v1994_v55 = vmul.f32 0.6931472, %v2863_v54  ;;  %v1772_v16 = vpop.xlane.xlu1 %1771  ;;  %v1932_v12 = vpop.xlane.xlu2 %1931 }
 0x40a   : > { %v3851_v38 = vsub.f32 %v3682_v7, %v1772_v16  ;;  %2866 = vlog2.f32 %v1932_v12 }
 0x40b   : > { %v2049_v35 = vsub.f32 %v3649_v32, %v1994_v55 }
 0x40c   : > { %v2865_v44 = vpop.eup %2864  ;;  %v1867_v30 = vmul.f32 1.442695, %v3851_v38 }
 0x40d   : > { %v2081_v8 = vsel %vm1688_vm0, %v2049_v35, 0.0  ;;  %v1905_v59 = vsel %vm1688_vm0, %v2865_v44, 0.0 }
 0x40e   : > { %2113 = vst [vmem:[%s3764_s20 + $0x40] sm:$0xff] %v2081_v8  ;;  %2868 = vpow2.f32 %v1867_v30  ;;  %1961 = vadd.xlane.f32.xlu2 %v1905_v59 }
 0x410   : > { %v2867_v11 = vpop.eup %2866 }
 0x411   : > { %v1996_v34 = vmul.f32 0.6931472, %v2867_v11  ;;  %v1774_v7 = vpop.xlane.xlu2 %1773  ;;  %v1934_v52 = vpop.xlane.xlu0 %1933 }
 0x412   : > { %v3861_v27 = vsub.f32 %v3693_v13, %v1774_v7  ;;  %2870 = vlog2.f32 %v1934_v52 }
 0x413   : > { %v2050_v32 = vsub.f32 %v3662_v3, %v1996_v34 }
 0x414   : > { %v2869_v17 = vpop.eup %2868  ;;  %v1869_v22 = vmul.f32 1.442695, %v3861_v27 }
 0x415   : > { %v2082_v63 = vsel %vm1688_vm0, %v2050_v32, 0.0  ;;  %v1906_v50 = vsel %vm1688_vm0, %v2869_v17, 0.0 }
 0x416   : > { %2114 = vst [vmem:[%s3764_s20 + $0x48] sm:$0xff] %v2082_v63  ;;  %2872 = vpow2.f32 %v1869_v22  ;;  %1963 = vadd.xlane.f32.xlu0 %v1906_v50 }
 0x418   : > { %v2871_v56 = vpop.eup %2870 }
 0x419   : > { %v1998_v14 = vmul.f32 0.6931472, %v2871_v56  ;;  %v1776_v13 = vpop.xlane.xlu0 %1775 }
 0x41a   : > { %v3871_v57 = vsub.f32 %v3700_v9, %v1776_v13 }
 0x41b   : > { %v2051_v3 = vsub.f32 %v3675_v4, %v1998_v14 }
 0x41c   : > { %v2873_v33 = vpop.eup %2872  ;;  %v1871_v18 = vmul.f32 1.442695, %v3871_v57 }
 0x41d   : > { %v2083_v36 = vsel %vm1688_vm0, %v2051_v3, 0.0  ;;  %v1907_v49 = vsel %vm1688_vm0, %v2873_v33, 0.0 }
 0x41e   : > { %2115 = vst [vmem:[%s3764_s20 + $0x50] sm:$0xff] %v2083_v36  ;;  %2874 = vpow2.f32 %v1871_v18  ;;  %1965 = vadd.xlane.f32.xlu1 %v1907_v49 }
 0x421   : > { %v1778_v42 = vpop.xlane.xlu1 %1777 }
 0x422   : > { %v3881_v46 = vsub.f32 %v3710_v21, %v1778_v42 }
 0x424   : > { %v2875_v9 = vpop.eup %2874  ;;  %v1873_v47 = vmul.f32 1.442695, %v3881_v46 }
 0x425   : > { %v1908_v4 = vsel %vm1688_vm0, %v2875_v9, 0.0 }
 0x426   : > { %2876 = vpow2.f32 %v1873_v47  ;;  %1967 = vadd.xlane.f32.xlu2 %v1908_v4 }
 0x429   : > { %v1780_v58 = vpop.xlane.xlu2 %1779 }
 0x42a   : > { %v3887_v39 = vsub.f32 %v3721_v53, %v1780_v58 }
 0x42c   : > { %v2877_v20 = vpop.eup %2876  ;;  %v1875_v5 = vmul.f32 1.442695, %v3887_v39 }
 0x42d   : > { %v1909_v45 = vsel %vm1688_vm0, %v2877_v20, 0.0 }
 0x42e   : > { %2878 = vpow2.f32 %v1875_v5  ;;  %1969 = vadd.xlane.f32.xlu0 %v1909_v45 }
 0x431   : > { %v1938_v21 = vpop.xlane.xlu2 %1937  ;;  %v1782_v29 = vpop.xlane.xlu0 %1781 }
 0x432   : > { %2880 = vlog2.f32 %v1938_v21  ;;  %v3893_v15 = vsub.f32 %v3736_v2, %v1782_v29 }
 0x434   : > { %v2879_v48 = vpop.eup %2878  ;;  %v1877_v31 = vmul.f32 1.442695, %v3893_v15 }
 0x435   : > { %v1910_v53 = vsel %vm1688_vm0, %v2879_v48, 0.0 }
 0x436   : > { %2882 = vpow2.f32 %v1877_v31  ;;  %1971 = vadd.xlane.f32.xlu1 %v1910_v53 }
 0x438   : > { %v2881_v28 = vpop.eup %2880 }
 0x439   : > { %v2002_v61 = vmul.f32 0.6931472, %v2881_v28  ;;  %v1784_v54 = vpop.xlane.xlu1 %1783  ;;  %v1940_v55 = vpop.xlane.xlu0 %1939 }
 0x43a   : > { %v3899_v16 = vsub.f32 %v3752_v23, %v1784_v54  ;;  %v1944_v12 = vpop.xlane.xlu2 %1943  ;;  %2884 = vlog2.f32 %v1940_v55 }
 0x43b   : > { %v2053_v2 = vsub.f32 %v3705_v26, %v2002_v61  ;;  %2886 = vlog2.f32 %v1944_v12 }
 0x43c   : > { %v2883_v35 = vpop.eup %2882  ;;  %v1879_v44 = vmul.f32 1.442695, %v3899_v16 }
 0x43d   : > { %v2085_v30 = vsel %vm1688_vm0, %v2053_v2, 0.0  ;;  %v1911_v8 = vsel %vm1688_vm0, %v2883_v35, 0.0 }
 0x43e   : > { %2117 = vst [vmem:[%s3764_s20 + $0x60] sm:$0xff] %v2085_v30  ;;  %2888 = vpow2.f32 %v1879_v44  ;;  %1973 = vadd.xlane.f32.xlu2 %v1911_v8 }
 0x440   : > { %v2885_v23 = vpop.eup %2884 }
 0x441   : > { %v2887_v59 = vpop.eup %2886  ;;  %v2004_v11 = vmul.f32 0.6931472, %v2885_v23  ;;  %v1936_v34 = vpop.xlane.xlu1 %1935 }
 0x442   : > { %v1946_v26 = vpop.xlane.xlu0 %1945  ;;  %v2008_v7 = vmul.f32 0.6931472, %v2887_v59  ;;  %2890 = vlog2.f32 %v1936_v34 }
 0x443   : > { %v2054_v52 = vsub.f32 %v3716_v37, %v2004_v11  ;;  %2892 = vlog2.f32 %v1946_v26 }
 0x444   : > { %v2889_v32 = vpop.eup %2888  ;;  %v2056_v17 = vsub.f32 %v3726_v60, %v2008_v7 }
 0x445   : > { %v2086_v22 = vsel %vm1688_vm0, %v2054_v52, 0.0  ;;  %v1912_v63 = vsel %vm1688_vm0, %v2889_v32, 0.0 }
 0x446   : > { %v2088_v50 = vsel %vm1688_vm0, %v2056_v17, 0.0  ;;  %2118 = vst [vmem:[%s3764_s20 + $0x68] sm:$0xff] %v2086_v22  ;;  %1975 = vadd.xlane.f32.xlu0 %v1912_v63 }
 0x447   : > { %2120 = vst [vmem:[%s3764_s20 + $0x78] sm:$0xff] %v2088_v50 }
 0x448   : > { %v2891_v56 = vpop.eup %2890 }
 0x449   : > { %v2893_v37 = vpop.eup %2892  ;;  %v2000_v14 = vmul.f32 0.6931472, %v2891_v56  ;;  %v1942_v13 = vpop.xlane.xlu1 %1941 }
 0x44a   : > { %v2010_v3 = vmul.f32 0.6931472, %v2893_v37  ;;  %2894 = vlog2.f32 %v1942_v13 }
 0x44b   : > { %v2052_v60 = vsub.f32 %v3730_v62, %v2000_v14 }
 0x44c   : > { %v2057_v33 = vsub.f32 %v3743_v1, %v2010_v3 }
 0x44d   : > { %v2084_v18 = vsel %vm1688_vm0, %v2052_v60, 0.0 }
 0x44e   : > { %2116 = vst [vmem:[%s3764_s20 + $0x58] sm:$0xff] %v2084_v18  ;;  %v2089_v36 = vsel %vm1688_vm0, %v2057_v33, 0.0 }
 0x44f   : > { %2121 = vst [vmem:[%s3764_s20 + $0x80] sm:$0xff] %v2089_v36 }
 0x450   : > { %v2895_v49 = vpop.eup %2894 }
 0x451   : > { %v2006_v42 = vmul.f32 0.6931472, %v2895_v49  ;;  %v1948_v9 = vpop.xlane.xlu1 %1947  ;;  %v1950_v47 = vpop.xlane.xlu2 %1949 }
 0x452   : > { %2896 = vlog2.f32 %v1948_v9 }
 0x453   : > { %v2055_v4 = vsub.f32 %v3747_v40, %v2006_v42  ;;  %2898 = vlog2.f32 %v1950_v47 }
 0x455   : > { %v2087_v62 = vsel %vm1688_vm0, %v2055_v4, 0.0 }
 0x456   : > { %2119 = vst [vmem:[%s3764_s20 + $0x70] sm:$0xff] %v2087_v62 }
 0x458   : > { %v2897_v1 = vpop.eup %2896 }
 0x459   : > { %v2899_v58 = vpop.eup %2898  ;;  %v2012_v20 = vmul.f32 0.6931472, %v2897_v1  ;;  %v1952_v5 = vpop.xlane.xlu0 %1951 }
 0x45a   : > { %v2014_v45 = vmul.f32 0.6931472, %v2899_v58  ;;  %2900 = vlog2.f32 %v1952_v5 }
 0x45b   : > { %v2058_v21 = vsub.f32 %v3768_v43, %v2012_v20 }
 0x45c   : > { %v2059_v29 = vsub.f32 %v3779_v41, %v2014_v45 }
 0x45d   : > { %v2090_v48 = vsel %vm1688_vm0, %v2058_v21, 0.0 }
 0x45e   : > { %2122 = vst [vmem:[%s3764_s20 + $0x88] sm:$0xff] %v2090_v48  ;;  %v2091_v40 = vsel %vm1688_vm0, %v2059_v29, 0.0 }
 0x45f   : > { %2123 = vst [vmem:[%s3764_s20 + $0x90] sm:$0xff] %v2091_v40 }
 0x460   : > { %v2901_v31 = vpop.eup %2900 }
 0x461   : > { %v2016_v53 = vmul.f32 0.6931472, %v2901_v31  ;;  %v1954_v28 = vpop.xlane.xlu1 %1953 }
 0x462   : > { %2902 = vlog2.f32 %v1954_v28 }
 0x463   : > { %v2060_v61 = vsub.f32 %v3789_v24, %v2016_v53 }
 0x465   : > { %v2092_v43 = vsel %vm1688_vm0, %v2060_v61, 0.0 }
 0x466   : > { %2124 = vst [vmem:[%s3764_s20 + $0x98] sm:$0xff] %v2092_v43 }
 0x468   : > { %v2903_v41 = vpop.eup %2902 }
 0x469   : > { %v2018_v54 = vmul.f32 0.6931472, %v2903_v41  ;;  %v1956_v55 = vpop.xlane.xlu2 %1955 }
 0x46a   : > { %2904 = vlog2.f32 %v1956_v55 }
 0x46b   : > { %v2061_v12 = vsub.f32 %v3801_v51, %v2018_v54 }
 0x46d   : > { %v2093_v2 = vsel %vm1688_vm0, %v2061_v12, 0.0 }
 0x46e   : > { %2125 = vst [vmem:[%s3764_s20 + $0xa0] sm:$0xff] %v2093_v2 }
 0x470   : > { %v2905_v35 = vpop.eup %2904 }
 0x471   : > { %v2020_v44 = vmul.f32 0.6931472, %v2905_v35  ;;  %v1958_v30 = vpop.xlane.xlu0 %1957 }
 0x472   : > { %2906 = vlog2.f32 %v1958_v30 }
 0x473   : > { %v2062_v24 = vsub.f32 %v3811_v10, %v2020_v44 }
 0x475   : > { %v2094_v8 = vsel %vm1688_vm0, %v2062_v24, 0.0 }
 0x476   : > { %2126 = vst [vmem:[%s3764_s20 + $0xa8] sm:$0xff] %v2094_v8 }
 0x478   : > { %v2907_v23 = vpop.eup %2906 }
 0x479   : > { %v2022_v59 = vmul.f32 0.6931472, %v2907_v23  ;;  %v1960_v11 = vpop.xlane.xlu1 %1959 }
 0x47a   : > { %2908 = vlog2.f32 %v1960_v11 }
 0x47b   : > { %v2063_v51 = vsub.f32 %v3821_v25, %v2022_v59 }
 0x47d   : > { %v2095_v34 = vsel %vm1688_vm0, %v2063_v51, 0.0 }
 0x47e   : > { %2127 = vst [vmem:[%s3764_s20 + $0xb0] sm:$0xff] %v2095_v34 }
 0x480   : > { %v2909_v26 = vpop.eup %2908 }
 0x481   : > { %v2024_v7 = vmul.f32 0.6931472, %v2909_v26  ;;  %v1962_v52 = vpop.xlane.xlu2 %1961 }
 0x482   : > { %2910 = vlog2.f32 %v1962_v52 }
 0x483   : > { %v2064_v10 = vsub.f32 %v3831_v0, %v2024_v7 }
 0x485   : > { %v2096_v32 = vsel %vm1688_vm0, %v2064_v10, 0.0 }
 0x486   : > { %2128 = vst [vmem:[%s3764_s20 + $0xb8] sm:$0xff] %v2096_v32 }
 0x488   : > { %v2911_v17 = vpop.eup %2910 }
 0x489   : > { %v2026_v22 = vmul.f32 0.6931472, %v2911_v17  ;;  %v1964_v63 = vpop.xlane.xlu0 %1963 }
 0x48a   : > { %2912 = vlog2.f32 %v1964_v63 }
 0x48b   : > { %v2065_v25 = vsub.f32 %v3841_v19, %v2026_v22 }
 0x48d   : > { %v2097_v50 = vsel %vm1688_vm0, %v2065_v25, 0.0 }
 0x48e   : > { %2129 = vst [vmem:[%s3764_s20 + $0xc0] sm:$0xff] %v2097_v50 }
 0x490   : > { %v2913_v56 = vpop.eup %2912 }
 0x491   : > { %v2028_v37 = vmul.f32 0.6931472, %v2913_v56  ;;  %v1966_v14 = vpop.xlane.xlu1 %1965 }
 0x492   : > { %2914 = vlog2.f32 %v1966_v14 }
 0x493   : > { %v2066_v0 = vsub.f32 %v3851_v38, %v2028_v37 }
 0x495   : > { %v2098_v13 = vsel %vm1688_vm0, %v2066_v0, 0.0 }
 0x496   : > { %2130 = vst [vmem:[%s3764_s20 + $0xc8] sm:$0xff] %v2098_v13 }
 0x498   : > { %v2915_v3 = vpop.eup %2914 }
 0x499   : > { %v2030_v60 = vmul.f32 0.6931472, %v2915_v3  ;;  %v1968_v33 = vpop.xlane.xlu2 %1967 }
 0x49a   : > { %2916 = vlog2.f32 %v1968_v33 }
 0x49b   : > { %v2067_v19 = vsub.f32 %v3861_v27, %v2030_v60 }
 0x49d   : > { %v2099_v18 = vsel %vm1688_vm0, %v2067_v19, 0.0 }
 0x49e   : > { %2131 = vst [vmem:[%s3764_s20 + $0xd0] sm:$0xff] %v2099_v18 }
 0x4a0   : > { %v2917_v36 = vpop.eup %2916 }
 0x4a1   : > { %v2032_v49 = vmul.f32 0.6931472, %v2917_v36  ;;  %v1970_v42 = vpop.xlane.xlu0 %1969 }
 0x4a2   : > { %2918 = vlog2.f32 %v1970_v42 }
 0x4a3   : > { %v2068_v38 = vsub.f32 %v3871_v57, %v2032_v49 }
 0x4a5   : > { %v2100_v9 = vsel %vm1688_vm0, %v2068_v38, 0.0 }
 0x4a6   : > { %2132 = vst [vmem:[%s3764_s20 + $0xd8] sm:$0xff] %v2100_v9 }
 0x4a8   : > { %v2919_v47 = vpop.eup %2918 }
 0x4a9   : > { %v2034_v4 = vmul.f32 0.6931472, %v2919_v47  ;;  %v1972_v62 = vpop.xlane.xlu1 %1971 }
 0x4aa   : > { %2920 = vlog2.f32 %v1972_v62 }
 0x4ab   : > { %v2069_v27 = vsub.f32 %v3881_v46, %v2034_v4 }
 0x4ad   : > { %v2101_v1 = vsel %vm1688_vm0, %v2069_v27, 0.0 }
 0x4ae   : > { %2133 = vst [vmem:[%s3764_s20 + $0xe0] sm:$0xff] %v2101_v1 }
 0x4b0   : > { %v2921_v58 = vpop.eup %2920 }
 0x4b1   : > { %v2036_v20 = vmul.f32 0.6931472, %v2921_v58  ;;  %v1974_v5 = vpop.xlane.xlu2 %1973 }
 0x4b2   : > { %2922 = vlog2.f32 %v1974_v5 }
 0x4b3   : > { %v2070_v57 = vsub.f32 %v3887_v39, %v2036_v20 }
 0x4b5   : > { %v2102_v45 = vsel %vm1688_vm0, %v2070_v57, 0.0 }
 0x4b6   : > { %2134 = vst [vmem:[%s3764_s20 + $0xe8] sm:$0xff] %v2102_v45 }
 0x4b8   : > { %v2923_v21 = vpop.eup %2922 }
 0x4b9   : > { %v2038_v29 = vmul.f32 0.6931472, %v2923_v21  ;;  %v1976_v48 = vpop.xlane.xlu0 %1975 }
 0x4ba   : > { %2924 = vlog2.f32 %v1976_v48 }
 0x4bb   : > { %v2071_v46 = vsub.f32 %v3893_v15, %v2038_v29 }
 0x4bd   : > { %v2103_v40 = vsel %vm1688_vm0, %v2071_v46, 0.0 }
 0x4be   : > { %2135 = vst [vmem:[%s3764_s20 + $0xf0] sm:$0xff] %v2103_v40 }
 0x4c0   : > { %v2925_v31 = vpop.eup %2924 }
 0x4c1   : > { %v2040_v53 = vmul.f32 0.6931472, %v2925_v31 }
 0x4c3   : > { %v2072_v28 = vsub.f32 %v3899_v16, %v2040_v53 }
 0x4c5   : > { %v2104_v39 = vsel %vm1688_vm0, %v2072_v28, 0.0 }
 0x4c6   : > { %2136 = vst [vmem:[%s3764_s20 + $0xf8] sm:$0xff] %v2104_v39 }
 0x4c7 PF: > { %s14_s17 = sadd.s32 1, %s2948_s17   ;;  %s4004_s15 = smov %s2944_s16 }
 0x4c8   : > { %p11_p5 = scmp.ge.s32.totalorder %s14_s17, 4   ;;  %s4005_s16 = smov %s4007_s18 }
 0x4ca   :  { %13 = sbr.rel (!%p11_p5) target bundleno = 2 (0x2), region = 77 }

</bundles_post_ra>
